<compile_context>
chip_gen: v6e
topology: v6e:2x2x1
jax: 0.10.0
libtpu: 0.0.40
codegen_flags: <defaults>
</compile_context>

<pallas_src>
import numpy as np
import jax
import jax.numpy as jnp
from jax import lax
from jax.experimental import pallas as pl
from jax.experimental.pallas import tpu as pltpu


def _round_up(x, m):
    return ((x + m - 1) // m) * m


def _pad_gate_cols(w, rows_p, H, Hp):
    """w: (rows, 4*H) f32 -> (rows_p, 4*Hp) f32 with gate g placed at columns
    [g*Hp, g*Hp + H); everything else zero (keeps padded lanes inert)."""
    rows = w.shape[0]
    out = jnp.zeros((rows_p, 4 * Hp), jnp.float32)
    for g in range(4):
        out = out.at[:rows, g * Hp:g * Hp + H].set(w[:, g * H:(g + 1) * H])
    return out


def _make_lstm_kernel(num_layers, seq_len, batch_p, hidden_p, last_t):
    L, T, Bp, Hp = num_layers, seq_len, batch_p, hidden_p

    def kernel(*refs):
        # inputs: x2d (T*Bp, Ip) bf16, len (Bp, Hp) i32, h0 (L,Bp,Hp), c0 (L,Bp,Hp),
        #         per layer [w_ih^T (in_p,4Hp) bf16, w_hh^T (Hp,4Hp) bf16, b (1,4Hp) f32]
        x_ref, len_ref, h0_ref, c0_ref = refs[0:4]
        w_refs = refs[4:4 + 3 * L]
        out_last_ref, hn_ref, cn_ref = refs[4 + 3 * L:4 + 3 * L + 3]
        pre_ref, seq_ref = refs[4 + 3 * L + 3:]   # VMEM scratch

        len_mat = len_ref[...]                    # (Bp, Hp) int32, loaded once

        for l in range(L):
            w_ih_ref = w_refs[3 * l]              # (in_p, 4*Hp) bf16
            w_hh_ref = w_refs[3 * l + 1]          # (Hp,   4*Hp) bf16
            b_ref = w_refs[3 * l + 2]             # (1,    4*Hp) f32

            # ---- hoisted input projection: one MXU matmul per layer (bias folded in) ----
            if l == 0:
                layer_in = x_ref[...]                                  # (T*Bp, Ip) bf16
            else:
                layer_in = seq_ref[...].astype(jnp.bfloat16)           # (T*Bp, Hp) bf16
            pre_ref[...] = (
                jnp.dot(layer_in, w_ih_ref[...],
                        preferred_element_type=jnp.float32)
                + b_ref[...]                                           # (T*Bp, 4*Hp) f32
            )

            # ---- serial recurrence over time (only the small h @ W_hh matmul left) ----
            def step(t, carry, w_hh_ref=w_hh_ref):
                h, c = carry                                           # f32 (Bp, Hp)
                row = pl.multiple_of(t * Bp, Bp)
                gates = pre_ref[pl.ds(row, Bp), :] + jnp.dot(
                    h.astype(jnp.bfloat16), w_hh_ref[...],
                    preferred_element_type=jnp.float32)                # (Bp, 4*Hp)
                i_g = jax.nn.sigmoid(gates[:, 0 * Hp:1 * Hp])
                f_g = jax.nn.sigmoid(gates[:, 1 * Hp:2 * Hp])
                g_g = jnp.tanh(gates[:, 2 * Hp:3 * Hp])
                o_g = jax.nn.sigmoid(gates[:, 3 * Hp:4 * Hp])
                c_new = f_g * c + i_g * g_g
                h_new = o_g * jnp.tanh(c_new)
                mask = t < len_mat                                     # (Bp, Hp) bool
                h_next = jnp.where(mask, h_new, h)     # freeze state past sequence end
                c_next = jnp.where(mask, c_new, c)
                seq_ref[pl.ds(row, Bp), :] = jnp.where(mask, h_new, 0.0)  # padded -> 0
                return (h_next, c_next)

            h_fin, c_fin = lax.fori_loop(0, T, step, (h0_ref[l], c0_ref[l]),
                                         unroll=True)
            hn_ref[l] = h_fin
            cn_ref[l] = c_fin

        # x[:, -1, :] of the pad_packed output (seq length == max(lengths))
        out_last_ref[...] = seq_ref[pl.ds(last_t * Bp, Bp), :]

    return kernel


def encoder_lstm_forward(x, lengths, params, h0, c0):
    """x: (B, T, input_size) batch-first.  lengths: host ints, sorted descending
    (pack_padded_sequence contract).  params: list of (w_ih, w_hh, b_ih, b_hh) per
    layer with PyTorch shapes.  Returns (x_last (B,H), (h_n (B,H,L), c_n (B,H,L)))."""
    B, T, I = x.shape
    L = len(params)
    H = params[0][1].shape[1]                 # w_hh: (4H, H)
    lengths_np = np.asarray(lengths)
    last_t = int(lengths_np.max()) - 1        # static (lengths live on host, as in PyTorch)

    Hp = _round_up(max(H, 1), 128)            # lane-aligned hidden
    Bp = _round_up(max(B, 1), 8)              # sublane-aligned batch
    Ip = _round_up(max(I, 1), 128)            # lane-aligned input features

    # ---- glue: pad / transpose / flatten (XLA side, one-time) ----
    x_tm = jnp.transpose(x, (1, 0, 2)).astype(jnp.float32)                 # (T,B,I)
    x_p = jnp.zeros((T, Bp, Ip), jnp.float32).at[:, :B, :I].set(x_tm)
    x2d = x_p.reshape(T * Bp, Ip).astype(jnp.bfloat16)                     # (T*Bp, Ip)

    len_p = np.zeros((Bp,), np.int32)
    len_p[:B] = lengths_np.astype(np.int32)                                # padded rows: 0
    len_b = jnp.asarray(np.broadcast_to(len_p[:, None], (Bp, Hp)).copy())  # (Bp, Hp) i32

    h0_p = jnp.zeros((L, Bp, Hp), jnp.float32).at[:, :B, :H].set(h0.astype(jnp.float32))
    c0_p = jnp.zeros((L, Bp, Hp), jnp.float32).at[:, :B, :H].set(c0.astype(jnp.float32))

    flat_w = []
    for l, (w_ih, w_hh, b_ih, b_hh) in enumerate(params):
        in_p = Ip if l == 0 else Hp
        w_ih_t = jnp.transpose(w_ih).astype(jnp.float32)                   # (in_l, 4H)
        w_hh_t = jnp.transpose(w_hh).astype(jnp.float32)                   # (H,    4H)
        flat_w.append(_pad_gate_cols(w_ih_t, in_p, H, Hp).astype(jnp.bfloat16))
        flat_w.append(_pad_gate_cols(w_hh_t, Hp, H, Hp).astype(jnp.bfloat16))
        b = (b_ih + b_hh).astype(jnp.float32)[None, :]                     # (1, 4H)
        flat_w.append(_pad_gate_cols(b, 1, H, Hp))                         # (1, 4*Hp) f32

    kernel = _make_lstm_kernel(L, T, Bp, Hp, last_t)
    n_in = 4 + 3 * L
    vmem = pl.BlockSpec(memory_space=pltpu.MemorySpace.VMEM)

    out_last, h_n, c_n = pl.pallas_call(
        kernel,
        out_shape=(jax.ShapeDtypeStruct((Bp, Hp), jnp.float32),
                   jax.ShapeDtypeStruct((L, Bp, Hp), jnp.float32),
                   jax.ShapeDtypeStruct((L, Bp, Hp), jnp.float32)),
        in_specs=[vmem] * n_in,
        out_specs=(vmem, vmem, vmem),
        scratch_shapes=[pltpu.VMEM((T * Bp, 4 * Hp), jnp.float32),   # hoisted pre-activations
                        pltpu.VMEM((T * Bp, Hp), jnp.float32)],      # per-layer output seq
        compiler_params=pltpu.CompilerParams(vmem_limit_bytes=32 * 1024 * 1024),
    )(x2d, len_b, h0_p, c0_p, *flat_w)

    # slice padding away; hidden = (h_n.permute(1, 2, 0), c_n.permute(1, 2, 0))
    out_last = out_last[:B, :H]
    h_n = jnp.transpose(h_n[:, :B, :H], (1, 2, 0))
    c_n = jnp.transpose(c_n[:, :B, :H], (1, 2, 0))
    return out_last, (h_n, c_n)


def _reference(x, lengths, params, h0, c0):
    """Pure-JAX emulation of the PyTorch packed-sequence LSTM forward."""
    B, T, _ = x.shape
    H = params[0][1].shape[1]
    lengths_np = np.asarray(lengths)
    mask = (np.arange(T)[None, :] < lengths_np[:, None]).astype(np.float32)  # (B,T)
    layer_in = x
    hs, cs = [], []
    for l, (w_ih, w_hh, b_ih, b_hh) in enumerate(params):
        h, c = h0[l], c0[l]
        outs = []
        for t in range(T):
            xt = layer_in[:, t, :]
            g = xt @ w_ih.T + h @ w_hh.T + b_ih + b_hh
            i_g = jax.nn.sigmoid(g[:, :H])
            f_g = jax.nn.sigmoid(g[:, H:2 * H])
            g_g = jnp.tanh(g[:, 2 * H:3 * H])
            o_g = jax.nn.sigmoid(g[:, 3 * H:4 * H])
            c_new = f_g * c + i_g * g_g
            h_new = o_g * jnp.tanh(c_new)
            m = jnp.asarray(mask[:, t:t + 1])
            h = m * h_new + (1 - m) * h
            c = m * c_new + (1 - m) * c
            outs.append(m * h_new)
        layer_in = jnp.stack(outs, axis=1)
        hs.append(h)
        cs.append(c)
    last_t = int(lengths_np.max()) - 1
    h_n = jnp.transpose(jnp.stack(hs), (1, 2, 0))
    c_n = jnp.transpose(jnp.stack(cs), (1, 2, 0))
    return layer_in[:, last_t, :], (h_n, c_n)


if __name__ == "__main__":
    B, T, I, H, L = 2, 8, 4, 32, 2

    key = jax.random.PRNGKey(0)
    key, kx = jax.random.split(key)
    x = jax.random.normal(kx, (B, T, I), dtype=jnp.float32)
    lengths = [8, 5]  # sorted descending, max == T (pack_padded_sequence contract)

    # deterministic parameter init (PyTorch nn.LSTM: U(-1/sqrt(H), 1/sqrt(H)))
    k = 1.0 / np.sqrt(H)
    params = []
    for l in range(L):
        in_l = I if l == 0 else H
        key, k1, k2, k3, k4 = jax.random.split(key, 5)
        params.append((
            jax.random.uniform(k1, (4 * H, in_l), minval=-k, maxval=k, dtype=jnp.float32),
            jax.random.uniform(k2, (4 * H, H), minval=-k, maxval=k, dtype=jnp.float32),
            jax.random.uniform(k3, (4 * H,), minval=-k, maxval=k, dtype=jnp.float32),
            jax.random.uniform(k4, (4 * H,), minval=-k, maxval=k, dtype=jnp.float32),
        ))

    # init_hidden_state: torch.rand -> uniform [0, 1), deterministic here via PRNGKey
    key, kh, kc = jax.random.split(key, 3)
    h0 = jax.random.uniform(kh, (L, B, H), dtype=jnp.float32)
    c0 = jax.random.uniform(kc, (L, B, H), dtype=jnp.float32)

    x_last, (h_n, c_n) = encoder_lstm_forward(x, lengths, params, h0, c0)
    jax.block_until_ready((x_last, h_n, c_n))

    ref_last, (ref_h, ref_c) = _reference(x, lengths, params, h0, c0)
    np.testing.assert_allclose(np.asarray(x_last), np.asarray(ref_last), rtol=2e-2, atol=2e-2)
    np.testing.assert_allclose(np.asarray(h_n), np.asarray(ref_h), rtol=2e-2, atol=2e-2)
    np.testing.assert_allclose(np.asarray(c_n), np.asarray(ref_c), rtol=2e-2, atol=2e-2)

    assert x_last.shape == (B, H) and h_n.shape == (B, H, L) and c_n.shape == (B, H, L)
    print("KERNEL_OK")
</pallas_src>

<mosaic_0001>
module attributes {stable_mosaic.version = 11 : i64} {
  func.func @kernel(%arg0: memref<64x128xbf16, #tpu.memory_space<vmem>>, %arg1: memref<8x128xi32, #tpu.memory_space<vmem>>, %arg2: memref<2x8x128xf32, #tpu.memory_space<vmem>>, %arg3: memref<2x8x128xf32, #tpu.memory_space<vmem>>, %arg4: memref<128x512xbf16, #tpu.memory_space<vmem>>, %arg5: memref<128x512xbf16, #tpu.memory_space<vmem>>, %arg6: memref<1x512xf32, #tpu.memory_space<vmem>>, %arg7: memref<128x512xbf16, #tpu.memory_space<vmem>>, %arg8: memref<128x512xbf16, #tpu.memory_space<vmem>>, %arg9: memref<1x512xf32, #tpu.memory_space<vmem>>, %arg10: memref<8x128xf32, #tpu.memory_space<vmem>>, %arg11: memref<2x8x128xf32, #tpu.memory_space<vmem>>, %arg12: memref<2x8x128xf32, #tpu.memory_space<vmem>>, %arg13: memref<64x512xf32, #tpu.memory_space<vmem>>, %arg14: memref<64x128xf32, #tpu.memory_space<vmem>>) attributes {dimension_semantics = [], scalar_prefetch = 0 : i64, scratch_operands = 2 : i64, tpu.core_type = #tpu.core_type<tc>} {
    %c0 = arith.constant 0 : index
    %c0_0 = arith.constant 0 : index
    %0 = vector.load %arg1[%c0, %c0_0] : memref<8x128xi32, #tpu.memory_space<vmem>>, vector<8x128xi32>
    %c0_1 = arith.constant 0 : index
    %c0_2 = arith.constant 0 : index
    %1 = vector.load %arg0[%c0_1, %c0_2] : memref<64x128xbf16, #tpu.memory_space<vmem>>, vector<64x128xbf16>
    %c0_3 = arith.constant 0 : index
    %c0_4 = arith.constant 0 : index
    %2 = vector.load %arg4[%c0_3, %c0_4] : memref<128x512xbf16, #tpu.memory_space<vmem>>, vector<128x512xbf16>
    %cst = arith.constant dense<0.000000e+00> : vector<64x512xf32>
    %3 = tpu.matmul %1, %2, %cst {dimension_numbers = #tpu.dot_dimension_numbers<[1], [0], [0], [1], [0, 0, 1, 1], [], []>} : vector<64x128xbf16>, vector<128x512xbf16>, vector<64x512xf32> -> vector<64x512xf32>
    %c0_5 = arith.constant 0 : index
    %c0_6 = arith.constant 0 : index
    %4 = vector.load %arg6[%c0_5, %c0_6] : memref<1x512xf32, #tpu.memory_space<vmem>>, vector<1x512xf32>
    %5 = vector.broadcast %4 : vector<1x512xf32> to vector<64x512xf32>
    %6 = arith.addf %3, %5 : vector<64x512xf32>
    %c0_7 = arith.constant 0 : index
    %c0_8 = arith.constant 0 : index
    %7 = vector.load %arg13[%c0_7, %c0_8] : memref<64x512xf32, #tpu.memory_space<vmem>>, vector<64x512xf32>
    tpu.vector_store %arg13[%c0_7, %c0_8], %6 {strides = array<i32>} : memref<64x512xf32, #tpu.memory_space<vmem>>, vector<64x512xf32>,
    %c0_9 = arith.constant 0 : index
    %c0_10 = arith.constant 0 : index
    %c0_11 = arith.constant 0 : index
    %8 = vector.load %arg2[%c0_9, %c0_10, %c0_11] : memref<2x8x128xf32, #tpu.memory_space<vmem>>, vector<1x8x128xf32>
    %9 = vector.shape_cast %8 : vector<1x8x128xf32> to vector<8x128xf32>
    %c0_12 = arith.constant 0 : index
    %c0_13 = arith.constant 0 : index
    %c0_14 = arith.constant 0 : index
    %10 = vector.load %arg3[%c0_12, %c0_13, %c0_14] : memref<2x8x128xf32, #tpu.memory_space<vmem>>, vector<1x8x128xf32>
    %11 = vector.shape_cast %10 : vector<1x8x128xf32> to vector<8x128xf32>
    %c0_i32 = arith.constant 0 : i32
    %c8_i32 = arith.constant 8 : i32
    %12 = arith.muli %c0_i32, %c8_i32 : i32
    %13 = tpu.assume_multiple %12, 8 : i32
    %14 = arith.index_cast %13 : i32 to index
    %c0_15 = arith.constant 0 : index
    %15 = vector.load %arg13[%14, %c0_15] : memref<64x512xf32, #tpu.memory_space<vmem>>, vector<8x512xf32>
    %16 = arith.truncf %9 : vector<8x128xf32> to vector<8x128xbf16>
    %c0_16 = arith.constant 0 : index
    %c0_17 = arith.constant 0 : index
    %17 = vector.load %arg5[%c0_16, %c0_17] : memref<128x512xbf16, #tpu.memory_space<vmem>>, vector<128x512xbf16>
    %cst_18 = arith.constant dense<0.000000e+00> : vector<8x512xf32>
    %18 = tpu.matmul %16, %17, %cst_18 {dimension_numbers = #tpu.dot_dimension_numbers<[1], [0], [0], [1], [0, 0, 1, 1], [], []>} : vector<8x128xbf16>, vector<128x512xbf16>, vector<8x512xf32> -> vector<8x512xf32>
    %19 = arith.addf %15, %18 : vector<8x512xf32>
    %20 = vector.extract_strided_slice %19 {offsets = [0, 0], sizes = [8, 128], strides = [1, 1]} : vector<8x512xf32> to vector<8x128xf32>
    %21 = arith.negf %20 : vector<8x128xf32>
    %22 = math.exp %21 : vector<8x128xf32>
    %cst_19 = arith.constant 1.000000e+00 : f32
    %23 = vector.broadcast %cst_19 : f32 to vector<8x128xf32>
    %24 = arith.addf %23, %22 : vector<8x128xf32>
    %25 = arith.divf %23, %24 : vector<8x128xf32>
    %26 = vector.extract_strided_slice %19 {offsets = [0, 128], sizes = [8, 128], strides = [1, 1]} : vector<8x512xf32> to vector<8x128xf32>
    %27 = arith.negf %26 : vector<8x128xf32>
    %28 = math.exp %27 : vector<8x128xf32>
    %cst_20 = arith.constant 1.000000e+00 : f32
    %29 = vector.broadcast %cst_20 : f32 to vector<8x128xf32>
    %30 = arith.addf %29, %28 : vector<8x128xf32>
    %31 = arith.divf %29, %30 : vector<8x128xf32>
    %32 = vector.extract_strided_slice %19 {offsets = [0, 256], sizes = [8, 128], strides = [1, 1]} : vector<8x512xf32> to vector<8x128xf32>
    %33 = math.tanh %32 : vector<8x128xf32>
    %34 = vector.extract_strided_slice %19 {offsets = [0, 384], sizes = [8, 128], strides = [1, 1]} : vector<8x512xf32> to vector<8x128xf32>
    %35 = arith.negf %34 : vector<8x128xf32>
    %36 = math.exp %35 : vector<8x128xf32>
    %cst_21 = arith.constant 1.000000e+00 : f32
    %37 = vector.broadcast %cst_21 : f32 to vector<8x128xf32>
    %38 = arith.addf %37, %36 : vector<8x128xf32>
    %39 = arith.divf %37, %38 : vector<8x128xf32>
    %40 = arith.mulf %31, %11 : vector<8x128xf32>
    %41 = arith.mulf %25, %33 : vector<8x128xf32>
    %42 = arith.addf %40, %41 : vector<8x128xf32>
    %43 = math.tanh %42 : vector<8x128xf32>
    %44 = arith.mulf %39, %43 : vector<8x128xf32>
    %45 = vector.broadcast %c0_i32 : i32 to vector<8x128xi32>
    %46 = arith.cmpi slt, %45, %0 : vector<8x128xi32>
    %47 = arith.select %46, %44, %9 : vector<8x128xi1>, vector<8x128xf32>
    %48 = arith.select %46, %42, %11 : vector<8x128xi1>, vector<8x128xf32>
    %cst_22 = arith.constant 0.000000e+00 : f32
    %49 = vector.broadcast %cst_22 : f32 to vector<8x128xf32>
    %50 = arith.select %46, %44, %49 : vector<8x128xi1>, vector<8x128xf32>
    %51 = arith.index_cast %13 : i32 to index
    %c0_23 = arith.constant 0 : index
    %52 = vector.load %arg14[%51, %c0_23] : memref<64x128xf32, #tpu.memory_space<vmem>>, vector<8x128xf32>
    tpu.vector_store %arg14[%51, %c0_23], %50 {strides = array<i32>} : memref<64x128xf32, #tpu.memory_space<vmem>>, vector<8x128xf32>,
    %c1_i32 = arith.constant 1 : i32
    %c8_i32_24 = arith.constant 8 : i32
    %53 = arith.muli %c1_i32, %c8_i32_24 : i32
    %54 = tpu.assume_multiple %53, 8 : i32
    %55 = arith.index_cast %54 : i32 to index
    %c0_25 = arith.constant 0 : index
    %56 = vector.load %arg13[%55, %c0_25] : memref<64x512xf32, #tpu.memory_space<vmem>>, vector<8x512xf32>
    %57 = arith.truncf %47 : vector<8x128xf32> to vector<8x128xbf16>
    %c0_26 = arith.constant 0 : index
    %c0_27 = arith.constant 0 : index
    %58 = vector.load %arg5[%c0_26, %c0_27] : memref<128x512xbf16, #tpu.memory_space<vmem>>, vector<128x512xbf16>
    %cst_28 = arith.constant dense<0.000000e+00> : vector<8x512xf32>
    %59 = tpu.matmul %57, %58, %cst_28 {dimension_numbers = #tpu.dot_dimension_numbers<[1], [0], [0], [1], [0, 0, 1, 1], [], []>} : vector<8x128xbf16>, vector<128x512xbf16>, vector<8x512xf32> -> vector<8x512xf32>
    %60 = arith.addf %56, %59 : vector<8x512xf32>
    %61 = vector.extract_strided_slice %60 {offsets = [0, 0], sizes = [8, 128], strides = [1, 1]} : vector<8x512xf32> to vector<8x128xf32>
    %62 = arith.negf %61 : vector<8x128xf32>
    %63 = math.exp %62 : vector<8x128xf32>
    %cst_29 = arith.constant 1.000000e+00 : f32
    %64 = vector.broadcast %cst_29 : f32 to vector<8x128xf32>
    %65 = arith.addf %64, %63 : vector<8x128xf32>
    %66 = arith.divf %64, %65 : vector<8x128xf32>
    %67 = vector.extract_strided_slice %60 {offsets = [0, 128], sizes = [8, 128], strides = [1, 1]} : vector<8x512xf32> to vector<8x128xf32>
    %68 = arith.negf %67 : vector<8x128xf32>
    %69 = math.exp %68 : vector<8x128xf32>
    %cst_30 = arith.constant 1.000000e+00 : f32
    %70 = vector.broadcast %cst_30 : f32 to vector<8x128xf32>
    %71 = arith.addf %70, %69 : vector<8x128xf32>
    %72 = arith.divf %70, %71 : vector<8x128xf32>
    %73 = vector.extract_strided_slice %60 {offsets = [0, 256], sizes = [8, 128], strides = [1, 1]} : vector<8x512xf32> to vector<8x128xf32>
    %74 = math.tanh %73 : vector<8x128xf32>
    %75 = vector.extract_strided_slice %60 {offsets = [0, 384], sizes = [8, 128], strides = [1, 1]} : vector<8x512xf32> to vector<8x128xf32>
    %76 = arith.negf %75 : vector<8x128xf32>
    %77 = math.exp %76 : vector<8x128xf32>
    %cst_31 = arith.constant 1.000000e+00 : f32
    %78 = vector.broadcast %cst_31 : f32 to vector<8x128xf32>
    %79 = arith.addf %78, %77 : vector<8x128xf32>
    %80 = arith.divf %78, %79 : vector<8x128xf32>
    %81 = arith.mulf %72, %48 : vector<8x128xf32>
    %82 = arith.mulf %66, %74 : vector<8x128xf32>
    %83 = arith.addf %81, %82 : vector<8x128xf32>
    %84 = math.tanh %83 : vector<8x128xf32>
    %85 = arith.mulf %80, %84 : vector<8x128xf32>
    %86 = vector.broadcast %c1_i32 : i32 to vector<8x128xi32>
    %87 = arith.cmpi slt, %86, %0 : vector<8x128xi32>
    %88 = arith.select %87, %85, %47 : vector<8x128xi1>, vector<8x128xf32>
    %89 = arith.select %87, %83, %48 : vector<8x128xi1>, vector<8x128xf32>
    %cst_32 = arith.constant 0.000000e+00 : f32
    %90 = vector.broadcast %cst_32 : f32 to vector<8x128xf32>
    %91 = arith.select %87, %85, %90 : vector<8x128xi1>, vector<8x128xf32>
    %92 = arith.index_cast %54 : i32 to index
    %c0_33 = arith.constant 0 : index
    %93 = vector.load %arg14[%92, %c0_33] : memref<64x128xf32, #tpu.memory_space<vmem>>, vector<8x128xf32>
    tpu.vector_store %arg14[%92, %c0_33], %91 {strides = array<i32>} : memref<64x128xf32, #tpu.memory_space<vmem>>, vector<8x128xf32>,
    %c2_i32 = arith.constant 2 : i32
    %c8_i32_34 = arith.constant 8 : i32
    %94 = arith.muli %c2_i32, %c8_i32_34 : i32
    %95 = tpu.assume_multiple %94, 8 : i32
    %96 = arith.index_cast %95 : i32 to index
    %c0_35 = arith.constant 0 : index
    %97 = vector.load %arg13[%96, %c0_35] : memref<64x512xf32, #tpu.memory_space<vmem>>, vector<8x512xf32>
    %98 = arith.truncf %88 : vector<8x128xf32> to vector<8x128xbf16>
    %c0_36 = arith.constant 0 : index
    %c0_37 = arith.constant 0 : index
    %99 = vector.load %arg5[%c0_36, %c0_37] : memref<128x512xbf16, #tpu.memory_space<vmem>>, vector<128x512xbf16>
    %cst_38 = arith.constant dense<0.000000e+00> : vector<8x512xf32>
    %100 = tpu.matmul %98, %99, %cst_38 {dimension_numbers = #tpu.dot_dimension_numbers<[1], [0], [0], [1], [0, 0, 1, 1], [], []>} : vector<8x128xbf16>, vector<128x512xbf16>, vector<8x512xf32> -> vector<8x512xf32>
    %101 = arith.addf %97, %100 : vector<8x512xf32>
    %102 = vector.extract_strided_slice %101 {offsets = [0, 0], sizes = [8, 128], strides = [1, 1]} : vector<8x512xf32> to vector<8x128xf32>
    %103 = arith.negf %102 : vector<8x128xf32>
    %104 = math.exp %103 : vector<8x128xf32>
    %cst_39 = arith.constant 1.000000e+00 : f32
    %105 = vector.broadcast %cst_39 : f32 to vector<8x128xf32>
    %106 = arith.addf %105, %104 : vector<8x128xf32>
    %107 = arith.divf %105, %106 : vector<8x128xf32>
    %108 = vector.extract_strided_slice %101 {offsets = [0, 128], sizes = [8, 128], strides = [1, 1]} : vector<8x512xf32> to vector<8x128xf32>
    %109 = arith.negf %108 : vector<8x128xf32>
    %110 = math.exp %109 : vector<8x128xf32>
    %cst_40 = arith.constant 1.000000e+00 : f32
    %111 = vector.broadcast %cst_40 : f32 to vector<8x128xf32>
    %112 = arith.addf %111, %110 : vector<8x128xf32>
    %113 = arith.divf %111, %112 : vector<8x128xf32>
    %114 = vector.extract_strided_slice %101 {offsets = [0, 256], sizes = [8, 128], strides = [1, 1]} : vector<8x512xf32> to vector<8x128xf32>
    %115 = math.tanh %114 : vector<8x128xf32>
    %116 = vector.extract_strided_slice %101 {offsets = [0, 384], sizes = [8, 128], strides = [1, 1]} : vector<8x512xf32> to vector<8x128xf32>
    %117 = arith.negf %116 : vector<8x128xf32>
    %118 = math.exp %117 : vector<8x128xf32>
    %cst_41 = arith.constant 1.000000e+00 : f32
    %119 = vector.broadcast %cst_41 : f32 to vector<8x128xf32>
    %120 = arith.addf %119, %118 : vector<8x128xf32>
    %121 = arith.divf %119, %120 : vector<8x128xf32>
    %122 = arith.mulf %113, %89 : vector<8x128xf32>
    %123 = arith.mulf %107, %115 : vector<8x128xf32>
    %124 = arith.addf %122, %123 : vector<8x128xf32>
    %125 = math.tanh %124 : vector<8x128xf32>
    %126 = arith.mulf %121, %125 : vector<8x128xf32>
    %127 = vector.broadcast %c2_i32 : i32 to vector<8x128xi32>
    %128 = arith.cmpi slt, %127, %0 : vector<8x128xi32>
    %129 = arith.select %128, %126, %88 : vector<8x128xi1>, vector<8x128xf32>
    %130 = arith.select %128, %124, %89 : vector<8x128xi1>, vector<8x128xf32>
    %cst_42 = arith.constant 0.000000e+00 : f32
    %131 = vector.broadcast %cst_42 : f32 to vector<8x128xf32>
    %132 = arith.select %128, %126, %131 : vector<8x128xi1>, vector<8x128xf32>
    %133 = arith.index_cast %95 : i32 to index
    %c0_43 = arith.constant 0 : index
    %134 = vector.load %arg14[%133, %c0_43] : memref<64x128xf32, #tpu.memory_space<vmem>>, vector<8x128xf32>
    tpu.vector_store %arg14[%133, %c0_43], %132 {strides = array<i32>} : memref<64x128xf32, #tpu.memory_space<vmem>>, vector<8x128xf32>,
    %c3_i32 = arith.constant 3 : i32
    %c8_i32_44 = arith.constant 8 : i32
    %135 = arith.muli %c3_i32, %c8_i32_44 : i32
    %136 = tpu.assume_multiple %135, 8 : i32
    %137 = arith.index_cast %136 : i32 to index
    %c0_45 = arith.constant 0 : index
    %138 = vector.load %arg13[%137, %c0_45] : memref<64x512xf32, #tpu.memory_space<vmem>>, vector<8x512xf32>
    %139 = arith.truncf %129 : vector<8x128xf32> to vector<8x128xbf16>
    %c0_46 = arith.constant 0 : index
    %c0_47 = arith.constant 0 : index
    %140 = vector.load %arg5[%c0_46, %c0_47] : memref<128x512xbf16, #tpu.memory_space<vmem>>, vector<128x512xbf16>
    %cst_48 = arith.constant dense<0.000000e+00> : vector<8x512xf32>
    %141 = tpu.matmul %139, %140, %cst_48 {dimension_numbers = #tpu.dot_dimension_numbers<[1], [0], [0], [1], [0, 0, 1, 1], [], []>} : vector<8x128xbf16>, vector<128x512xbf16>, vector<8x512xf32> -> vector<8x512xf32>
    %142 = arith.addf %138, %141 : vector<8x512xf32>
    %143 = vector.extract_strided_slice %142 {offsets = [0, 0], sizes = [8, 128], strides = [1, 1]} : vector<8x512xf32> to vector<8x128xf32>
    %144 = arith.negf %143 : vector<8x128xf32>
    %145 = math.exp %144 : vector<8x128xf32>
    %cst_49 = arith.constant 1.000000e+00 : f32
    %146 = vector.broadcast %cst_49 : f32 to vector<8x128xf32>
    %147 = arith.addf %146, %145 : vector<8x128xf32>
    %148 = arith.divf %146, %147 : vector<8x128xf32>
    %149 = vector.extract_strided_slice %142 {offsets = [0, 128], sizes = [8, 128], strides = [1, 1]} : vector<8x512xf32> to vector<8x128xf32>
    %150 = arith.negf %149 : vector<8x128xf32>
    %151 = math.exp %150 : vector<8x128xf32>
    %cst_50 = arith.constant 1.000000e+00 : f32
    %152 = vector.broadcast %cst_50 : f32 to vector<8x128xf32>
    %153 = arith.addf %152, %151 : vector<8x128xf32>
    %154 = arith.divf %152, %153 : vector<8x128xf32>
    %155 = vector.extract_strided_slice %142 {offsets = [0, 256], sizes = [8, 128], strides = [1, 1]} : vector<8x512xf32> to vector<8x128xf32>
    %156 = math.tanh %155 : vector<8x128xf32>
    %157 = vector.extract_strided_slice %142 {offsets = [0, 384], sizes = [8, 128], strides = [1, 1]} : vector<8x512xf32> to vector<8x128xf32>
    %158 = arith.negf %157 : vector<8x128xf32>
    %159 = math.exp %158 : vector<8x128xf32>
    %cst_51 = arith.constant 1.000000e+00 : f32
    %160 = vector.broadcast %cst_51 : f32 to vector<8x128xf32>
    %161 = arith.addf %160, %159 : vector<8x128xf32>
    %162 = arith.divf %160, %161 : vector<8x128xf32>
    %163 = arith.mulf %154, %130 : vector<8x128xf32>
    %164 = arith.mulf %148, %156 : vector<8x128xf32>
    %165 = arith.addf %163, %164 : vector<8x128xf32>
    %166 = math.tanh %165 : vector<8x128xf32>
    %167 = arith.mulf %162, %166 : vector<8x128xf32>
    %168 = vector.broadcast %c3_i32 : i32 to vector<8x128xi32>
    %169 = arith.cmpi slt, %168, %0 : vector<8x128xi32>
    %170 = arith.select %169, %167, %129 : vector<8x128xi1>, vector<8x128xf32>
    %171 = arith.select %169, %165, %130 : vector<8x128xi1>, vector<8x128xf32>
    %cst_52 = arith.constant 0.000000e+00 : f32
    %172 = vector.broadcast %cst_52 : f32 to vector<8x128xf32>
    %173 = arith.select %169, %167, %172 : vector<8x128xi1>, vector<8x128xf32>
    %174 = arith.index_cast %136 : i32 to index
    %c0_53 = arith.constant 0 : index
    %175 = vector.load %arg14[%174, %c0_53] : memref<64x128xf32, #tpu.memory_space<vmem>>, vector<8x128xf32>
    tpu.vector_store %arg14[%174, %c0_53], %173 {strides = array<i32>} : memref<64x128xf32, #tpu.memory_space<vmem>>, vector<8x128xf32>,
    %c4_i32 = arith.constant 4 : i32
    %c8_i32_54 = arith.constant 8 : i32
    %176 = arith.muli %c4_i32, %c8_i32_54 : i32
    %177 = tpu.assume_multiple %176, 8 : i32
    %178 = arith.index_cast %177 : i32 to index
    %c0_55 = arith.constant 0 : index
    %179 = vector.load %arg13[%178, %c0_55] : memref<64x512xf32, #tpu.memory_space<vmem>>, vector<8x512xf32>
    %180 = arith.truncf %170 : vector<8x128xf32> to vector<8x128xbf16>
    %c0_56 = arith.constant 0 : index
    %c0_57 = arith.constant 0 : index
    %181 = vector.load %arg5[%c0_56, %c0_57] : memref<128x512xbf16, #tpu.memory_space<vmem>>, vector<128x512xbf16>
    %cst_58 = arith.constant dense<0.000000e+00> : vector<8x512xf32>
    %182 = tpu.matmul %180, %181, %cst_58 {dimension_numbers = #tpu.dot_dimension_numbers<[1], [0], [0], [1], [0, 0, 1, 1], [], []>} : vector<8x128xbf16>, vector<128x512xbf16>, vector<8x512xf32> -> vector<8x512xf32>
    %183 = arith.addf %179, %182 : vector<8x512xf32>
    %184 = vector.extract_strided_slice %183 {offsets = [0, 0], sizes = [8, 128], strides = [1, 1]} : vector<8x512xf32> to vector<8x128xf32>
    %185 = arith.negf %184 : vector<8x128xf32>
    %186 = math.exp %185 : vector<8x128xf32>
    %cst_59 = arith.constant 1.000000e+00 : f32
    %187 = vector.broadcast %cst_59 : f32 to vector<8x128xf32>
    %188 = arith.addf %187, %186 : vector<8x128xf32>
    %189 = arith.divf %187, %188 : vector<8x128xf32>
    %190 = vector.extract_strided_slice %183 {offsets = [0, 128], sizes = [8, 128], strides = [1, 1]} : vector<8x512xf32> to vector<8x128xf32>
    %191 = arith.negf %190 : vector<8x128xf32>
    %192 = math.exp %191 : vector<8x128xf32>
    %cst_60 = arith.constant 1.000000e+00 : f32
    %193 = vector.broadcast %cst_60 : f32 to vector<8x128xf32>
    %194 = arith.addf %193, %192 : vector<8x128xf32>
    %195 = arith.divf %193, %194 : vector<8x128xf32>
    %196 = vector.extract_strided_slice %183 {offsets = [0, 256], sizes = [8, 128], strides = [1, 1]} : vector<8x512xf32> to vector<8x128xf32>
    %197 = math.tanh %196 : vector<8x128xf32>
    %198 = vector.extract_strided_slice %183 {offsets = [0, 384], sizes = [8, 128], strides = [1, 1]} : vector<8x512xf32> to vector<8x128xf32>
    %199 = arith.negf %198 : vector<8x128xf32>
    %200 = math.exp %199 : vector<8x128xf32>
    %cst_61 = arith.constant 1.000000e+00 : f32
    %201 = vector.broadcast %cst_61 : f32 to vector<8x128xf32>
    %202 = arith.addf %201, %200 : vector<8x128xf32>
    %203 = arith.divf %201, %202 : vector<8x128xf32>
    %204 = arith.mulf %195, %171 : vector<8x128xf32>
    %205 = arith.mulf %189, %197 : vector<8x128xf32>
    %206 = arith.addf %204, %205 : vector<8x128xf32>
    %207 = math.tanh %206 : vector<8x128xf32>
    %208 = arith.mulf %203, %207 : vector<8x128xf32>
    %209 = vector.broadcast %c4_i32 : i32 to vector<8x128xi32>
    %210 = arith.cmpi slt, %209, %0 : vector<8x128xi32>
    %211 = arith.select %210, %208, %170 : vector<8x128xi1>, vector<8x128xf32>
    %212 = arith.select %210, %206, %171 : vector<8x128xi1>, vector<8x128xf32>
    %cst_62 = arith.constant 0.000000e+00 : f32
    %213 = vector.broadcast %cst_62 : f32 to vector<8x128xf32>
    %214 = arith.select %210, %208, %213 : vector<8x128xi1>, vector<8x128xf32>
    %215 = arith.index_cast %177 : i32 to index
    %c0_63 = arith.constant 0 : index
    %216 = vector.load %arg14[%215, %c0_63] : memref<64x128xf32, #tpu.memory_space<vmem>>, vector<8x128xf32>
    tpu.vector_store %arg14[%215, %c0_63], %214 {strides = array<i32>} : memref<64x128xf32, #tpu.memory_space<vmem>>, vector<8x128xf32>,
    %c5_i32 = arith.constant 5 : i32
    %c8_i32_64 = arith.constant 8 : i32
    %217 = arith.muli %c5_i32, %c8_i32_64 : i32
    %218 = tpu.assume_multiple %217, 8 : i32
    %219 = arith.index_cast %218 : i32 to index
    %c0_65 = arith.constant 0 : index
    %220 = vector.load %arg13[%219, %c0_65] : memref<64x512xf32, #tpu.memory_space<vmem>>, vector<8x512xf32>
    %221 = arith.truncf %211 : vector<8x128xf32> to vector<8x128xbf16>
    %c0_66 = arith.constant 0 : index
    %c0_67 = arith.constant 0 : index
    %222 = vector.load %arg5[%c0_66, %c0_67] : memref<128x512xbf16, #tpu.memory_space<vmem>>, vector<128x512xbf16>
    %cst_68 = arith.constant dense<0.000000e+00> : vector<8x512xf32>
    %223 = tpu.matmul %221, %222, %cst_68 {dimension_numbers = #tpu.dot_dimension_numbers<[1], [0], [0], [1], [0, 0, 1, 1], [], []>} : vector<8x128xbf16>, vector<128x512xbf16>, vector<8x512xf32> -> vector<8x512xf32>
    %224 = arith.addf %220, %223 : vector<8x512xf32>
    %225 = vector.extract_strided_slice %224 {offsets = [0, 0], sizes = [8, 128], strides = [1, 1]} : vector<8x512xf32> to vector<8x128xf32>
    %226 = arith.negf %225 : vector<8x128xf32>
    %227 = math.exp %226 : vector<8x128xf32>
    %cst_69 = arith.constant 1.000000e+00 : f32
    %228 = vector.broadcast %cst_69 : f32 to vector<8x128xf32>
    %229 = arith.addf %228, %227 : vector<8x128xf32>
    %230 = arith.divf %228, %229 : vector<8x128xf32>
    %231 = vector.extract_strided_slice %224 {offsets = [0, 128], sizes = [8, 128], strides = [1, 1]} : vector<8x512xf32> to vector<8x128xf32>
    %232 = arith.negf %231 : vector<8x128xf32>
    %233 = math.exp %232 : vector<8x128xf32>
    %cst_70 = arith.constant 1.000000e+00 : f32
    %234 = vector.broadcast %cst_70 : f32 to vector<8x128xf32>
    %235 = arith.addf %234, %233 : vector<8x128xf32>
    %236 = arith.divf %234, %235 : vector<8x128xf32>
    %237 = vector.extract_strided_slice %224 {offsets = [0, 256], sizes = [8, 128], strides = [1, 1]} : vector<8x512xf32> to vector<8x128xf32>
    %238 = math.tanh %237 : vector<8x128xf32>
    %239 = vector.extract_strided_slice %224 {offsets = [0, 384], sizes = [8, 128], strides = [1, 1]} : vector<8x512xf32> to vector<8x128xf32>
    %240 = arith.negf %239 : vector<8x128xf32>
    %241 = math.exp %240 : vector<8x128xf32>
    %cst_71 = arith.constant 1.000000e+00 : f32
    %242 = vector.broadcast %cst_71 : f32 to vector<8x128xf32>
    %243 = arith.addf %242, %241 : vector<8x128xf32>
    %244 = arith.divf %242, %243 : vector<8x128xf32>
    %245 = arith.mulf %236, %212 : vector<8x128xf32>
    %246 = arith.mulf %230, %238 : vector<8x128xf32>
    %247 = arith.addf %245, %246 : vector<8x128xf32>
    %248 = math.tanh %247 : vector<8x128xf32>
    %249 = arith.mulf %244, %248 : vector<8x128xf32>
    %250 = vector.broadcast %c5_i32 : i32 to vector<8x128xi32>
    %251 = arith.cmpi slt, %250, %0 : vector<8x128xi32>
    %252 = arith.select %251, %249, %211 : vector<8x128xi1>, vector<8x128xf32>
    %253 = arith.select %251, %247, %212 : vector<8x128xi1>, vector<8x128xf32>
    %cst_72 = arith.constant 0.000000e+00 : f32
    %254 = vector.broadcast %cst_72 : f32 to vector<8x128xf32>
    %255 = arith.select %251, %249, %254 : vector<8x128xi1>, vector<8x128xf32>
    %256 = arith.index_cast %218 : i32 to index
    %c0_73 = arith.constant 0 : index
    %257 = vector.load %arg14[%256, %c0_73] : memref<64x128xf32, #tpu.memory_space<vmem>>, vector<8x128xf32>
    tpu.vector_store %arg14[%256, %c0_73], %255 {strides = array<i32>} : memref<64x128xf32, #tpu.memory_space<vmem>>, vector<8x128xf32>,
    %c6_i32 = arith.constant 6 : i32
    %c8_i32_74 = arith.constant 8 : i32
    %258 = arith.muli %c6_i32, %c8_i32_74 : i32
    %259 = tpu.assume_multiple %258, 8 : i32
    %260 = arith.index_cast %259 : i32 to index
    %c0_75 = arith.constant 0 : index
    %261 = vector.load %arg13[%260, %c0_75] : memref<64x512xf32, #tpu.memory_space<vmem>>, vector<8x512xf32>
    %262 = arith.truncf %252 : vector<8x128xf32> to vector<8x128xbf16>
    %c0_76 = arith.constant 0 : index
    %c0_77 = arith.constant 0 : index
    %263 = vector.load %arg5[%c0_76, %c0_77] : memref<128x512xbf16, #tpu.memory_space<vmem>>, vector<128x512xbf16>
    %cst_78 = arith.constant dense<0.000000e+00> : vector<8x512xf32>
    %264 = tpu.matmul %262, %263, %cst_78 {dimension_numbers = #tpu.dot_dimension_numbers<[1], [0], [0], [1], [0, 0, 1, 1], [], []>} : vector<8x128xbf16>, vector<128x512xbf16>, vector<8x512xf32> -> vector<8x512xf32>
    %265 = arith.addf %261, %264 : vector<8x512xf32>
    %266 = vector.extract_strided_slice %265 {offsets = [0, 0], sizes = [8, 128], strides = [1, 1]} : vector<8x512xf32> to vector<8x128xf32>
    %267 = arith.negf %266 : vector<8x128xf32>
    %268 = math.exp %267 : vector<8x128xf32>
    %cst_79 = arith.constant 1.000000e+00 : f32
    %269 = vector.broadcast %cst_79 : f32 to vector<8x128xf32>
    %270 = arith.addf %269, %268 : vector<8x128xf32>
    %271 = arith.divf %269, %270 : vector<8x128xf32>
    %272 = vector.extract_strided_slice %265 {offsets = [0, 128], sizes = [8, 128], strides = [1, 1]} : vector<8x512xf32> to vector<8x128xf32>
    %273 = arith.negf %272 : vector<8x128xf32>
    %274 = math.exp %273 : vector<8x128xf32>
    %cst_80 = arith.constant 1.000000e+00 : f32
    %275 = vector.broadcast %cst_80 : f32 to vector<8x128xf32>
    %276 = arith.addf %275, %274 : vector<8x128xf32>
    %277 = arith.divf %275, %276 : vector<8x128xf32>
    %278 = vector.extract_strided_slice %265 {offsets = [0, 256], sizes = [8, 128], strides = [1, 1]} : vector<8x512xf32> to vector<8x128xf32>
    %279 = math.tanh %278 : vector<8x128xf32>
    %280 = vector.extract_strided_slice %265 {offsets = [0, 384], sizes = [8, 128], strides = [1, 1]} : vector<8x512xf32> to vector<8x128xf32>
    %281 = arith.negf %280 : vector<8x128xf32>
    %282 = math.exp %281 : vector<8x128xf32>
    %cst_81 = arith.constant 1.000000e+00 : f32
    %283 = vector.broadcast %cst_81 : f32 to vector<8x128xf32>
    %284 = arith.addf %283, %282 : vector<8x128xf32>
    %285 = arith.divf %283, %284 : vector<8x128xf32>
    %286 = arith.mulf %277, %253 : vector<8x128xf32>
    %287 = arith.mulf %271, %279 : vector<8x128xf32>
    %288 = arith.addf %286, %287 : vector<8x128xf32>
    %289 = math.tanh %288 : vector<8x128xf32>
    %290 = arith.mulf %285, %289 : vector<8x128xf32>
    %291 = vector.broadcast %c6_i32 : i32 to vector<8x128xi32>
    %292 = arith.cmpi slt, %291, %0 : vector<8x128xi32>
    %293 = arith.select %292, %290, %252 : vector<8x128xi1>, vector<8x128xf32>
    %294 = arith.select %292, %288, %253 : vector<8x128xi1>, vector<8x128xf32>
    %cst_82 = arith.constant 0.000000e+00 : f32
    %295 = vector.broadcast %cst_82 : f32 to vector<8x128xf32>
    %296 = arith.select %292, %290, %295 : vector<8x128xi1>, vector<8x128xf32>
    %297 = arith.index_cast %259 : i32 to index
    %c0_83 = arith.constant 0 : index
    %298 = vector.load %arg14[%297, %c0_83] : memref<64x128xf32, #tpu.memory_space<vmem>>, vector<8x128xf32>
    tpu.vector_store %arg14[%297, %c0_83], %296 {strides = array<i32>} : memref<64x128xf32, #tpu.memory_space<vmem>>, vector<8x128xf32>,
    %c7_i32 = arith.constant 7 : i32
    %c8_i32_84 = arith.constant 8 : i32
    %299 = arith.muli %c7_i32, %c8_i32_84 : i32
    %300 = tpu.assume_multiple %299, 8 : i32
    %301 = arith.index_cast %300 : i32 to index
    %c0_85 = arith.constant 0 : index
    %302 = vector.load %arg13[%301, %c0_85] : memref<64x512xf32, #tpu.memory_space<vmem>>, vector<8x512xf32>
    %303 = arith.truncf %293 : vector<8x128xf32> to vector<8x128xbf16>
    %c0_86 = arith.constant 0 : index
    %c0_87 = arith.constant 0 : index
    %304 = vector.load %arg5[%c0_86, %c0_87] : memref<128x512xbf16, #tpu.memory_space<vmem>>, vector<128x512xbf16>
    %cst_88 = arith.constant dense<0.000000e+00> : vector<8x512xf32>
    %305 = tpu.matmul %303, %304, %cst_88 {dimension_numbers = #tpu.dot_dimension_numbers<[1], [0], [0], [1], [0, 0, 1, 1], [], []>} : vector<8x128xbf16>, vector<128x512xbf16>, vector<8x512xf32> -> vector<8x512xf32>
    %306 = arith.addf %302, %305 : vector<8x512xf32>
    %307 = vector.extract_strided_slice %306 {offsets = [0, 0], sizes = [8, 128], strides = [1, 1]} : vector<8x512xf32> to vector<8x128xf32>
    %308 = arith.negf %307 : vector<8x128xf32>
    %309 = math.exp %308 : vector<8x128xf32>
    %cst_89 = arith.constant 1.000000e+00 : f32
    %310 = vector.broadcast %cst_89 : f32 to vector<8x128xf32>
    %311 = arith.addf %310, %309 : vector<8x128xf32>
    %312 = arith.divf %310, %311 : vector<8x128xf32>
    %313 = vector.extract_strided_slice %306 {offsets = [0, 128], sizes = [8, 128], strides = [1, 1]} : vector<8x512xf32> to vector<8x128xf32>
    %314 = arith.negf %313 : vector<8x128xf32>
    %315 = math.exp %314 : vector<8x128xf32>
    %cst_90 = arith.constant 1.000000e+00 : f32
    %316 = vector.broadcast %cst_90 : f32 to vector<8x128xf32>
    %317 = arith.addf %316, %315 : vector<8x128xf32>
    %318 = arith.divf %316, %317 : vector<8x128xf32>
    %319 = vector.extract_strided_slice %306 {offsets = [0, 256], sizes = [8, 128], strides = [1, 1]} : vector<8x512xf32> to vector<8x128xf32>
    %320 = math.tanh %319 : vector<8x128xf32>
    %321 = vector.extract_strided_slice %306 {offsets = [0, 384], sizes = [8, 128], strides = [1, 1]} : vector<8x512xf32> to vector<8x128xf32>
    %322 = arith.negf %321 : vector<8x128xf32>
    %323 = math.exp %322 : vector<8x128xf32>
    %cst_91 = arith.constant 1.000000e+00 : f32
    %324 = vector.broadcast %cst_91 : f32 to vector<8x128xf32>
    %325 = arith.addf %324, %323 : vector<8x128xf32>
    %326 = arith.divf %324, %325 : vector<8x128xf32>
    %327 = arith.mulf %318, %294 : vector<8x128xf32>
    %328 = arith.mulf %312, %320 : vector<8x128xf32>
    %329 = arith.addf %327, %328 : vector<8x128xf32>
    %330 = math.tanh %329 : vector<8x128xf32>
    %331 = arith.mulf %326, %330 : vector<8x128xf32>
    %332 = vector.broadcast %c7_i32 : i32 to vector<8x128xi32>
    %333 = arith.cmpi slt, %332, %0 : vector<8x128xi32>
    %334 = arith.select %333, %331, %293 : vector<8x128xi1>, vector<8x128xf32>
    %335 = arith.select %333, %329, %294 : vector<8x128xi1>, vector<8x128xf32>
    %cst_92 = arith.constant 0.000000e+00 : f32
    %336 = vector.broadcast %cst_92 : f32 to vector<8x128xf32>
    %337 = arith.select %333, %331, %336 : vector<8x128xi1>, vector<8x128xf32>
    %338 = arith.index_cast %300 : i32 to index
    %c0_93 = arith.constant 0 : index
    %339 = vector.load %arg14[%338, %c0_93] : memref<64x128xf32, #tpu.memory_space<vmem>>, vector<8x128xf32>
    tpu.vector_store %arg14[%338, %c0_93], %337 {strides = array<i32>} : memref<64x128xf32, #tpu.memory_space<vmem>>, vector<8x128xf32>,
    %c8_i32_94 = arith.constant 8 : i32
    %c0_95 = arith.constant 0 : index
    %c0_96 = arith.constant 0 : index
    %c0_97 = arith.constant 0 : index
    %340 = vector.load %arg11[%c0_95, %c0_96, %c0_97] : memref<2x8x128xf32, #tpu.memory_space<vmem>>, vector<1x8x128xf32>
    %341 = vector.shape_cast %340 : vector<1x8x128xf32> to vector<8x128xf32>
    %342 = vector.shape_cast %334 : vector<8x128xf32> to vector<1x8x128xf32>
    tpu.vector_store %arg11[%c0_95, %c0_96, %c0_97], %342 {strides = array<i32>} : memref<2x8x128xf32, #tpu.memory_space<vmem>>, vector<1x8x128xf32>,
    %c0_98 = arith.constant 0 : index
    %c0_99 = arith.constant 0 : index
    %c0_100 = arith.constant 0 : index
    %343 = vector.load %arg12[%c0_98, %c0_99, %c0_100] : memref<2x8x128xf32, #tpu.memory_space<vmem>>, vector<1x8x128xf32>
    %344 = vector.shape_cast %343 : vector<1x8x128xf32> to vector<8x128xf32>
    %345 = vector.shape_cast %335 : vector<8x128xf32> to vector<1x8x128xf32>
    tpu.vector_store %arg12[%c0_98, %c0_99, %c0_100], %345 {strides = array<i32>} : memref<2x8x128xf32, #tpu.memory_space<vmem>>, vector<1x8x128xf32>,
    %c0_101 = arith.constant 0 : index
    %c0_102 = arith.constant 0 : index
    %346 = vector.load %arg14[%c0_101, %c0_102] : memref<64x128xf32, #tpu.memory_space<vmem>>, vector<64x128xf32>
    %347 = arith.truncf %346 : vector<64x128xf32> to vector<64x128xbf16>
    %c0_103 = arith.constant 0 : index
    %c0_104 = arith.constant 0 : index
    %348 = vector.load %arg7[%c0_103, %c0_104] : memref<128x512xbf16, #tpu.memory_space<vmem>>, vector<128x512xbf16>
    %cst_105 = arith.constant dense<0.000000e+00> : vector<64x512xf32>
    %349 = tpu.matmul %347, %348, %cst_105 {dimension_numbers = #tpu.dot_dimension_numbers<[1], [0], [0], [1], [0, 0, 1, 1], [], []>} : vector<64x128xbf16>, vector<128x512xbf16>, vector<64x512xf32> -> vector<64x512xf32>
    %c0_106 = arith.constant 0 : index
    %c0_107 = arith.constant 0 : index
    %350 = vector.load %arg9[%c0_106, %c0_107] : memref<1x512xf32, #tpu.memory_space<vmem>>, vector<1x512xf32>
    %351 = vector.broadcast %350 : vector<1x512xf32> to vector<64x512xf32>
    %352 = arith.addf %349, %351 : vector<64x512xf32>
    %c0_108 = arith.constant 0 : index
    %c0_109 = arith.constant 0 : index
    %353 = vector.load %arg13[%c0_108, %c0_109] : memref<64x512xf32, #tpu.memory_space<vmem>>, vector<64x512xf32>
    tpu.vector_store %arg13[%c0_108, %c0_109], %352 {strides = array<i32>} : memref<64x512xf32, #tpu.memory_space<vmem>>, vector<64x512xf32>,
    %c1 = arith.constant 1 : index
    %c0_110 = arith.constant 0 : index
    %c0_111 = arith.constant 0 : index
    %354 = vector.load %arg2[%c1, %c0_110, %c0_111] : memref<2x8x128xf32, #tpu.memory_space<vmem>>, vector<1x8x128xf32>
    %355 = vector.shape_cast %354 : vector<1x8x128xf32> to vector<8x128xf32>
    %c1_112 = arith.constant 1 : index
    %c0_113 = arith.constant 0 : index
    %c0_114 = arith.constant 0 : index
    %356 = vector.load %arg3[%c1_112, %c0_113, %c0_114] : memref<2x8x128xf32, #tpu.memory_space<vmem>>, vector<1x8x128xf32>
    %357 = vector.shape_cast %356 : vector<1x8x128xf32> to vector<8x128xf32>
    %c0_i32_115 = arith.constant 0 : i32
    %c8_i32_116 = arith.constant 8 : i32
    %358 = arith.muli %c0_i32_115, %c8_i32_116 : i32
    %359 = tpu.assume_multiple %358, 8 : i32
    %360 = arith.index_cast %359 : i32 to index
    %c0_117 = arith.constant 0 : index
    %361 = vector.load %arg13[%360, %c0_117] : memref<64x512xf32, #tpu.memory_space<vmem>>, vector<8x512xf32>
    %362 = arith.truncf %355 : vector<8x128xf32> to vector<8x128xbf16>
    %c0_118 = arith.constant 0 : index
    %c0_119 = arith.constant 0 : index
    %363 = vector.load %arg8[%c0_118, %c0_119] : memref<128x512xbf16, #tpu.memory_space<vmem>>, vector<128x512xbf16>
    %cst_120 = arith.constant dense<0.000000e+00> : vector<8x512xf32>
    %364 = tpu.matmul %362, %363, %cst_120 {dimension_numbers = #tpu.dot_dimension_numbers<[1], [0], [0], [1], [0, 0, 1, 1], [], []>} : vector<8x128xbf16>, vector<128x512xbf16>, vector<8x512xf32> -> vector<8x512xf32>
    %365 = arith.addf %361, %364 : vector<8x512xf32>
    %366 = vector.extract_strided_slice %365 {offsets = [0, 0], sizes = [8, 128], strides = [1, 1]} : vector<8x512xf32> to vector<8x128xf32>
    %367 = arith.negf %366 : vector<8x128xf32>
    %368 = math.exp %367 : vector<8x128xf32>
    %cst_121 = arith.constant 1.000000e+00 : f32
    %369 = vector.broadcast %cst_121 : f32 to vector<8x128xf32>
    %370 = arith.addf %369, %368 : vector<8x128xf32>
    %371 = arith.divf %369, %370 : vector<8x128xf32>
    %372 = vector.extract_strided_slice %365 {offsets = [0, 128], sizes = [8, 128], strides = [1, 1]} : vector<8x512xf32> to vector<8x128xf32>
    %373 = arith.negf %372 : vector<8x128xf32>
    %374 = math.exp %373 : vector<8x128xf32>
    %cst_122 = arith.constant 1.000000e+00 : f32
    %375 = vector.broadcast %cst_122 : f32 to vector<8x128xf32>
    %376 = arith.addf %375, %374 : vector<8x128xf32>
    %377 = arith.divf %375, %376 : vector<8x128xf32>
    %378 = vector.extract_strided_slice %365 {offsets = [0, 256], sizes = [8, 128], strides = [1, 1]} : vector<8x512xf32> to vector<8x128xf32>
    %379 = math.tanh %378 : vector<8x128xf32>
    %380 = vector.extract_strided_slice %365 {offsets = [0, 384], sizes = [8, 128], strides = [1, 1]} : vector<8x512xf32> to vector<8x128xf32>
    %381 = arith.negf %380 : vector<8x128xf32>
    %382 = math.exp %381 : vector<8x128xf32>
    %cst_123 = arith.constant 1.000000e+00 : f32
    %383 = vector.broadcast %cst_123 : f32 to vector<8x128xf32>
    %384 = arith.addf %383, %382 : vector<8x128xf32>
    %385 = arith.divf %383, %384 : vector<8x128xf32>
    %386 = arith.mulf %377, %357 : vector<8x128xf32>
    %387 = arith.mulf %371, %379 : vector<8x128xf32>
    %388 = arith.addf %386, %387 : vector<8x128xf32>
    %389 = math.tanh %388 : vector<8x128xf32>
    %390 = arith.mulf %385, %389 : vector<8x128xf32>
    %391 = vector.broadcast %c0_i32_115 : i32 to vector<8x128xi32>
    %392 = arith.cmpi slt, %391, %0 : vector<8x128xi32>
    %393 = arith.select %392, %390, %355 : vector<8x128xi1>, vector<8x128xf32>
    %394 = arith.select %392, %388, %357 : vector<8x128xi1>, vector<8x128xf32>
    %cst_124 = arith.constant 0.000000e+00 : f32
    %395 = vector.broadcast %cst_124 : f32 to vector<8x128xf32>
    %396 = arith.select %392, %390, %395 : vector<8x128xi1>, vector<8x128xf32>
    %397 = arith.index_cast %359 : i32 to index
    %c0_125 = arith.constant 0 : index
    %398 = vector.load %arg14[%397, %c0_125] : memref<64x128xf32, #tpu.memory_space<vmem>>, vector<8x128xf32>
    tpu.vector_store %arg14[%397, %c0_125], %396 {strides = array<i32>} : memref<64x128xf32, #tpu.memory_space<vmem>>, vector<8x128xf32>,
    %c1_i32_126 = arith.constant 1 : i32
    %c8_i32_127 = arith.constant 8 : i32
    %399 = arith.muli %c1_i32_126, %c8_i32_127 : i32
    %400 = tpu.assume_multiple %399, 8 : i32
    %401 = arith.index_cast %400 : i32 to index
    %c0_128 = arith.constant 0 : index
    %402 = vector.load %arg13[%401, %c0_128] : memref<64x512xf32, #tpu.memory_space<vmem>>, vector<8x512xf32>
    %403 = arith.truncf %393 : vector<8x128xf32> to vector<8x128xbf16>
    %c0_129 = arith.constant 0 : index
    %c0_130 = arith.constant 0 : index
    %404 = vector.load %arg8[%c0_129, %c0_130] : memref<128x512xbf16, #tpu.memory_space<vmem>>, vector<128x512xbf16>
    %cst_131 = arith.constant dense<0.000000e+00> : vector<8x512xf32>
    %405 = tpu.matmul %403, %404, %cst_131 {dimension_numbers = #tpu.dot_dimension_numbers<[1], [0], [0], [1], [0, 0, 1, 1], [], []>} : vector<8x128xbf16>, vector<128x512xbf16>, vector<8x512xf32> -> vector<8x512xf32>
    %406 = arith.addf %402, %405 : vector<8x512xf32>
    %407 = vector.extract_strided_slice %406 {offsets = [0, 0], sizes = [8, 128], strides = [1, 1]} : vector<8x512xf32> to vector<8x128xf32>
    %408 = arith.negf %407 : vector<8x128xf32>
    %409 = math.exp %408 : vector<8x128xf32>
    %cst_132 = arith.constant 1.000000e+00 : f32
    %410 = vector.broadcast %cst_132 : f32 to vector<8x128xf32>
    %411 = arith.addf %410, %409 : vector<8x128xf32>
    %412 = arith.divf %410, %411 : vector<8x128xf32>
    %413 = vector.extract_strided_slice %406 {offsets = [0, 128], sizes = [8, 128], strides = [1, 1]} : vector<8x512xf32> to vector<8x128xf32>
    %414 = arith.negf %413 : vector<8x128xf32>
    %415 = math.exp %414 : vector<8x128xf32>
    %cst_133 = arith.constant 1.000000e+00 : f32
    %416 = vector.broadcast %cst_133 : f32 to vector<8x128xf32>
    %417 = arith.addf %416, %415 : vector<8x128xf32>
    %418 = arith.divf %416, %417 : vector<8x128xf32>
    %419 = vector.extract_strided_slice %406 {offsets = [0, 256], sizes = [8, 128], strides = [1, 1]} : vector<8x512xf32> to vector<8x128xf32>
    %420 = math.tanh %419 : vector<8x128xf32>
    %421 = vector.extract_strided_slice %406 {offsets = [0, 384], sizes = [8, 128], strides = [1, 1]} : vector<8x512xf32> to vector<8x128xf32>
    %422 = arith.negf %421 : vector<8x128xf32>
    %423 = math.exp %422 : vector<8x128xf32>
    %cst_134 = arith.constant 1.000000e+00 : f32
    %424 = vector.broadcast %cst_134 : f32 to vector<8x128xf32>
    %425 = arith.addf %424, %423 : vector<8x128xf32>
    %426 = arith.divf %424, %425 : vector<8x128xf32>
    %427 = arith.mulf %418, %394 : vector<8x128xf32>
    %428 = arith.mulf %412, %420 : vector<8x128xf32>
    %429 = arith.addf %427, %428 : vector<8x128xf32>
    %430 = math.tanh %429 : vector<8x128xf32>
    %431 = arith.mulf %426, %430 : vector<8x128xf32>
    %432 = vector.broadcast %c1_i32_126 : i32 to vector<8x128xi32>
    %433 = arith.cmpi slt, %432, %0 : vector<8x128xi32>
    %434 = arith.select %433, %431, %393 : vector<8x128xi1>, vector<8x128xf32>
    %435 = arith.select %433, %429, %394 : vector<8x128xi1>, vector<8x128xf32>
    %cst_135 = arith.constant 0.000000e+00 : f32
    %436 = vector.broadcast %cst_135 : f32 to vector<8x128xf32>
    %437 = arith.select %433, %431, %436 : vector<8x128xi1>, vector<8x128xf32>
    %438 = arith.index_cast %400 : i32 to index
    %c0_136 = arith.constant 0 : index
    %439 = vector.load %arg14[%438, %c0_136] : memref<64x128xf32, #tpu.memory_space<vmem>>, vector<8x128xf32>
    tpu.vector_store %arg14[%438, %c0_136], %437 {strides = array<i32>} : memref<64x128xf32, #tpu.memory_space<vmem>>, vector<8x128xf32>,
    %c2_i32_137 = arith.constant 2 : i32
    %c8_i32_138 = arith.constant 8 : i32
    %440 = arith.muli %c2_i32_137, %c8_i32_138 : i32
    %441 = tpu.assume_multiple %440, 8 : i32
    %442 = arith.index_cast %441 : i32 to index
    %c0_139 = arith.constant 0 : index
    %443 = vector.load %arg13[%442, %c0_139] : memref<64x512xf32, #tpu.memory_space<vmem>>, vector<8x512xf32>
    %444 = arith.truncf %434 : vector<8x128xf32> to vector<8x128xbf16>
    %c0_140 = arith.constant 0 : index
    %c0_141 = arith.constant 0 : index
    %445 = vector.load %arg8[%c0_140, %c0_141] : memref<128x512xbf16, #tpu.memory_space<vmem>>, vector<128x512xbf16>
    %cst_142 = arith.constant dense<0.000000e+00> : vector<8x512xf32>
    %446 = tpu.matmul %444, %445, %cst_142 {dimension_numbers = #tpu.dot_dimension_numbers<[1], [0], [0], [1], [0, 0, 1, 1], [], []>} : vector<8x128xbf16>, vector<128x512xbf16>, vector<8x512xf32> -> vector<8x512xf32>
    %447 = arith.addf %443, %446 : vector<8x512xf32>
    %448 = vector.extract_strided_slice %447 {offsets = [0, 0], sizes = [8, 128], strides = [1, 1]} : vector<8x512xf32> to vector<8x128xf32>
    %449 = arith.negf %448 : vector<8x128xf32>
    %450 = math.exp %449 : vector<8x128xf32>
    %cst_143 = arith.constant 1.000000e+00 : f32
    %451 = vector.broadcast %cst_143 : f32 to vector<8x128xf32>
    %452 = arith.addf %451, %450 : vector<8x128xf32>
    %453 = arith.divf %451, %452 : vector<8x128xf32>
    %454 = vector.extract_strided_slice %447 {offsets = [0, 128], sizes = [8, 128], strides = [1, 1]} : vector<8x512xf32> to vector<8x128xf32>
    %455 = arith.negf %454 : vector<8x128xf32>
    %456 = math.exp %455 : vector<8x128xf32>
    %cst_144 = arith.constant 1.000000e+00 : f32
    %457 = vector.broadcast %cst_144 : f32 to vector<8x128xf32>
    %458 = arith.addf %457, %456 : vector<8x128xf32>
    %459 = arith.divf %457, %458 : vector<8x128xf32>
    %460 = vector.extract_strided_slice %447 {offsets = [0, 256], sizes = [8, 128], strides = [1, 1]} : vector<8x512xf32> to vector<8x128xf32>
    %461 = math.tanh %460 : vector<8x128xf32>
    %462 = vector.extract_strided_slice %447 {offsets = [0, 384], sizes = [8, 128], strides = [1, 1]} : vector<8x512xf32> to vector<8x128xf32>
    %463 = arith.negf %462 : vector<8x128xf32>
    %464 = math.exp %463 : vector<8x128xf32>
    %cst_145 = arith.constant 1.000000e+00 : f32
    %465 = vector.broadcast %cst_145 : f32 to vector<8x128xf32>
    %466 = arith.addf %465, %464 : vector<8x128xf32>
    %467 = arith.divf %465, %466 : vector<8x128xf32>
    %468 = arith.mulf %459, %435 : vector<8x128xf32>
    %469 = arith.mulf %453, %461 : vector<8x128xf32>
    %470 = arith.addf %468, %469 : vector<8x128xf32>
    %471 = math.tanh %470 : vector<8x128xf32>
    %472 = arith.mulf %467, %471 : vector<8x128xf32>
    %473 = vector.broadcast %c2_i32_137 : i32 to vector<8x128xi32>
    %474 = arith.cmpi slt, %473, %0 : vector<8x128xi32>
    %475 = arith.select %474, %472, %434 : vector<8x128xi1>, vector<8x128xf32>
    %476 = arith.select %474, %470, %435 : vector<8x128xi1>, vector<8x128xf32>
    %cst_146 = arith.constant 0.000000e+00 : f32
    %477 = vector.broadcast %cst_146 : f32 to vector<8x128xf32>
    %478 = arith.select %474, %472, %477 : vector<8x128xi1>, vector<8x128xf32>
    %479 = arith.index_cast %441 : i32 to index
    %c0_147 = arith.constant 0 : index
    %480 = vector.load %arg14[%479, %c0_147] : memref<64x128xf32, #tpu.memory_space<vmem>>, vector<8x128xf32>
    tpu.vector_store %arg14[%479, %c0_147], %478 {strides = array<i32>} : memref<64x128xf32, #tpu.memory_space<vmem>>, vector<8x128xf32>,
    %c3_i32_148 = arith.constant 3 : i32
    %c8_i32_149 = arith.constant 8 : i32
    %481 = arith.muli %c3_i32_148, %c8_i32_149 : i32
    %482 = tpu.assume_multiple %481, 8 : i32
    %483 = arith.index_cast %482 : i32 to index
    %c0_150 = arith.constant 0 : index
    %484 = vector.load %arg13[%483, %c0_150] : memref<64x512xf32, #tpu.memory_space<vmem>>, vector<8x512xf32>
    %485 = arith.truncf %475 : vector<8x128xf32> to vector<8x128xbf16>
    %c0_151 = arith.constant 0 : index
    %c0_152 = arith.constant 0 : index
    %486 = vector.load %arg8[%c0_151, %c0_152] : memref<128x512xbf16, #tpu.memory_space<vmem>>, vector<128x512xbf16>
    %cst_153 = arith.constant dense<0.000000e+00> : vector<8x512xf32>
    %487 = tpu.matmul %485, %486, %cst_153 {dimension_numbers = #tpu.dot_dimension_numbers<[1], [0], [0], [1], [0, 0, 1, 1], [], []>} : vector<8x128xbf16>, vector<128x512xbf16>, vector<8x512xf32> -> vector<8x512xf32>
    %488 = arith.addf %484, %487 : vector<8x512xf32>
    %489 = vector.extract_strided_slice %488 {offsets = [0, 0], sizes = [8, 128], strides = [1, 1]} : vector<8x512xf32> to vector<8x128xf32>
    %490 = arith.negf %489 : vector<8x128xf32>
    %491 = math.exp %490 : vector<8x128xf32>
    %cst_154 = arith.constant 1.000000e+00 : f32
    %492 = vector.broadcast %cst_154 : f32 to vector<8x128xf32>
    %493 = arith.addf %492, %491 : vector<8x128xf32>
    %494 = arith.divf %492, %493 : vector<8x128xf32>
    %495 = vector.extract_strided_slice %488 {offsets = [0, 128], sizes = [8, 128], strides = [1, 1]} : vector<8x512xf32> to vector<8x128xf32>
    %496 = arith.negf %495 : vector<8x128xf32>
    %497 = math.exp %496 : vector<8x128xf32>
    %cst_155 = arith.constant 1.000000e+00 : f32
    %498 = vector.broadcast %cst_155 : f32 to vector<8x128xf32>
    %499 = arith.addf %498, %497 : vector<8x128xf32>
    %500 = arith.divf %498, %499 : vector<8x128xf32>
    %501 = vector.extract_strided_slice %488 {offsets = [0, 256], sizes = [8, 128], strides = [1, 1]} : vector<8x512xf32> to vector<8x128xf32>
    %502 = math.tanh %501 : vector<8x128xf32>
    %503 = vector.extract_strided_slice %488 {offsets = [0, 384], sizes = [8, 128], strides = [1, 1]} : vector<8x512xf32> to vector<8x128xf32>
    %504 = arith.negf %503 : vector<8x128xf32>
    %505 = math.exp %504 : vector<8x128xf32>
    %cst_156 = arith.constant 1.000000e+00 : f32
    %506 = vector.broadcast %cst_156 : f32 to vector<8x128xf32>
    %507 = arith.addf %506, %505 : vector<8x128xf32>
    %508 = arith.divf %506, %507 : vector<8x128xf32>
    %509 = arith.mulf %500, %476 : vector<8x128xf32>
    %510 = arith.mulf %494, %502 : vector<8x128xf32>
    %511 = arith.addf %509, %510 : vector<8x128xf32>
    %512 = math.tanh %511 : vector<8x128xf32>
    %513 = arith.mulf %508, %512 : vector<8x128xf32>
    %514 = vector.broadcast %c3_i32_148 : i32 to vector<8x128xi32>
    %515 = arith.cmpi slt, %514, %0 : vector<8x128xi32>
    %516 = arith.select %515, %513, %475 : vector<8x128xi1>, vector<8x128xf32>
    %517 = arith.select %515, %511, %476 : vector<8x128xi1>, vector<8x128xf32>
    %cst_157 = arith.constant 0.000000e+00 : f32
    %518 = vector.broadcast %cst_157 : f32 to vector<8x128xf32>
    %519 = arith.select %515, %513, %518 : vector<8x128xi1>, vector<8x128xf32>
    %520 = arith.index_cast %482 : i32 to index
    %c0_158 = arith.constant 0 : index
    %521 = vector.load %arg14[%520, %c0_158] : memref<64x128xf32, #tpu.memory_space<vmem>>, vector<8x128xf32>
    tpu.vector_store %arg14[%520, %c0_158], %519 {strides = array<i32>} : memref<64x128xf32, #tpu.memory_space<vmem>>, vector<8x128xf32>,
    %c4_i32_159 = arith.constant 4 : i32
    %c8_i32_160 = arith.constant 8 : i32
    %522 = arith.muli %c4_i32_159, %c8_i32_160 : i32
    %523 = tpu.assume_multiple %522, 8 : i32
    %524 = arith.index_cast %523 : i32 to index
    %c0_161 = arith.constant 0 : index
    %525 = vector.load %arg13[%524, %c0_161] : memref<64x512xf32, #tpu.memory_space<vmem>>, vector<8x512xf32>
    %526 = arith.truncf %516 : vector<8x128xf32> to vector<8x128xbf16>
    %c0_162 = arith.constant 0 : index
    %c0_163 = arith.constant 0 : index
    %527 = vector.load %arg8[%c0_162, %c0_163] : memref<128x512xbf16, #tpu.memory_space<vmem>>, vector<128x512xbf16>
    %cst_164 = arith.constant dense<0.000000e+00> : vector<8x512xf32>
    %528 = tpu.matmul %526, %527, %cst_164 {dimension_numbers = #tpu.dot_dimension_numbers<[1], [0], [0], [1], [0, 0, 1, 1], [], []>} : vector<8x128xbf16>, vector<128x512xbf16>, vector<8x512xf32> -> vector<8x512xf32>
    %529 = arith.addf %525, %528 : vector<8x512xf32>
    %530 = vector.extract_strided_slice %529 {offsets = [0, 0], sizes = [8, 128], strides = [1, 1]} : vector<8x512xf32> to vector<8x128xf32>
    %531 = arith.negf %530 : vector<8x128xf32>
    %532 = math.exp %531 : vector<8x128xf32>
    %cst_165 = arith.constant 1.000000e+00 : f32
    %533 = vector.broadcast %cst_165 : f32 to vector<8x128xf32>
    %534 = arith.addf %533, %532 : vector<8x128xf32>
    %535 = arith.divf %533, %534 : vector<8x128xf32>
    %536 = vector.extract_strided_slice %529 {offsets = [0, 128], sizes = [8, 128], strides = [1, 1]} : vector<8x512xf32> to vector<8x128xf32>
    %537 = arith.negf %536 : vector<8x128xf32>
    %538 = math.exp %537 : vector<8x128xf32>
    %cst_166 = arith.constant 1.000000e+00 : f32
    %539 = vector.broadcast %cst_166 : f32 to vector<8x128xf32>
    %540 = arith.addf %539, %538 : vector<8x128xf32>
    %541 = arith.divf %539, %540 : vector<8x128xf32>
    %542 = vector.extract_strided_slice %529 {offsets = [0, 256], sizes = [8, 128], strides = [1, 1]} : vector<8x512xf32> to vector<8x128xf32>
    %543 = math.tanh %542 : vector<8x128xf32>
    %544 = vector.extract_strided_slice %529 {offsets = [0, 384], sizes = [8, 128], strides = [1, 1]} : vector<8x512xf32> to vector<8x128xf32>
    %545 = arith.negf %544 : vector<8x128xf32>
    %546 = math.exp %545 : vector<8x128xf32>
    %cst_167 = arith.constant 1.000000e+00 : f32
    %547 = vector.broadcast %cst_167 : f32 to vector<8x128xf32>
    %548 = arith.addf %547, %546 : vector<8x128xf32>
    %549 = arith.divf %547, %548 : vector<8x128xf32>
    %550 = arith.mulf %541, %517 : vector<8x128xf32>
    %551 = arith.mulf %535, %543 : vector<8x128xf32>
    %552 = arith.addf %550, %551 : vector<8x128xf32>
    %553 = math.tanh %552 : vector<8x128xf32>
    %554 = arith.mulf %549, %553 : vector<8x128xf32>
    %555 = vector.broadcast %c4_i32_159 : i32 to vector<8x128xi32>
    %556 = arith.cmpi slt, %555, %0 : vector<8x128xi32>
    %557 = arith.select %556, %554, %516 : vector<8x128xi1>, vector<8x128xf32>
    %558 = arith.select %556, %552, %517 : vector<8x128xi1>, vector<8x128xf32>
    %cst_168 = arith.constant 0.000000e+00 : f32
    %559 = vector.broadcast %cst_168 : f32 to vector<8x128xf32>
    %560 = arith.select %556, %554, %559 : vector<8x128xi1>, vector<8x128xf32>
    %561 = arith.index_cast %523 : i32 to index
    %c0_169 = arith.constant 0 : index
    %562 = vector.load %arg14[%561, %c0_169] : memref<64x128xf32, #tpu.memory_space<vmem>>, vector<8x128xf32>
    tpu.vector_store %arg14[%561, %c0_169], %560 {strides = array<i32>} : memref<64x128xf32, #tpu.memory_space<vmem>>, vector<8x128xf32>,
    %c5_i32_170 = arith.constant 5 : i32
    %c8_i32_171 = arith.constant 8 : i32
    %563 = arith.muli %c5_i32_170, %c8_i32_171 : i32
    %564 = tpu.assume_multiple %563, 8 : i32
    %565 = arith.index_cast %564 : i32 to index
    %c0_172 = arith.constant 0 : index
    %566 = vector.load %arg13[%565, %c0_172] : memref<64x512xf32, #tpu.memory_space<vmem>>, vector<8x512xf32>
    %567 = arith.truncf %557 : vector<8x128xf32> to vector<8x128xbf16>
    %c0_173 = arith.constant 0 : index
    %c0_174 = arith.constant 0 : index
    %568 = vector.load %arg8[%c0_173, %c0_174] : memref<128x512xbf16, #tpu.memory_space<vmem>>, vector<128x512xbf16>
    %cst_175 = arith.constant dense<0.000000e+00> : vector<8x512xf32>
    %569 = tpu.matmul %567, %568, %cst_175 {dimension_numbers = #tpu.dot_dimension_numbers<[1], [0], [0], [1], [0, 0, 1, 1], [], []>} : vector<8x128xbf16>, vector<128x512xbf16>, vector<8x512xf32> -> vector<8x512xf32>
    %570 = arith.addf %566, %569 : vector<8x512xf32>
    %571 = vector.extract_strided_slice %570 {offsets = [0, 0], sizes = [8, 128], strides = [1, 1]} : vector<8x512xf32> to vector<8x128xf32>
    %572 = arith.negf %571 : vector<8x128xf32>
    %573 = math.exp %572 : vector<8x128xf32>
    %cst_176 = arith.constant 1.000000e+00 : f32
    %574 = vector.broadcast %cst_176 : f32 to vector<8x128xf32>
    %575 = arith.addf %574, %573 : vector<8x128xf32>
    %576 = arith.divf %574, %575 : vector<8x128xf32>
    %577 = vector.extract_strided_slice %570 {offsets = [0, 128], sizes = [8, 128], strides = [1, 1]} : vector<8x512xf32> to vector<8x128xf32>
    %578 = arith.negf %577 : vector<8x128xf32>
    %579 = math.exp %578 : vector<8x128xf32>
    %cst_177 = arith.constant 1.000000e+00 : f32
    %580 = vector.broadcast %cst_177 : f32 to vector<8x128xf32>
    %581 = arith.addf %580, %579 : vector<8x128xf32>
    %582 = arith.divf %580, %581 : vector<8x128xf32>
    %583 = vector.extract_strided_slice %570 {offsets = [0, 256], sizes = [8, 128], strides = [1, 1]} : vector<8x512xf32> to vector<8x128xf32>
    %584 = math.tanh %583 : vector<8x128xf32>
    %585 = vector.extract_strided_slice %570 {offsets = [0, 384], sizes = [8, 128], strides = [1, 1]} : vector<8x512xf32> to vector<8x128xf32>
    %586 = arith.negf %585 : vector<8x128xf32>
    %587 = math.exp %586 : vector<8x128xf32>
    %cst_178 = arith.constant 1.000000e+00 : f32
    %588 = vector.broadcast %cst_178 : f32 to vector<8x128xf32>
    %589 = arith.addf %588, %587 : vector<8x128xf32>
    %590 = arith.divf %588, %589 : vector<8x128xf32>
    %591 = arith.mulf %582, %558 : vector<8x128xf32>
    %592 = arith.mulf %576, %584 : vector<8x128xf32>
    %593 = arith.addf %591, %592 : vector<8x128xf32>
    %594 = math.tanh %593 : vector<8x128xf32>
    %595 = arith.mulf %590, %594 : vector<8x128xf32>
    %596 = vector.broadcast %c5_i32_170 : i32 to vector<8x128xi32>
    %597 = arith.cmpi slt, %596, %0 : vector<8x128xi32>
    %598 = arith.select %597, %595, %557 : vector<8x128xi1>, vector<8x128xf32>
    %599 = arith.select %597, %593, %558 : vector<8x128xi1>, vector<8x128xf32>
    %cst_179 = arith.constant 0.000000e+00 : f32
    %600 = vector.broadcast %cst_179 : f32 to vector<8x128xf32>
    %601 = arith.select %597, %595, %600 : vector<8x128xi1>, vector<8x128xf32>
    %602 = arith.index_cast %564 : i32 to index
    %c0_180 = arith.constant 0 : index
    %603 = vector.load %arg14[%602, %c0_180] : memref<64x128xf32, #tpu.memory_space<vmem>>, vector<8x128xf32>
    tpu.vector_store %arg14[%602, %c0_180], %601 {strides = array<i32>} : memref<64x128xf32, #tpu.memory_space<vmem>>, vector<8x128xf32>,
    %c6_i32_181 = arith.constant 6 : i32
    %c8_i32_182 = arith.constant 8 : i32
    %604 = arith.muli %c6_i32_181, %c8_i32_182 : i32
    %605 = tpu.assume_multiple %604, 8 : i32
    %606 = arith.index_cast %605 : i32 to index
    %c0_183 = arith.constant 0 : index
    %607 = vector.load %arg13[%606, %c0_183] : memref<64x512xf32, #tpu.memory_space<vmem>>, vector<8x512xf32>
    %608 = arith.truncf %598 : vector<8x128xf32> to vector<8x128xbf16>
    %c0_184 = arith.constant 0 : index
    %c0_185 = arith.constant 0 : index
    %609 = vector.load %arg8[%c0_184, %c0_185] : memref<128x512xbf16, #tpu.memory_space<vmem>>, vector<128x512xbf16>
    %cst_186 = arith.constant dense<0.000000e+00> : vector<8x512xf32>
    %610 = tpu.matmul %608, %609, %cst_186 {dimension_numbers = #tpu.dot_dimension_numbers<[1], [0], [0], [1], [0, 0, 1, 1], [], []>} : vector<8x128xbf16>, vector<128x512xbf16>, vector<8x512xf32> -> vector<8x512xf32>
    %611 = arith.addf %607, %610 : vector<8x512xf32>
    %612 = vector.extract_strided_slice %611 {offsets = [0, 0], sizes = [8, 128], strides = [1, 1]} : vector<8x512xf32> to vector<8x128xf32>
    %613 = arith.negf %612 : vector<8x128xf32>
    %614 = math.exp %613 : vector<8x128xf32>
    %cst_187 = arith.constant 1.000000e+00 : f32
    %615 = vector.broadcast %cst_187 : f32 to vector<8x128xf32>
    %616 = arith.addf %615, %614 : vector<8x128xf32>
    %617 = arith.divf %615, %616 : vector<8x128xf32>
    %618 = vector.extract_strided_slice %611 {offsets = [0, 128], sizes = [8, 128], strides = [1, 1]} : vector<8x512xf32> to vector<8x128xf32>
    %619 = arith.negf %618 : vector<8x128xf32>
    %620 = math.exp %619 : vector<8x128xf32>
    %cst_188 = arith.constant 1.000000e+00 : f32
    %621 = vector.broadcast %cst_188 : f32 to vector<8x128xf32>
    %622 = arith.addf %621, %620 : vector<8x128xf32>
    %623 = arith.divf %621, %622 : vector<8x128xf32>
    %624 = vector.extract_strided_slice %611 {offsets = [0, 256], sizes = [8, 128], strides = [1, 1]} : vector<8x512xf32> to vector<8x128xf32>
    %625 = math.tanh %624 : vector<8x128xf32>
    %626 = vector.extract_strided_slice %611 {offsets = [0, 384], sizes = [8, 128], strides = [1, 1]} : vector<8x512xf32> to vector<8x128xf32>
    %627 = arith.negf %626 : vector<8x128xf32>
    %628 = math.exp %627 : vector<8x128xf32>
    %cst_189 = arith.constant 1.000000e+00 : f32
    %629 = vector.broadcast %cst_189 : f32 to vector<8x128xf32>
    %630 = arith.addf %629, %628 : vector<8x128xf32>
    %631 = arith.divf %629, %630 : vector<8x128xf32>
    %632 = arith.mulf %623, %599 : vector<8x128xf32>
    %633 = arith.mulf %617, %625 : vector<8x128xf32>
    %634 = arith.addf %632, %633 : vector<8x128xf32>
    %635 = math.tanh %634 : vector<8x128xf32>
    %636 = arith.mulf %631, %635 : vector<8x128xf32>
    %637 = vector.broadcast %c6_i32_181 : i32 to vector<8x128xi32>
    %638 = arith.cmpi slt, %637, %0 : vector<8x128xi32>
    %639 = arith.select %638, %636, %598 : vector<8x128xi1>, vector<8x128xf32>
    %640 = arith.select %638, %634, %599 : vector<8x128xi1>, vector<8x128xf32>
    %cst_190 = arith.constant 0.000000e+00 : f32
    %641 = vector.broadcast %cst_190 : f32 to vector<8x128xf32>
    %642 = arith.select %638, %636, %641 : vector<8x128xi1>, vector<8x128xf32>
    %643 = arith.index_cast %605 : i32 to index
    %c0_191 = arith.constant 0 : index
    %644 = vector.load %arg14[%643, %c0_191] : memref<64x128xf32, #tpu.memory_space<vmem>>, vector<8x128xf32>
    tpu.vector_store %arg14[%643, %c0_191], %642 {strides = array<i32>} : memref<64x128xf32, #tpu.memory_space<vmem>>, vector<8x128xf32>,
    %c7_i32_192 = arith.constant 7 : i32
    %c8_i32_193 = arith.constant 8 : i32
    %645 = arith.muli %c7_i32_192, %c8_i32_193 : i32
    %646 = tpu.assume_multiple %645, 8 : i32
    %647 = arith.index_cast %646 : i32 to index
    %c0_194 = arith.constant 0 : index
    %648 = vector.load %arg13[%647, %c0_194] : memref<64x512xf32, #tpu.memory_space<vmem>>, vector<8x512xf32>
    %649 = arith.truncf %639 : vector<8x128xf32> to vector<8x128xbf16>
    %c0_195 = arith.constant 0 : index
    %c0_196 = arith.constant 0 : index
    %650 = vector.load %arg8[%c0_195, %c0_196] : memref<128x512xbf16, #tpu.memory_space<vmem>>, vector<128x512xbf16>
    %cst_197 = arith.constant dense<0.000000e+00> : vector<8x512xf32>
    %651 = tpu.matmul %649, %650, %cst_197 {dimension_numbers = #tpu.dot_dimension_numbers<[1], [0], [0], [1], [0, 0, 1, 1], [], []>} : vector<8x128xbf16>, vector<128x512xbf16>, vector<8x512xf32> -> vector<8x512xf32>
    %652 = arith.addf %648, %651 : vector<8x512xf32>
    %653 = vector.extract_strided_slice %652 {offsets = [0, 0], sizes = [8, 128], strides = [1, 1]} : vector<8x512xf32> to vector<8x128xf32>
    %654 = arith.negf %653 : vector<8x128xf32>
    %655 = math.exp %654 : vector<8x128xf32>
    %cst_198 = arith.constant 1.000000e+00 : f32
    %656 = vector.broadcast %cst_198 : f32 to vector<8x128xf32>
    %657 = arith.addf %656, %655 : vector<8x128xf32>
    %658 = arith.divf %656, %657 : vector<8x128xf32>
    %659 = vector.extract_strided_slice %652 {offsets = [0, 128], sizes = [8, 128], strides = [1, 1]} : vector<8x512xf32> to vector<8x128xf32>
    %660 = arith.negf %659 : vector<8x128xf32>
    %661 = math.exp %660 : vector<8x128xf32>
    %cst_199 = arith.constant 1.000000e+00 : f32
    %662 = vector.broadcast %cst_199 : f32 to vector<8x128xf32>
    %663 = arith.addf %662, %661 : vector<8x128xf32>
    %664 = arith.divf %662, %663 : vector<8x128xf32>
    %665 = vector.extract_strided_slice %652 {offsets = [0, 256], sizes = [8, 128], strides = [1, 1]} : vector<8x512xf32> to vector<8x128xf32>
    %666 = math.tanh %665 : vector<8x128xf32>
    %667 = vector.extract_strided_slice %652 {offsets = [0, 384], sizes = [8, 128], strides = [1, 1]} : vector<8x512xf32> to vector<8x128xf32>
    %668 = arith.negf %667 : vector<8x128xf32>
    %669 = math.exp %668 : vector<8x128xf32>
    %cst_200 = arith.constant 1.000000e+00 : f32
    %670 = vector.broadcast %cst_200 : f32 to vector<8x128xf32>
    %671 = arith.addf %670, %669 : vector<8x128xf32>
    %672 = arith.divf %670, %671 : vector<8x128xf32>
    %673 = arith.mulf %664, %640 : vector<8x128xf32>
    %674 = arith.mulf %658, %666 : vector<8x128xf32>
    %675 = arith.addf %673, %674 : vector<8x128xf32>
    %676 = math.tanh %675 : vector<8x128xf32>
    %677 = arith.mulf %672, %676 : vector<8x128xf32>
    %678 = vector.broadcast %c7_i32_192 : i32 to vector<8x128xi32>
    %679 = arith.cmpi slt, %678, %0 : vector<8x128xi32>
    %680 = arith.select %679, %677, %639 : vector<8x128xi1>, vector<8x128xf32>
    %681 = arith.select %679, %675, %640 : vector<8x128xi1>, vector<8x128xf32>
    %cst_201 = arith.constant 0.000000e+00 : f32
    %682 = vector.broadcast %cst_201 : f32 to vector<8x128xf32>
    %683 = arith.select %679, %677, %682 : vector<8x128xi1>, vector<8x128xf32>
    %684 = arith.index_cast %646 : i32 to index
    %c0_202 = arith.constant 0 : index
    %685 = vector.load %arg14[%684, %c0_202] : memref<64x128xf32, #tpu.memory_space<vmem>>, vector<8x128xf32>
    tpu.vector_store %arg14[%684, %c0_202], %683 {strides = array<i32>} : memref<64x128xf32, #tpu.memory_space<vmem>>, vector<8x128xf32>,
    %c8_i32_203 = arith.constant 8 : i32
    %c1_204 = arith.constant 1 : index
    %c0_205 = arith.constant 0 : index
    %c0_206 = arith.constant 0 : index
    %686 = vector.load %arg11[%c1_204, %c0_205, %c0_206] : memref<2x8x128xf32, #tpu.memory_space<vmem>>, vector<1x8x128xf32>
    %687 = vector.shape_cast %686 : vector<1x8x128xf32> to vector<8x128xf32>
    %688 = vector.shape_cast %680 : vector<8x128xf32> to vector<1x8x128xf32>
    tpu.vector_store %arg11[%c1_204, %c0_205, %c0_206], %688 {strides = array<i32>} : memref<2x8x128xf32, #tpu.memory_space<vmem>>, vector<1x8x128xf32>,
    %c1_207 = arith.constant 1 : index
    %c0_208 = arith.constant 0 : index
    %c0_209 = arith.constant 0 : index
    %689 = vector.load %arg12[%c1_207, %c0_208, %c0_209] : memref<2x8x128xf32, #tpu.memory_space<vmem>>, vector<1x8x128xf32>
    %690 = vector.shape_cast %689 : vector<1x8x128xf32> to vector<8x128xf32>
    %691 = vector.shape_cast %681 : vector<8x128xf32> to vector<1x8x128xf32>
    tpu.vector_store %arg12[%c1_207, %c0_208, %c0_209], %691 {strides = array<i32>} : memref<2x8x128xf32, #tpu.memory_space<vmem>>, vector<1x8x128xf32>,
    %c56 = arith.constant 56 : index
    %c0_210 = arith.constant 0 : index
    %692 = vector.load %arg14[%c56, %c0_210] : memref<64x128xf32, #tpu.memory_space<vmem>>, vector<8x128xf32>
    %c0_211 = arith.constant 0 : index
    %c0_212 = arith.constant 0 : index
    %693 = vector.load %arg10[%c0_211, %c0_212] : memref<8x128xf32, #tpu.memory_space<vmem>>, vector<8x128xf32>
    tpu.vector_store %arg10[%c0_211, %c0_212], %692 {strides = array<i32>} : memref<8x128xf32, #tpu.memory_space<vmem>>, vector<8x128xf32>,
    return
  }
}

</mosaic_0001>

<bundles_post_ra>
// kernel: tpu_custom_call.1
= control target key start
LH: loop header
LB: loop body
LE: loop exit
PB: predicated region body
PF: predicated region fallthrough
CT: control target
= control target key end

     0   :  { %18 = vsyncpa [#allocation5], 0  ;;  %s8989_s0 = inlined_call_operand.hbm [shape: bf16[64,128], index: 0, kind: input, shape index: {}]   ;;  %s8990_s1 = inlined_call_operand.hbm [shape: s32[8,128], index: 1, kind: input, shape index: {}]   ;;  %s8991_s2 = inlined_call_operand.hbm [shape: f32[2,8,128], index: 2, kind: input, shape index: {}]   ;;  %s8992_s3 = inlined_call_operand.hbm [shape: f32[2,8,128], index: 3, kind: input, shape index: {}]   ;;  %s8993_s4 = inlined_call_operand.hbm [shape: bf16[128,512], index: 4, kind: input, shape index: {}]   ;;  %s8994_s5 = inlined_call_operand.hbm [shape: bf16[128,512], index: 5, kind: input, shape index: {}]   ;;  %s8995_s6 = inlined_call_operand.vmem [shape: f32[1,512], index: 6, kind: input, shape index: {}]   ;;  %s8996_s7 = inlined_call_operand.hbm [shape: bf16[128,512], index: 7, kind: input, shape index: {}]   ;;  %s8997_s8 = inlined_call_operand.hbm [shape: bf16[128,512], index: 8, kind: input, shape index: {}]   ;;  %s8998_s9 = inlined_call_operand.vmem [shape: f32[1,512], index: 9, kind: input, shape index: {}]   ;;  %s8999_s10 = inlined_call_operand.hbm [shape: f32[8,128], index: 10, kind: output, shape index: {0}]   ;;  %s9000_s11 = inlined_call_operand.hbm [shape: f32[2,8,128], index: 11, kind: output, shape index: {1}]   ;;  %s9001_s12 = inlined_call_operand.hbm [shape: f32[2,8,128], index: 12, kind: output, shape index: {2}]  }
   0x1   :  { %19 = vsyncpa [#allocation8], 0 }
   0x2   :  { %20 = vsyncpa [#allocation11], 0 }
   0x3   :  { %21 = vsyncpa [#allocation14], 0 }
   0x4   :  { %22 = vsyncpa [#allocation17], 0 }
   0x5   :  { %23 = vsyncpa [#allocation6], 0 }
   0x6   :  { %24 = vsyncpa [#allocation20], 0  ;;  %s7516_s21 = smov [#allocation7]  }
   0x7   :  { %s43_s22 = sshll.u32 %s7516_s21, 4  ;;  %s44_s22 = int_to_ptr.vmem [resolvable:$true] %s43_s22 }
   0x8   :  { %s7290_s23 = scalar_lea.vmem %s44_s22, 128  ;;  %p7295_p1 = scmp.lt.s32.totalorder %s44_s22, %s44_s22 }
   0x9   :  { %p7291_p0 = scmp.ne.s32.totalorder %s44_s22, %s7290_s23  ;;  %p7296_p2 = scmp.lt.s32.totalorder %s7290_s23, %s7290_s23 }
   0xb   :  { %p7297_p3 = por %p7296_p2, %p7295_p1 }
   0xd   :  { %p7298_p4 = pnand %p7297_p3, %p7291_p0 }
   0xf   :  { %7301 = shalt.err (!%p7298_p4)
}
  0x10   :  { %46 = dma.hbm_to_vmem [thread:$0]  %s8990_s1, 128, %s44_s22, [#allocation8]  }
  0x11   :  { %s7517_s26 = smov [#allocation10]  }
  0x12   :  { %s64_s27 = sshll.u32 %s7517_s26, 4  ;;  %s65_s27 = int_to_ptr.vmem [resolvable:$true] %s64_s27 }
  0x13   :  { %s7310_s28 = scalar_lea.vmem %s65_s27, 256  ;;  %p7315_p6 = scmp.lt.s32.totalorder %s65_s27, %s65_s27 }
  0x14   :  { %p7311_p5 = scmp.ne.s32.totalorder %s65_s27, %s7310_s28  ;;  %p7316_p7 = scmp.lt.s32.totalorder %s7310_s28, %s7310_s28 }
  0x16   :  { %p7317_p8 = por %p7316_p7, %p7315_p6 }
  0x18   :  { %p7318_p9 = pnand %p7317_p8, %p7311_p5 }
  0x1a   :  { %7321 = shalt.err (!%p7318_p9)
}
  0x1b   :  { %s7518_s29 = smov 128   ;;  %s7519_s30 = smov 8  }
  0x1c   :  { %70 = dma.hbm_to_vmem [thread:$0]  %s8992_s3, 256, %s65_s27, [#allocation11], %s7518_s29, %s7518_s29, %s7519_s30  }
  0x1d   :  { %s7520_s1 = smov [#allocation13]   ;;  %s7521_s16 = smov [#allocation4]  }
  0x1e   :  { %s88_s15 = sshll.u32 %s7520_s1, 4  ;;  %s30_s17 = sshll.u32 %s7521_s16, 4  ;;  %s89_s15 = int_to_ptr.vmem [resolvable:$true] %s88_s15  ;;  %s31_s17 = int_to_ptr.vmem [resolvable:$true] %s30_s17 }
  0x1f   :  { %s7330_s18 = scalar_lea.vmem %s89_s15, 4096  ;;  %p7335_p11 = scmp.lt.s32.totalorder %s89_s15, %s89_s15 }
  0x20   :  { %p7331_p10 = scmp.ne.s32.totalorder %s89_s15, %s7330_s18  ;;  %p7336_p12 = scmp.lt.s32.totalorder %s7330_s18, %s7330_s18 }
  0x22   :  { %p7337_p13 = por %p7336_p12, %p7335_p11 }
  0x24   :  { %p7338_p0 = pnand %p7337_p13, %p7331_p10 }
  0x26   :  { %7341 = shalt.err (!%p7338_p0)
}
  0x27   :  { %s7522_s19 = smov 256   ;;  %s7523_s20 = smov 16  }
  0x28   :  { %94 = dma.hbm_to_vmem [thread:$0]  %s8994_s5, 4096, %s89_s15, [#allocation14], %s7522_s19, %s7522_s19, %s7523_s20  }
  0x29   :  { %s7350_s22 = scalar_lea.vmem %s31_s17, 512  ;;  %p7355_p2 = scmp.lt.s32.totalorder %s31_s17, %s31_s17 }
  0x2a   :  { %p7351_p1 = scmp.ne.s32.totalorder %s31_s17, %s7350_s22  ;;  %p7356_p3 = scmp.lt.s32.totalorder %s7350_s22, %s7350_s22 }
  0x2c   :  { %p7357_p4 = por %p7356_p3, %p7355_p2 }
  0x2e   :  { %p7358_p5 = pnand %p7357_p4, %p7351_p1 }
  0x30   :  { %7361 = shalt.err (!%p7358_p5)
}
  0x31   :  { %s7524_s23 = smov 64   ;;  %s7525_s24 = smov 4  }
  0x32   :  { %36 = dma.hbm_to_vmem [thread:$0]  %s8989_s0, 512, %s31_s17, [#allocation5], %s7524_s23, %s7524_s23, %s7525_s24  }
  0x33   :  { %s7526_s27 = smov [#allocation9]   ;;  %s7527_s13 = smov [#allocation12]  }
  0x34   :  { %s52_s28 = sshll.u32 %s7526_s27, 4  ;;  %s76_s14 = sshll.u32 %s7527_s13, 4  ;;  %s53_s28 = int_to_ptr.vmem [resolvable:$true] %s52_s28  ;;  %s77_s14 = int_to_ptr.vmem [resolvable:$true] %s76_s14 }
  0x35   :  { %s7370_s5 = scalar_lea.vmem %s53_s28, 256  ;;  %p7375_p7 = scmp.lt.s32.totalorder %s53_s28, %s53_s28 }
  0x36   :  { %p7371_p6 = scmp.ne.s32.totalorder %s53_s28, %s7370_s5  ;;  %p7376_p8 = scmp.lt.s32.totalorder %s7370_s5, %s7370_s5 }
  0x38   :  { %p7377_p9 = por %p7376_p8, %p7375_p7 }
  0x3a   :  { %p7378_p10 = pnand %p7377_p9, %p7371_p6 }
  0x3c   :  { %7381 = shalt.err (!%p7378_p10)
}
  0x3d   :  { %58 = dma.hbm_to_vmem [thread:$0]  %s8991_s2, 256, %s53_s28, [#allocation8], %s7518_s29, %s7518_s29, %s7519_s30  }
  0x3e   :  { %s7390_s0 = scalar_lea.vmem %s77_s14, 4096  ;;  %p7395_p12 = scmp.lt.s32.totalorder %s77_s14, %s77_s14 }
  0x3f   :  { %p7391_p11 = scmp.ne.s32.totalorder %s77_s14, %s7390_s0  ;;  %p7396_p13 = scmp.lt.s32.totalorder %s7390_s0, %s7390_s0 }
  0x41   :  { %p7397_p0 = por %p7396_p13, %p7395_p12 }
  0x43   :  { %p7398_p1 = pnand %p7397_p0, %p7391_p11 }
  0x45   :  { %7401 = shalt.err (!%p7398_p1)
}
  0x46   :  { %82 = dma.hbm_to_vmem [thread:$0]  %s8993_s4, 4096, %s77_s14, [#allocation11], %s7522_s19, %s7522_s19, %s7523_s20  }
  0x47   :  { %s7528_s18 = smov [#allocation15]   ;;  %s7529_s3 = smov [#allocation16]  }
  0x48   :  { %s102_s21 = sshll.u32 %s7528_s18, 4  ;;  %s114_s22 = sshll.u32 %s7529_s3, 4  ;;  %s103_s21 = int_to_ptr.vmem [resolvable:$true] %s102_s21  ;;  %s115_s22 = int_to_ptr.vmem [resolvable:$true] %s114_s22 }
  0x49   :  { %s7410_s2 = scalar_lea.vmem %s103_s21, 4096  ;;  %p7415_p3 = scmp.lt.s32.totalorder %s103_s21, %s103_s21 }
  0x4a   :  { %p7411_p2 = scmp.ne.s32.totalorder %s103_s21, %s7410_s2  ;;  %p7416_p4 = scmp.lt.s32.totalorder %s7410_s2, %s7410_s2 }
  0x4c   :  { %p7417_p5 = por %p7416_p4, %p7415_p3 }
  0x4e   :  { %p7418_p6 = pnand %p7417_p5, %p7411_p2 }
  0x50   :  { %7421 = shalt.err (!%p7418_p6)
}
  0x51   :  { %108 = dma.hbm_to_vmem [thread:$0]  %s8996_s7, 4096, %s103_s21, [#allocation14], %s7522_s19, %s7522_s19, %s7523_s20  }
  0x52   :  { %s7430_s4 = scalar_lea.vmem %s115_s22, 4096  ;;  %p7435_p8 = scmp.lt.s32.totalorder %s115_s22, %s115_s22 }
  0x53   :  { %p7431_p7 = scmp.ne.s32.totalorder %s115_s22, %s7430_s4  ;;  %p7436_p9 = scmp.lt.s32.totalorder %s7430_s4, %s7430_s4 }
  0x55   :  { %p7437_p10 = por %p7436_p9, %p7435_p8 }
  0x57   :  { %p7438_p11 = pnand %p7437_p10, %p7431_p7 }
  0x59   :  { %7441 = shalt.err (!%p7438_p11)
}
  0x5a   :  { %120 = dma.hbm_to_vmem [thread:$0]  %s8997_s8, 4096, %s115_s22, [#allocation17], %s7522_s19, %s7522_s19, %s7523_s20  }
  0x5b   :  { %7502 = dma.done.wait [#allocation5], 512  }
  0x5c   :  { %7503 = vsyncadd [#allocation5], 4294966784 }
  0x5d   :  { %7504 = dma.done.wait [#allocation8], 384  }
  0x5e   :  { %7505 = vsyncadd [#allocation8], 4294966912 }
  0x5f   :  { %7506 = dma.done.wait [#allocation11], 4352  }
  0x60   :  { %7507 = vsyncadd [#allocation11], 4294962944 }
  0x61   :  { %7508 = dma.done.wait [#allocation14], 8192  }
  0x62   :  { %7509 = vsyncadd [#allocation14], 4294959104 }
  0x63   :  { %7510 = dma.done.wait [#allocation17], 4096  }
  0x64   :  { %7511 = vsyncadd [#allocation17], 4294963200  ;;  %v9006_v0 = vmov 0   ;;  %v6733_v1 = vld [vmem:[#allocation12 + $0xe4] ss:$16 sps:$4 sm:$0xff]   ;;  %v6781_v35 = vld [vmem:[#allocation4] sm:$0xff]  }
  0x65   :  { %427 = vmatprep.mubr.bf16.mxu0 %v9006_v0  ;;  %500 = vmatprep.mubr.bf16.mxu1 %v9006_v0  ;;  %v6735_v2 = vld [vmem:[#allocation12 + $0xec] ss:$16 sps:$4 sm:$0xff]   ;;  %v6737_v3 = vld [vmem:[#allocation12 + $0xe0] ss:$16 sps:$4 sm:$0xff]   ;;  %v6738_v4 = vld [vmem:[#allocation12 + $0xe8] ss:$16 sps:$4 sm:$0xff]  }
  0x66   :  { %395 = vmatprep.subr.bf16.mxu0 %v6733_v1  ;;  %468 = vmatprep.subr.bf16.mxu1 %v6735_v2  ;;  %v6739_v5 = vld [vmem:[#allocation12 + $0xc4] ss:$16 sps:$4 sm:$0xff]   ;;  %v6741_v6 = vld [vmem:[#allocation12 + $0xcc] ss:$16 sps:$4 sm:$0xff]   ;;  %v6743_v7 = vld [vmem:[#allocation12 + $0xc0] ss:$16 sps:$4 sm:$0xff]  }
  0x67   :  { %396 = vmatpush1.bf16.msra.mxu0 %v6737_v3  ;;  %469 = vmatpush1.bf16.msra.mxu1 %v6738_v4  ;;  %v6744_v8 = vld [vmem:[#allocation12 + $0xc8] ss:$16 sps:$4 sm:$0xff]   ;;  %v6745_v9 = vld [vmem:[#allocation12 + $0xa4] ss:$16 sps:$4 sm:$0xff]   ;;  %v6747_v10 = vld [vmem:[#allocation12 + $0xac] ss:$16 sps:$4 sm:$0xff]  }
  0x68   :  { %397 = vmatprep.subr.bf16.mxu0 %v6739_v5  ;;  %470 = vmatprep.subr.bf16.mxu1 %v6741_v6  ;;  %v6749_v11 = vld [vmem:[#allocation12 + $0xa0] ss:$16 sps:$4 sm:$0xff]   ;;  %v6750_v12 = vld [vmem:[#allocation12 + $0xa8] ss:$16 sps:$4 sm:$0xff]   ;;  %v6751_v13 = vld [vmem:[#allocation12 + $0x84] ss:$16 sps:$4 sm:$0xff]  }
  0x69   :  { %v6753_v14 = vld [vmem:[#allocation12 + $0x8c] ss:$16 sps:$4 sm:$0xff]   ;;  %v6755_v15 = vld [vmem:[#allocation12 + $0x80] ss:$16 sps:$4 sm:$0xff]   ;;  %v6756_v16 = vld [vmem:[#allocation12 + $0x88] ss:$16 sps:$4 sm:$0xff]  }
  0x6a   :  { %v6757_v17 = vld [vmem:[#allocation12 + $0x64] ss:$16 sps:$4 sm:$0xff]   ;;  %v6759_v18 = vld [vmem:[#allocation12 + $0x6c] ss:$16 sps:$4 sm:$0xff]   ;;  %v6761_v19 = vld [vmem:[#allocation12 + $0x60] ss:$16 sps:$4 sm:$0xff]  }
  0x6b   :  { %398 = vmatpush1.bf16.msra.mxu0 %v6743_v7  ;;  %471 = vmatpush1.bf16.msra.mxu1 %v6744_v8  ;;  %v6762_v20 = vld [vmem:[#allocation12 + $0x68] ss:$16 sps:$4 sm:$0xff]   ;;  %v6763_v21 = vld [vmem:[#allocation12 + $0x44] ss:$16 sps:$4 sm:$0xff]   ;;  %v6765_v22 = vld [vmem:[#allocation12 + $0x4c] ss:$16 sps:$4 sm:$0xff]   ;;  %v191_v8 = vlaneseq }
  0x6c   :  { %399 = vmatprep.subr.bf16.mxu0 %v6745_v9  ;;  %472 = vmatprep.subr.bf16.mxu1 %v6747_v10  ;;  %v6767_v23 = vld [vmem:[#allocation12 + $0x40] ss:$16 sps:$4 sm:$0xff]   ;;  %v6768_v24 = vld [vmem:[#allocation12 + $0x48] ss:$16 sps:$4 sm:$0xff]   ;;  %v6769_v25 = vld [vmem:[#allocation12 + $0x24] ss:$16 sps:$4 sm:$0xff]  }
  0x6d   :  { %v6771_v26 = vld [vmem:[#allocation12 + $0x2c] ss:$16 sps:$4 sm:$0xff]   ;;  %v6773_v27 = vld [vmem:[#allocation12 + $0x20] ss:$16 sps:$4 sm:$0xff]   ;;  %v6774_v28 = vld [vmem:[#allocation12 + $0x28] ss:$16 sps:$4 sm:$0xff]  }
  0x6e   :  { %v6775_v29 = vld [vmem:[#allocation12 + $0x4] ss:$16 sps:$4 sm:$0xff]   ;;  %v6777_v30 = vld [vmem:[#allocation12 + $0xc] ss:$16 sps:$4 sm:$0xff]   ;;  %v6779_v31 = vld [vmem:[#allocation12] ss:$16 sps:$4 sm:$0xff]  }
  0x6f   :  { %400 = vmatpush1.bf16.msra.mxu0 %v6749_v11  ;;  %473 = vmatpush1.bf16.msra.mxu1 %v6750_v12  ;;  %v6780_v32 = vld [vmem:[#allocation12 + $0x8] ss:$16 sps:$4 sm:$0xff]   ;;  %v7643_v33 = vld [vmem:[#allocation13 + $0xe4] ss:$16 sps:$4 sm:$0xff]   ;;  %v7645_v34 = vld [vmem:[#allocation13 + $0xec] ss:$16 sps:$4 sm:$0xff]  }
  0x70   :  { %401 = vmatprep.subr.bf16.mxu0 %v6751_v13  ;;  %474 = vmatprep.subr.bf16.mxu1 %v6753_v14  ;;  %v7647_v36 = vld [vmem:[#allocation13 + $0xe0] ss:$16 sps:$4 sm:$0xff]   ;;  %v7649_v37 = vld [vmem:[#allocation13 + $0xe8] ss:$16 sps:$4 sm:$0xff]   ;;  %v7653_v38 = vld [vmem:[#allocation13 + $0xc4] ss:$16 sps:$4 sm:$0xff]  }
  0x71   :  { %v7655_v39 = vld [vmem:[#allocation13 + $0xcc] ss:$16 sps:$4 sm:$0xff]   ;;  %v7657_v40 = vld [vmem:[#allocation13 + $0xc0] ss:$16 sps:$4 sm:$0xff]   ;;  %v7661_v41 = vld [vmem:[#allocation13 + $0xc8] ss:$16 sps:$4 sm:$0xff]  }
  0x72   :  { %v7665_v42 = vld [vmem:[#allocation13 + $0xa4] ss:$16 sps:$4 sm:$0xff]   ;;  %v7667_v43 = vld [vmem:[#allocation13 + $0xac] ss:$16 sps:$4 sm:$0xff]   ;;  %v7671_v45 = vld [vmem:[#allocation13 + $0xa0] ss:$16 sps:$4 sm:$0xff]  }
  0x73   :  { %402 = vmatpush1.bf16.msra.mxu0 %v6755_v15  ;;  %475 = vmatpush1.bf16.msra.mxu1 %v6756_v16  ;;  %v6794_v44 = vld [vmem:[#allocation4 + $0x8] sm:$0xff]   ;;  %v7673_v46 = vld [vmem:[#allocation13 + $0xa8] ss:$16 sps:$4 sm:$0xff]   ;;  %v7681_v48 = vld [vmem:[#allocation13 + $0x8c] ss:$16 sps:$4 sm:$0xff]   ;;  %v7787_v9 = vshrl.u32 %v191_v8, 7 }
  0x74   :  { %403 = vmatprep.subr.bf16.mxu0 %v6757_v17  ;;  %476 = vmatprep.subr.bf16.mxu1 %v6759_v18  ;;  %v7677_v47 = vld [vmem:[#allocation13 + $0x84] ss:$16 sps:$4 sm:$0xff]   ;;  %v7683_v49 = vld [vmem:[#allocation13 + $0x80] ss:$16 sps:$4 sm:$0xff]   ;;  %v7685_v50 = vld [vmem:[#allocation13 + $0x88] ss:$16 sps:$4 sm:$0xff]  }
  0x75   :  { %v7689_v51 = vld [vmem:[#allocation13 + $0x64] ss:$16 sps:$4 sm:$0xff]   ;;  %v7693_v52 = vld [vmem:[#allocation13 + $0x6c] ss:$16 sps:$4 sm:$0xff]   ;;  %v7697_v54 = vld [vmem:[#allocation13 + $0x60] ss:$16 sps:$4 sm:$0xff]  }
  0x76   :  { %v6807_v53 = vld [vmem:[#allocation4 + $0x10] sm:$0xff]   ;;  %v7701_v56 = vld [vmem:[#allocation13 + $0x44] ss:$16 sps:$4 sm:$0xff]   ;;  %v7709_v58 = vld [vmem:[#allocation13 + $0x40] ss:$16 sps:$4 sm:$0xff]   ;;  %9012 = vst [vmem:[#allocation29_spill] sm:$0xff] %v7787_v9 }
  0x77   :  { %404 = vmatpush1.bf16.msra.mxu0 %v6761_v19  ;;  %477 = vmatpush1.bf16.msra.mxu1 %v6762_v20  ;;  %v7699_v55 = vld [vmem:[#allocation13 + $0x68] ss:$16 sps:$4 sm:$0xff]   ;;  %v7703_v57 = vld [vmem:[#allocation13 + $0x4c] ss:$16 sps:$4 sm:$0xff]   ;;  %v7713_v60 = vld [vmem:[#allocation13 + $0x24] ss:$16 sps:$4 sm:$0xff]  }
  0x78   :  { %405 = vmatprep.subr.bf16.mxu0 %v6763_v21  ;;  %478 = vmatprep.subr.bf16.mxu1 %v6765_v22  ;;  %v7711_v59 = vld [vmem:[#allocation13 + $0x48] ss:$16 sps:$4 sm:$0xff]   ;;  %v7715_v61 = vld [vmem:[#allocation13 + $0x2c] ss:$16 sps:$4 sm:$0xff]   ;;  %v6820_v62 = vld [vmem:[#allocation4 + $0x18] sm:$0xff]   ;;  %v9002_v10 = vsub.s32 2, %v7787_v9 }
  0x79   :  { %v7723_v63 = vld [vmem:[#allocation13 + $0x20] ss:$16 sps:$4 sm:$0xff]   ;;  %v7725_v1 = vld [vmem:[#allocation13 + $0x28] ss:$16 sps:$4 sm:$0xff]   ;;  %v7727_v2 = vld [vmem:[#allocation13 + $0x4] ss:$16 sps:$4 sm:$0xff]  }
  0x7a   :  { %v7729_v3 = vld [vmem:[#allocation13 + $0xc] ss:$16 sps:$4 sm:$0xff]   ;;  %v7735_v4 = vld [vmem:[#allocation13] ss:$16 sps:$4 sm:$0xff]   ;;  %v7737_v5 = vld [vmem:[#allocation13 + $0x8] ss:$16 sps:$4 sm:$0xff]  }
  0x7b   :  { %406 = vmatpush1.bf16.msra.mxu0 %v6767_v23  ;;  %479 = vmatpush1.bf16.msra.mxu1 %v6768_v24  ;;  %v7739_v6 = vld [vmem:[#allocation9] sm:$0xff]  ;;  %v9005_v11 = vsub.s32 0, %v7787_v9  ;;  %v9003_v12 = vsub.s32 3, %v7787_v9  ;;  %v189_v13 = vld [vmem:[%s8995_s6] sm:$0xf]  ;;  %v9004_v17 = vsub.s32 1, %v7787_v9 }
  0x7c   :  { %407 = vmatprep.subr.bf16.mxu0 %v6769_v25  ;;  %480 = vmatprep.subr.bf16.mxu1 %v6771_v26  ;;  %v582_v7 = vpack.c.bf16 %v7739_v6, %v7739_v6  ;;  %v7801_v16 = vrot.slane %v189_v13, %v9002_v10  ;;  %s7532_s27 = smov [#allocation18]   ;;  %s7533_s13 = smov [#allocation21]  }
  0x7d   :  { %v194_v20 = vrot.slane %v189_v13, %v9005_v11  ;;  %v7812_v21 = vrot.slane %v189_v13, %v9003_v12  ;;  %v198_v24 = vrot.slane %v189_v13, %v9004_v17  ;;  %s6012_s28 = sshll.u32 %s7532_s27, 4  ;;  %s6033_s14 = sshll.u32 %s7533_s13, 4  ;;  %s6013_s28 = int_to_ptr.vmem [resolvable:$true] %s6012_s28  ;;  %s6034_s14 = int_to_ptr.vmem [resolvable:$true] %s6033_s14 }
  0x7f   :  { %408 = vmatpush1.bf16.msra.mxu0 %v6773_v27  ;;  %481 = vmatpush1.bf16.msra.mxu1 %v6774_v28 }
  0x80   :  { %409 = vmatprep.subr.bf16.mxu0 %v6775_v29  ;;  %482 = vmatprep.subr.bf16.mxu1 %v6777_v30 }
  0x83   :  { %410 = vmatpush1.bf16.msra.mxu0 %v6779_v31  ;;  %483 = vmatpush1.bf16.msra.mxu1 %v6780_v32 }
  0x84   :  { %775 = vmatprep.subr.bf16.mxu0 %v7643_v33  ;;  %816 = vmatprep.subr.bf16.mxu1 %v7645_v34 }
  0x86   :  { %428 = vmatmul.mubr.bf16.vlgmr.msra.gmra.mxu0 %v6781_v35  ;;  %501 = vmatmul.mubr.bf16.vlgmr.msra.gmra.mxu1 %v6781_v35 }
  0x87   :  { %776 = vmatpush1.bf16.msra.mxu0 %v7647_v36  ;;  %817 = vmatpush1.bf16.msra.mxu1 %v7649_v37 }
  0x88   :  { %777 = vmatprep.subr.bf16.mxu0 %v7653_v38  ;;  %818 = vmatprep.subr.bf16.mxu1 %v7655_v39 }
  0x89   :  { %437 = vmatprep.mubr.bf16.mxu0 %v9006_v0  ;;  %510 = vmatprep.mubr.bf16.mxu1 %v9006_v0 }
  0x8b   :  { %778 = vmatpush1.bf16.msra.mxu0 %v7657_v40  ;;  %819 = vmatpush1.bf16.msra.mxu1 %v7661_v41 }
  0x8c   :  { %779 = vmatprep.subr.bf16.mxu0 %v7665_v42  ;;  %820 = vmatprep.subr.bf16.mxu1 %v7667_v43 }
  0x8e   :  { %438 = vmatmul.mubr.bf16.gmra.mxu0 %v6794_v44  ;;  %511 = vmatmul.mubr.bf16.gmra.mxu1 %v6794_v44 }
  0x8f   :  { %780 = vmatpush1.bf16.msra.mxu0 %v7671_v45  ;;  %821 = vmatpush1.bf16.msra.mxu1 %v7673_v46 }
  0x90   :  { %781 = vmatprep.subr.bf16.mxu0 %v7677_v47  ;;  %822 = vmatprep.subr.bf16.mxu1 %v7681_v48 }
  0x91   :  { %447 = vmatprep.mubr.bf16.mxu0 %v9006_v0  ;;  %520 = vmatprep.mubr.bf16.mxu1 %v9006_v0 }
  0x93   :  { %782 = vmatpush1.bf16.msra.mxu0 %v7683_v49  ;;  %823 = vmatpush1.bf16.msra.mxu1 %v7685_v50 }
  0x94   :  { %783 = vmatprep.subr.bf16.mxu0 %v7689_v51  ;;  %824 = vmatprep.subr.bf16.mxu1 %v7693_v52 }
  0x96   :  { %448 = vmatmul.mubr.bf16.gmra.mxu0 %v6807_v53  ;;  %521 = vmatmul.mubr.bf16.gmra.mxu1 %v6807_v53 }
  0x97   :  { %784 = vmatpush1.bf16.msra.mxu0 %v7697_v54  ;;  %825 = vmatpush1.bf16.msra.mxu1 %v7699_v55 }
  0x98   :  { %785 = vmatprep.subr.bf16.mxu0 %v7701_v56  ;;  %826 = vmatprep.subr.bf16.mxu1 %v7703_v57 }
  0x99   :  { %457 = vmatprep.mubr.bf16.mxu0 %v9006_v0  ;;  %530 = vmatprep.mubr.bf16.mxu1 %v9006_v0 }
  0x9b   :  { %786 = vmatpush1.bf16.msra.mxu0 %v7709_v58  ;;  %827 = vmatpush1.bf16.msra.mxu1 %v7711_v59 }
  0x9c   :  { %787 = vmatprep.subr.bf16.mxu0 %v7713_v60  ;;  %828 = vmatprep.subr.bf16.mxu1 %v7715_v61 }
  0x9e   :  { %458 = vmatmul.mubr.bf16.gmra.mxu0 %v6820_v62  ;;  %531 = vmatmul.mubr.bf16.gmra.mxu1 %v6820_v62 }
  0x9f   :  { %788 = vmatpush1.bf16.msra.mxu0 %v7723_v63  ;;  %829 = vmatpush1.bf16.msra.mxu1 %v7725_v1 }
  0xa0   :  { %789 = vmatprep.subr.bf16.mxu0 %v7727_v2  ;;  %830 = vmatprep.subr.bf16.mxu1 %v7729_v3 }
  0xa1   :  { %807 = vmatprep.mubr.bf16.mxu0 %v9006_v0  ;;  %848 = vmatprep.mubr.bf16.mxu1 %v9006_v0 }
  0xa3   :  { %790 = vmatpush1.bf16.msra.mxu0 %v7735_v4  ;;  %831 = vmatpush1.bf16.msra.mxu1 %v7737_v5 }
  0xa4   :  { %1090 = vmatprep.subr.bf16.mxu0 %v7643_v33  ;;  %1131 = vmatprep.subr.bf16.mxu1 %v7645_v34 }
  0xa6   :  { %808 = vmatmul.mubr.bf16.vlgmr.msra.gmra.mxu0 %v582_v7  ;;  %849 = vmatmul.mubr.bf16.vlgmr.msra.gmra.mxu1 %v582_v7 }
  0xa7   :  { %1091 = vmatpush1.bf16.msra.mxu0 %v7647_v36  ;;  %1132 = vmatpush1.bf16.msra.mxu1 %v7649_v37 }
  0xa8   :  { %1092 = vmatprep.subr.bf16.mxu0 %v7653_v38  ;;  %1133 = vmatprep.subr.bf16.mxu1 %v7655_v39 }
  0xa9   :  { %1122 = vmatprep.mubr.bf16.mxu0 %v9006_v0  ;;  %1163 = vmatprep.mubr.bf16.mxu1 %v9006_v0 }
  0xab   :  { %1093 = vmatpush1.bf16.msra.mxu0 %v7657_v40  ;;  %1134 = vmatpush1.bf16.msra.mxu1 %v7661_v41 }
  0xac   :  { %1094 = vmatprep.subr.bf16.mxu0 %v7665_v42  ;;  %1135 = vmatprep.subr.bf16.mxu1 %v7667_v43 }
  0xaf   :  { %1095 = vmatpush1.bf16.msra.mxu0 %v7671_v45  ;;  %1136 = vmatpush1.bf16.msra.mxu1 %v7673_v46 }
  0xb0   :  { %1096 = vmatprep.subr.bf16.mxu0 %v7677_v47  ;;  %1137 = vmatprep.subr.bf16.mxu1 %v7681_v48 }
  0xb3   :  { %1097 = vmatpush1.bf16.msra.mxu0 %v7683_v49  ;;  %1138 = vmatpush1.bf16.msra.mxu1 %v7685_v50 }
  0xb4   :  { %1098 = vmatprep.subr.bf16.mxu0 %v7689_v51  ;;  %1139 = vmatprep.subr.bf16.mxu1 %v7693_v52 }
  0xb7   :  { %1099 = vmatpush1.bf16.msra.mxu0 %v7697_v54  ;;  %1140 = vmatpush1.bf16.msra.mxu1 %v7699_v55 }
  0xb8   :  { %1100 = vmatprep.subr.bf16.mxu0 %v7701_v56  ;;  %1141 = vmatprep.subr.bf16.mxu1 %v7703_v57 }
  0xbb   :  { %1101 = vmatpush1.bf16.msra.mxu0 %v7709_v58  ;;  %1142 = vmatpush1.bf16.msra.mxu1 %v7711_v59 }
  0xbc   :  { %1102 = vmatprep.subr.bf16.mxu0 %v7713_v60  ;;  %1143 = vmatprep.subr.bf16.mxu1 %v7715_v61 }
  0xbf   :  { %1103 = vmatpush1.bf16.msra.mxu0 %v7723_v63  ;;  %1144 = vmatpush1.bf16.msra.mxu1 %v7725_v1 }
  0xc0   :  { %1104 = vmatprep.subr.bf16.mxu0 %v7727_v2  ;;  %1145 = vmatprep.subr.bf16.mxu1 %v7729_v3 }
  0xc3   :  { %1105 = vmatpush1.bf16.msra.mxu0 %v7735_v4  ;;  %1146 = vmatpush1.bf16.msra.mxu1 %v7737_v5 }
  0xc4   :  { %1406 = vmatprep.subr.bf16.mxu0 %v7643_v33  ;;  %1447 = vmatprep.subr.bf16.mxu1 %v7645_v34 }
 0x146   :  { %v7795_v14 = vpop.f32.mrf.mxu0  ;;  %v7797_v15 = vpop.f32.mrf.mxu1 }
 0x148   :  { %v7804_v18 = vpop.f32.mrf.mxu0  ;;  %v7806_v19 = vpop.f32.mrf.mxu1 }
 0x14a   :  { %v433_v22 = vpop.f32.mrf.mxu0  ;;  %v506_v23 = vpop.f32.mrf.mxu1 }
 0x14b   :  { %v7816_v25 = vadd.f32 %v433_v22, %v194_v20  ;;  %v7819_v26 = vadd.f32 %v506_v23, %v7801_v16 }
 0x14c   :  { %v435_v27 = vpop.f32.mrf.mxu0  ;;  %v508_v28 = vpop.f32.mrf.mxu1 }
 0x14d   :  { %v7821_v29 = vadd.f32 %v435_v27, %v198_v24  ;;  %v7824_v30 = vadd.f32 %v508_v28, %v7812_v21 }
 0x14e   :  { %v439_v31 = vpop.f32.mrf.mxu0  ;;  %v512_v32 = vpop.f32.mrf.mxu1 }
 0x14f   :  { %v7826_v35 = vadd.f32 %v439_v31, %v194_v20  ;;  %v7829_v44 = vadd.f32 %v512_v32, %v7801_v16 }
 0x150   :  { %v441_v53 = vpop.f32.mrf.mxu0  ;;  %v514_v62 = vpop.f32.mrf.mxu1 }
 0x151   :  { %9013 = vst [vmem:[#allocation30_spill] sm:$0xff] %v7829_v44  ;;  %v7831_v7 = vadd.f32 %v441_v53, %v198_v24  ;;  %v7834_v8 = vadd.f32 %v514_v62, %v7812_v21 }
 0x152   :  { %v443_v13 = vpop.f32.mrf.mxu0  ;;  %v516_v22 = vpop.f32.mrf.mxu1 }
 0x153   :  { %9014 = vst [vmem:[#allocation31_spill] sm:$0xff] %v7834_v8  ;;  %v7836_v23 = vadd.f32 %v443_v13, %v194_v20  ;;  %v7839_v27 = vadd.f32 %v516_v22, %v7801_v16 }
 0x154   :  { %v445_v28 = vpop.f32.mrf.mxu0  ;;  %v518_v31 = vpop.f32.mrf.mxu1 }
 0x155   :  { %9015 = vst [vmem:[#allocation32_spill] sm:$0xff] %v7836_v23  ;;  %9016 = vst [vmem:[#allocation33_spill] sm:$0xff] %v7839_v27  ;;  %v7841_v10 = vadd.f32 %v445_v28, %v198_v24  ;;  %v7844_v32 = vadd.f32 %v518_v31, %v7812_v21 }
 0x156   :  { %v449_v12 = vpop.f32.mrf.mxu0  ;;  %v522_v53 = vpop.f32.mrf.mxu1 }
 0x157   :  { %9017 = vst [vmem:[#allocation34_spill] sm:$0xff] %v7841_v10  ;;  %9018 = vst [vmem:[#allocation35_spill] sm:$0xff] %v7844_v32  ;;  %v7846_v17 = vadd.f32 %v449_v12, %v194_v20  ;;  %v7849_v62 = vadd.f32 %v522_v53, %v7801_v16 }
 0x158   :  { %v451_v11 = vpop.f32.mrf.mxu0  ;;  %v524_v13 = vpop.f32.mrf.mxu1 }
 0x159   :  { %9019 = vst [vmem:[#allocation36_spill] sm:$0xff] %v7846_v17  ;;  %9020 = vst [vmem:[#allocation37_spill] sm:$0xff] %v7849_v62  ;;  %v7851_v0 = vadd.f32 %v451_v11, %v198_v24  ;;  %v7854_v22 = vadd.f32 %v524_v13, %v7812_v21 }
 0x15a   :  { %v453_v9 = vpop.f32.mrf.mxu0  ;;  %v526_v28 = vpop.f32.mrf.mxu1 }
 0x15b   :  { %9021 = vst [vmem:[#allocation38_spill] sm:$0xff] %v7851_v0  ;;  %9022 = vst [vmem:[#allocation39_spill] sm:$0xff] %v7854_v22  ;;  %v7856_v27 = vadd.f32 %v453_v9, %v194_v20  ;;  %v7859_v31 = vadd.f32 %v526_v28, %v7801_v16 }
 0x15c   :  { %v455_v32 = vpop.f32.mrf.mxu0  ;;  %v528_v12 = vpop.f32.mrf.mxu1 }
 0x15d   :  { %9023 = vst [vmem:[#allocation40_spill] sm:$0xff] %v7856_v27  ;;  %9024 = vst [vmem:[#allocation41_spill] sm:$0xff] %v7859_v31  ;;  %v7861_v17 = vadd.f32 %v455_v32, %v198_v24  ;;  %v7864_v53 = vadd.f32 %v528_v12, %v7812_v21 }
 0x15e   :  { %v459_v62 = vpop.f32.mrf.mxu0  ;;  %v532_v11 = vpop.f32.mrf.mxu1 }
 0x15f   :  { %9025 = vst [vmem:[#allocation42_spill] sm:$0xff] %v7861_v17  ;;  %9026 = vst [vmem:[#allocation43_spill] sm:$0xff] %v7864_v53  ;;  %v7866_v0 = vadd.f32 %v459_v62, %v194_v20  ;;  %v7869_v13 = vadd.f32 %v532_v11, %v7801_v16 }
 0x160   :  { %v461_v22 = vpop.f32.mrf.mxu0  ;;  %v534_v9 = vpop.f32.mrf.mxu1 }
 0x161   :  { %9027 = vst [vmem:[#allocation44_spill] sm:$0xff] %v7866_v0  ;;  %9028 = vst [vmem:[#allocation45_spill] sm:$0xff] %v7869_v13  ;;  %v7871_v27 = vadd.f32 %v461_v22, %v198_v24  ;;  %v7874_v28 = vadd.f32 %v534_v9, %v7812_v21  ;;  %v430_v0 = vadd.f32 %v7795_v14, %v194_v20 }
 0x162   :  { %v463_v31 = vpop.f32.mrf.mxu0  ;;  %v536_v32 = vpop.f32.mrf.mxu1  ;;  %v432_v9 = vadd.f32 %v7804_v18, %v198_v24 }
 0x163   :  { %9029 = vst [vmem:[#allocation46_spill] sm:$0xff] %v7871_v27  ;;  %9030 = vst [vmem:[#allocation47_spill] sm:$0xff] %v7874_v28  ;;  %v7876_v17 = vadd.f32 %v463_v31, %v194_v20  ;;  %v7879_v12 = vadd.f32 %v536_v32, %v7801_v16  ;;  %v505_v20 = vadd.f32 %v7806_v19, %v7812_v21 }
 0x164   :  { %v465_v53 = vpop.f32.mrf.mxu0  ;;  %v538_v62 = vpop.f32.mrf.mxu1 }
 0x165   :  { %9031 = vst [vmem:[#allocation48_spill] sm:$0xff] %v7876_v17  ;;  %9032 = vst [vmem:[#allocation49_spill] sm:$0xff] %v7879_v12  ;;  %v7882_v11 = vadd.f32 %v465_v53, %v198_v24  ;;  %v7885_v13 = vadd.f32 %v538_v62, %v7812_v21  ;;  %v503_v62 = vadd.f32 %v7797_v15, %v7801_v16 }
 0x166   :  { %v809_v22 = vpop.f32.mrf.mxu0  ;;  %v850_v27 = vpop.f32.mrf.mxu1 }
 0x167   :  { %v857_v28 = vadd.f32 %v809_v22, %v430_v0  ;;  %v859_v24 = vadd.f32 %v850_v27, %v503_v62  ;;  %v9033_v62 = vmov 0  }
 0x168   :  { %v811_v10 = vpop.f32.mrf.mxu0  ;;  %v852_v31 = vpop.f32.mrf.mxu1 }
 0x169   :  { %v6131_v17 = vmul.f32 -1.442695, %v857_v28  ;;  %v858_v23 = vadd.f32 %v811_v10, %v432_v9  ;;  %v860_v53 = vadd.f32 %v852_v31, %v505_v20 }
 0x16a   :  { %v813_v32 = vpop.f32.mrf.mxu0  ;;  %v854_v12 = vpop.f32.mrf.mxu1 }
 0x16b   :  { %7025 = vpow2.f32 %v6131_v17  ;;  %v6132_v44 = vmul.f32 -1.442695, %v858_v23  ;;  %v6133_v18 = vmul.f32 -1.442695, %v860_v53  ;;  %v7892_v12 = vld [vmem:[#allocation7] sm:$0xff] }
 0x16c   :  { %v814_v8 = vpop.f32.mrf.mxu0  ;;  %v855_v14 = vpop.f32.mrf.mxu1  ;;  %vm885_vm0 = vcmp.gt.s32.totalorder %v7892_v12, 0  ;;  %vm1200_vm1 = vcmp.gt.s32.totalorder %v7892_v12, 1  ;;  %vm1516_vm2 = vcmp.gt.s32.totalorder %v7892_v12, 2  ;;  %vm1832_vm3 = vcmp.gt.s32.totalorder %v7892_v12, 3 }
 0x16d   :  { %7027 = vpow2.f32 %v6132_v44  ;;  %v574_v44 = vld [vmem:[#allocation10] sm:$0xff]  ;;  %vm2148_vm4 = vcmp.gt.s32.totalorder %v7892_v12, 4  ;;  %vm2464_vm5 = vcmp.gt.s32.totalorder %v7892_v12, 5  ;;  %vm2780_vm6 = vcmp.gt.s32.totalorder %v7892_v12, 6  ;;  %vm6691_vm7 = vmpackc.low %vm1200_vm1, %vm885_vm0 }
 0x16e   :  { %7029 = vpow2.f32 %v6133_v18  ;;  %vm6694_vm8 = vmpackc.low %vm1832_vm3, %vm1516_vm2 }
 0x16f   :  { %vm6697_vm9 = vmpackc.low %vm2464_vm5, %vm2148_vm4 }
 0x178   :  { %v7026_v0 = vpop.eup %7025 }
 0x179   :  { %v864_v22 = vadd.f32 1.0, %v7026_v0 }
 0x17a   :  { %v7028_v28 = vpop.eup %7027 }
 0x17b   :  { %7031 = vrcp.f32 %v864_v22  ;;  %v870_v10 = vadd.f32 1.0, %v7028_v28  ;;  %v7030_v17 = vpop.eup %7029 }
 0x17c   :  { %7033 = vtanh.f32 %v859_v24  ;;  %v877_v21 = vadd.f32 1.0, %v7030_v17 }
 0x17d   :  { %7035 = vrcp.f32 %v870_v10 }
 0x17e   :  { %7037 = vrcp.f32 %v877_v21 }
 0x188   :  { %v7032_v8 = vpop.eup %7031 }
 0x189   :  { %v7034_v23 = vpop.eup %7033 }
 0x18a   :  { %v7036_v19 = vpop.eup %7035  ;;  %v881_v9 = vmul.f32 %v7034_v23, %v7032_v8 }
 0x18b   :  { %v880_v15 = vmul.f32 %v7036_v19, %v574_v44  ;;  %v7038_v31 = vpop.eup %7037 }
 0x18d   :  { %v882_v16 = vadd.f32 %v881_v9, %v880_v15 }
 0x18f   :  { %7039 = vtanh.f32 %v882_v16  ;;  %v7897_v27 = vsel %vm885_vm0, %v882_v16, %v574_v44 }
 0x19c   :  { %v7040_v32 = vpop.eup %7039 }
 0x19d   :  { %v7899_v14 = vmul.f32 %v7040_v32, %v7038_v31 }
 0x19f   :  { %v7905_v20 = vsel %vm885_vm0, %v7899_v14, %v7739_v6 }
 0x1a0   :  { %v897_v53 = vpack.c.bf16 %v7905_v20, %v7905_v20 }
 0x1a2   :  { %1123 = vmatmul.mubr.bf16.vlgmr.msra.gmra.mxu0 %v897_v53  ;;  %1164 = vmatmul.mubr.bf16.vlgmr.msra.gmra.mxu1 %v897_v53 }
 0x1a3   :  { %1407 = vmatpush1.bf16.msra.mxu0 %v7647_v36  ;;  %1448 = vmatpush1.bf16.msra.mxu1 %v7649_v37 }
 0x1a4   :  { %1408 = vmatprep.subr.bf16.mxu0 %v7653_v38  ;;  %1449 = vmatprep.subr.bf16.mxu1 %v7655_v39 }
 0x1a5   :  { %1438 = vmatprep.mubr.bf16.mxu0 %v9033_v62  ;;  %1479 = vmatprep.mubr.bf16.mxu1 %v9033_v62 }
 0x1a7   :  { %1409 = vmatpush1.bf16.msra.mxu0 %v7657_v40  ;;  %1450 = vmatpush1.bf16.msra.mxu1 %v7661_v41 }
 0x1a8   :  { %1410 = vmatprep.subr.bf16.mxu0 %v7665_v42  ;;  %1451 = vmatprep.subr.bf16.mxu1 %v7667_v43 }
 0x1ab   :  { %1411 = vmatpush1.bf16.msra.mxu0 %v7671_v45  ;;  %1452 = vmatpush1.bf16.msra.mxu1 %v7673_v46 }
 0x1ac   :  { %1412 = vmatprep.subr.bf16.mxu0 %v7677_v47  ;;  %1453 = vmatprep.subr.bf16.mxu1 %v7681_v48 }
 0x1af   :  { %1413 = vmatpush1.bf16.msra.mxu0 %v7683_v49  ;;  %1454 = vmatpush1.bf16.msra.mxu1 %v7685_v50 }
 0x1b0   :  { %1414 = vmatprep.subr.bf16.mxu0 %v7689_v51  ;;  %1455 = vmatprep.subr.bf16.mxu1 %v7693_v52 }
 0x1b3   :  { %1415 = vmatpush1.bf16.msra.mxu0 %v7697_v54  ;;  %1456 = vmatpush1.bf16.msra.mxu1 %v7699_v55 }
 0x1b4   :  { %1416 = vmatprep.subr.bf16.mxu0 %v7701_v56  ;;  %1457 = vmatprep.subr.bf16.mxu1 %v7703_v57 }
 0x1b7   :  { %1417 = vmatpush1.bf16.msra.mxu0 %v7709_v58  ;;  %1458 = vmatpush1.bf16.msra.mxu1 %v7711_v59 }
 0x1b8   :  { %1418 = vmatprep.subr.bf16.mxu0 %v7713_v60  ;;  %1459 = vmatprep.subr.bf16.mxu1 %v7715_v61 }
 0x1bb   :  { %1419 = vmatpush1.bf16.msra.mxu0 %v7723_v63  ;;  %1460 = vmatpush1.bf16.msra.mxu1 %v7725_v1 }
 0x1bc   :  { %1420 = vmatprep.subr.bf16.mxu0 %v7727_v2  ;;  %1461 = vmatprep.subr.bf16.mxu1 %v7729_v3 }
 0x1bf   :  { %1421 = vmatpush1.bf16.msra.mxu0 %v7735_v4  ;;  %1462 = vmatpush1.bf16.msra.mxu1 %v7737_v5 }
 0x1c0   :  { %1722 = vmatprep.subr.bf16.mxu0 %v7643_v33  ;;  %1763 = vmatprep.subr.bf16.mxu1 %v7645_v34 }
 0x262   :  { %v1124_v6 = vpop.f32.mrf.mxu0  ;;  %v1165_v18 = vpop.f32.mrf.mxu1 }
 0x263   :  { %v1172_v0 = vadd.f32 %v1124_v6, %v7816_v25  ;;  %v1174_v34 = vadd.f32 %v1165_v18, %v7819_v26 }
 0x264   :  { %v1126_v24 = vpop.f32.mrf.mxu0  ;;  %v1167_v22 = vpop.f32.mrf.mxu1 }
 0x265   :  { %v6166_v28 = vmul.f32 -1.442695, %v1172_v0  ;;  %v1173_v10 = vadd.f32 %v1126_v24, %v7821_v29  ;;  %v1175_v33 = vadd.f32 %v1167_v22, %v7824_v30 }
 0x266   :  { %v1128_v17 = vpop.f32.mrf.mxu0  ;;  %v1169_v8 = vpop.f32.mrf.mxu1 }
 0x267   :  { %7041 = vpow2.f32 %v6166_v28  ;;  %v6167_v44 = vmul.f32 -1.442695, %v1173_v10  ;;  %v6168_v21 = vmul.f32 -1.442695, %v1175_v33  ;;  %v8025_v33 = vld [vmem:[#allocation13 + $0xe8] ss:$16 sps:$4 sm:$0xff]  }
 0x268   :  { %v1129_v23 = vpop.f32.mrf.mxu0  ;;  %v1170_v19 = vpop.f32.mrf.mxu1 }
 0x269   :  { %7043 = vpow2.f32 %v6167_v44  ;;  %v8019_v44 = vld [vmem:[#allocation13 + $0xe4] ss:$16 sps:$4 sm:$0xff]   ;;  %v8021_v23 = vld [vmem:[#allocation13 + $0xec] ss:$16 sps:$4 sm:$0xff]   ;;  %v8023_v19 = vld [vmem:[#allocation13 + $0xe0] ss:$16 sps:$4 sm:$0xff]  }
 0x26a   :  { %7045 = vtanh.f32 %v1174_v34  ;;  %v8031_v34 = vld [vmem:[#allocation13 + $0xc4] ss:$16 sps:$4 sm:$0xff]  }
 0x26b   :  { %7047 = vpow2.f32 %v6168_v21  ;;  %v8033_v21 = vld [vmem:[#allocation13 + $0xcc] ss:$16 sps:$4 sm:$0xff]  }
 0x274   :  { %v7042_v9 = vpop.eup %7041 }
 0x275   :  { %v1179_v15 = vadd.f32 1.0, %v7042_v9  ;;  %v8035_v9 = vld [vmem:[#allocation13 + $0xc0] ss:$16 sps:$4 sm:$0xff]  }
 0x276   :  { %v7044_v25 = vpop.eup %7043 }
 0x277   :  { %7049 = vrcp.f32 %v1179_v15  ;;  %v1185_v16 = vadd.f32 1.0, %v7044_v25  ;;  %v7046_v29 = vpop.eup %7045  ;;  %v8037_v15 = vld [vmem:[#allocation13 + $0xc8] ss:$16 sps:$4 sm:$0xff]   ;;  %v8043_v25 = vld [vmem:[#allocation13 + $0xa4] ss:$16 sps:$4 sm:$0xff]  }
 0x278   :  { %v7048_v31 = vpop.eup %7047 }
 0x279   :  { %7051 = vrcp.f32 %v1185_v16  ;;  %v1192_v0 = vadd.f32 1.0, %v7048_v31  ;;  %v8045_v16 = vld [vmem:[#allocation13 + $0xac] ss:$16 sps:$4 sm:$0xff]   ;;  %v8049_v31 = vld [vmem:[#allocation13 + $0xa8] ss:$16 sps:$4 sm:$0xff]  }
 0x27b   :  { %7053 = vrcp.f32 %v1192_v0  ;;  %v8061_v0 = vld [vmem:[#allocation13 + $0x88] ss:$16 sps:$4 sm:$0xff]  }
 0x284   :  { %v7050_v32 = vpop.eup %7049 }
 0x285   :  { %v1196_v53 = vmul.f32 %v7050_v32, %v7046_v29  ;;  %v8047_v29 = vld [vmem:[#allocation13 + $0xa0] ss:$16 sps:$4 sm:$0xff]   ;;  %v8055_v32 = vld [vmem:[#allocation13 + $0x84] ss:$16 sps:$4 sm:$0xff]  }
 0x286   :  { %v7052_v6 = vpop.eup %7051 }
 0x287   :  { %v1195_v24 = vmul.f32 %v7052_v6, %v7897_v27  ;;  %v8059_v6 = vld [vmem:[#allocation13 + $0x80] ss:$16 sps:$4 sm:$0xff]  }
 0x288   :  { %v7054_v18 = vpop.eup %7053 }
 0x289   :  { %v1197_v26 = vadd.f32 %v1196_v53, %v1195_v24  ;;  %v8057_v53 = vld [vmem:[#allocation13 + $0x8c] ss:$16 sps:$4 sm:$0xff]   ;;  %v8065_v24 = vld [vmem:[#allocation13 + $0x64] ss:$16 sps:$4 sm:$0xff]  }
 0x28b   :  { %7055 = vtanh.f32 %v1197_v26  ;;  %v7952_v30 = vsel %vm1200_vm1, %v1197_v26, %v7897_v27  ;;  %v8069_v26 = vld [vmem:[#allocation13 + $0x60] ss:$16 sps:$4 sm:$0xff]  }
 0x298   :  { %v7056_v22 = vpop.eup %7055 }
 0x299   :  { %v7954_v28 = vmul.f32 %v7056_v22, %v7054_v18  ;;  %v8073_v18 = vld [vmem:[#allocation13 + $0x6c] ss:$16 sps:$4 sm:$0xff]   ;;  %v8076_v22 = vld [vmem:[#allocation13 + $0x44] ss:$16 sps:$4 sm:$0xff]  }
 0x29b   :  { %v7960_v10 = vsel %vm1200_vm1, %v7954_v28, %v7905_v20 }
 0x29c   :  { %v1213_v17 = vpack.c.bf16 %v7960_v10, %v7960_v10 }
 0x29e   :  { %1439 = vmatmul.mubr.bf16.vlgmr.msra.gmra.mxu0 %v1213_v17  ;;  %1480 = vmatmul.mubr.bf16.vlgmr.msra.gmra.mxu1 %v1213_v17  ;;  %v8083_v17 = vld [vmem:[#allocation13 + $0x40] ss:$16 sps:$4 sm:$0xff]  }
 0x29f   :  { %1723 = vmatpush1.bf16.msra.mxu0 %v7647_v36  ;;  %1764 = vmatpush1.bf16.msra.mxu1 %v7649_v37 }
 0x2a0   :  { %1724 = vmatprep.subr.bf16.mxu0 %v7653_v38  ;;  %1765 = vmatprep.subr.bf16.mxu1 %v7655_v39 }
 0x2a1   :  { %1754 = vmatprep.mubr.bf16.mxu0 %v9033_v62  ;;  %1795 = vmatprep.mubr.bf16.mxu1 %v9033_v62 }
 0x2a3   :  { %1725 = vmatpush1.bf16.msra.mxu0 %v7657_v40  ;;  %1766 = vmatpush1.bf16.msra.mxu1 %v7661_v41 }
 0x2a4   :  { %1726 = vmatprep.subr.bf16.mxu0 %v7665_v42  ;;  %1767 = vmatprep.subr.bf16.mxu1 %v7667_v43 }
 0x2a7   :  { %1727 = vmatpush1.bf16.msra.mxu0 %v7671_v45  ;;  %1768 = vmatpush1.bf16.msra.mxu1 %v7673_v46 }
 0x2a8   :  { %1728 = vmatprep.subr.bf16.mxu0 %v7677_v47  ;;  %1769 = vmatprep.subr.bf16.mxu1 %v7681_v48 }
 0x2ab   :  { %1729 = vmatpush1.bf16.msra.mxu0 %v7683_v49  ;;  %1770 = vmatpush1.bf16.msra.mxu1 %v7685_v50  ;;  %v9034_v49 = vld [vmem:[#allocation31_spill] sm:$0xff] }
 0x2ac   :  { %1730 = vmatprep.subr.bf16.mxu0 %v7689_v51  ;;  %1771 = vmatprep.subr.bf16.mxu1 %v7693_v52  ;;  %v9035_v51 = vld [vmem:[#allocation30_spill] sm:$0xff] }
 0x2af   :  { %1731 = vmatpush1.bf16.msra.mxu0 %v7697_v54  ;;  %1772 = vmatpush1.bf16.msra.mxu1 %v7699_v55 }
 0x2b0   :  { %1732 = vmatprep.subr.bf16.mxu0 %v7701_v56  ;;  %1773 = vmatprep.subr.bf16.mxu1 %v7703_v57 }
 0x2b3   :  { %1733 = vmatpush1.bf16.msra.mxu0 %v7709_v58  ;;  %1774 = vmatpush1.bf16.msra.mxu1 %v7711_v59 }
 0x2b4   :  { %1734 = vmatprep.subr.bf16.mxu0 %v7713_v60  ;;  %1775 = vmatprep.subr.bf16.mxu1 %v7715_v61 }
 0x2b7   :  { %1735 = vmatpush1.bf16.msra.mxu0 %v7723_v63  ;;  %1776 = vmatpush1.bf16.msra.mxu1 %v7725_v1 }
 0x2b8   :  { %1736 = vmatprep.subr.bf16.mxu0 %v7727_v2  ;;  %1777 = vmatprep.subr.bf16.mxu1 %v7729_v3 }
 0x2bb   :  { %1737 = vmatpush1.bf16.msra.mxu0 %v7735_v4  ;;  %1778 = vmatpush1.bf16.msra.mxu1 %v7737_v5 }
 0x2bc   :  { %2038 = vmatprep.subr.bf16.mxu0 %v8019_v44  ;;  %2079 = vmatprep.subr.bf16.mxu1 %v8021_v23 }
 0x35e   :  { %v1440_v36 = vpop.f32.mrf.mxu0  ;;  %v1481_v37 = vpop.f32.mrf.mxu1 }
 0x35f   :  { %v1488_v38 = vadd.f32 %v1440_v36, %v7826_v35  ;;  %v1490_v52 = vadd.f32 %v1481_v37, %v9035_v51  ;;  %v8085_v36 = vld [vmem:[#allocation13 + $0x48] ss:$16 sps:$4 sm:$0xff]   ;;  %v8089_v37 = vld [vmem:[#allocation13 + $0x24] ss:$16 sps:$4 sm:$0xff]  }
 0x360   :  { %v1442_v39 = vpop.f32.mrf.mxu0  ;;  %v1483_v40 = vpop.f32.mrf.mxu1 }
 0x361   :  { %v6201_v41 = vmul.f32 -1.442695, %v1488_v38  ;;  %v1489_v42 = vadd.f32 %v1442_v39, %v7831_v7  ;;  %v1491_v50 = vadd.f32 %v1483_v40, %v9034_v49  ;;  %v8091_v38 = vld [vmem:[#allocation13 + $0x2c] ss:$16 sps:$4 sm:$0xff]   ;;  %v8095_v39 = vld [vmem:[#allocation13 + $0x20] ss:$16 sps:$4 sm:$0xff]  }
 0x362   :  { %v1444_v43 = vpop.f32.mrf.mxu0  ;;  %v1485_v45 = vpop.f32.mrf.mxu1  ;;  %v8097_v40 = vld [vmem:[#allocation13 + $0x28] ss:$16 sps:$4 sm:$0xff]  }
 0x363   :  { %7057 = vpow2.f32 %v6201_v41  ;;  %v6202_v46 = vmul.f32 -1.442695, %v1489_v42  ;;  %v6203_v54 = vmul.f32 -1.442695, %v1491_v50  ;;  %v8101_v41 = vld [vmem:[#allocation13 + $0x4] ss:$16 sps:$4 sm:$0xff]  }
 0x364   :  { %v1445_v47 = vpop.f32.mrf.mxu0  ;;  %v1486_v48 = vpop.f32.mrf.mxu1  ;;  %v8103_v42 = vld [vmem:[#allocation13 + $0xc] ss:$16 sps:$4 sm:$0xff]   ;;  %v8107_v43 = vld [vmem:[#allocation13] ss:$16 sps:$4 sm:$0xff]   ;;  %v8109_v45 = vld [vmem:[#allocation13 + $0x8] ss:$16 sps:$4 sm:$0xff]  }
 0x365   :  { %7059 = vpow2.f32 %v6202_v46  ;;  %v9036_v48 = vld [vmem:[#allocation32_spill] sm:$0xff] }
 0x366   :  { %7061 = vtanh.f32 %v1490_v52 }
 0x367   :  { %7063 = vpow2.f32 %v6203_v54  ;;  %v9037_v54 = vld [vmem:[#allocation34_spill] sm:$0xff] }
 0x370   :  { %v7058_v55 = vpop.eup %7057 }
 0x371   :  { %v1495_v56 = vadd.f32 1.0, %v7058_v55 }
 0x372   :  { %v7060_v57 = vpop.eup %7059 }
 0x373   :  { %7065 = vrcp.f32 %v1495_v56  ;;  %v1501_v58 = vadd.f32 1.0, %v7060_v57  ;;  %v7062_v59 = vpop.eup %7061 }
 0x374   :  { %v7064_v60 = vpop.eup %7063 }
 0x375   :  { %7067 = vrcp.f32 %v1501_v58  ;;  %v1508_v2 = vadd.f32 1.0, %v7064_v60 }
 0x377   :  { %7069 = vrcp.f32 %v1508_v2 }
 0x380   :  { %v7066_v61 = vpop.eup %7065 }
 0x381   :  { %v1512_v63 = vmul.f32 %v7066_v61, %v7062_v59  ;;  %v9038_v61 = vld [vmem:[#allocation35_spill] sm:$0xff] }
 0x382   :  { %v7068_v1 = vpop.eup %7067 }
 0x383   :  { %v1511_v3 = vmul.f32 %v7068_v1, %v7952_v30  ;;  %v9039_v1 = vld [vmem:[#allocation33_spill] sm:$0xff] }
 0x384   :  { %v7070_v35 = vpop.eup %7069 }
 0x385   :  { %v1513_v4 = vadd.f32 %v1512_v63, %v1511_v3 }
 0x387   :  { %7071 = vtanh.f32 %v1513_v4  ;;  %v8005_v5 = vsel %vm1516_vm2, %v1513_v4, %v7952_v30  ;;  %v8071_v30 = vld [vmem:[#allocation13 + $0x68] ss:$16 sps:$4 sm:$0xff]  }
 0x394   :  { %v7072_v7 = vpop.eup %7071 }
 0x395   :  { %v8007_v27 = vmul.f32 %v7072_v7, %v7070_v35 }
 0x397   :  { %v8013_v20 = vsel %vm1516_vm2, %v8007_v27, %v7960_v10  ;;  %v8078_v10 = vld [vmem:[#allocation13 + $0x4c] ss:$16 sps:$4 sm:$0xff]  }
 0x398   :  { %v1529_v8 = vpack.c.bf16 %v8013_v20, %v8013_v20 }
 0x39a   :  { %1755 = vmatmul.mubr.bf16.vlgmr.msra.gmra.mxu0 %v1529_v8  ;;  %1796 = vmatmul.mubr.bf16.vlgmr.msra.gmra.mxu1 %v1529_v8 }
 0x39b   :  { %2070 = vmatprep.mubr.bf16.mxu0 %v9033_v62  ;;  %2111 = vmatprep.mubr.bf16.mxu1 %v9033_v62 }
 0x39c   :  { %2039 = vmatpush1.bf16.msra.mxu0 %v8023_v19  ;;  %2080 = vmatpush1.bf16.msra.mxu1 %v8025_v33 }
 0x39d   :  { %2040 = vmatprep.subr.bf16.mxu0 %v8031_v34  ;;  %2081 = vmatprep.subr.bf16.mxu1 %v8033_v21 }
 0x3a0   :  { %2041 = vmatpush1.bf16.msra.mxu0 %v8035_v9  ;;  %2082 = vmatpush1.bf16.msra.mxu1 %v8037_v15 }
 0x3a1   :  { %2042 = vmatprep.subr.bf16.mxu0 %v8043_v25  ;;  %2083 = vmatprep.subr.bf16.mxu1 %v8045_v16 }
 0x3a4   :  { %2043 = vmatpush1.bf16.msra.mxu0 %v8047_v29  ;;  %2084 = vmatpush1.bf16.msra.mxu1 %v8049_v31 }
 0x3a5   :  { %2044 = vmatprep.subr.bf16.mxu0 %v8055_v32  ;;  %2085 = vmatprep.subr.bf16.mxu1 %v8057_v53 }
 0x3a8   :  { %2045 = vmatpush1.bf16.msra.mxu0 %v8059_v6  ;;  %2086 = vmatpush1.bf16.msra.mxu1 %v8061_v0 }
 0x3a9   :  { %2046 = vmatprep.subr.bf16.mxu0 %v8065_v24  ;;  %2087 = vmatprep.subr.bf16.mxu1 %v8073_v18 }
 0x3ac   :  { %2047 = vmatpush1.bf16.msra.mxu0 %v8069_v26  ;;  %2088 = vmatpush1.bf16.msra.mxu1 %v8071_v30 }
 0x3ad   :  { %2048 = vmatprep.subr.bf16.mxu0 %v8076_v22  ;;  %2089 = vmatprep.subr.bf16.mxu1 %v8078_v10 }
 0x3b0   :  { %2049 = vmatpush1.bf16.msra.mxu0 %v8083_v17  ;;  %2090 = vmatpush1.bf16.msra.mxu1 %v8085_v36 }
 0x3b1   :  { %2050 = vmatprep.subr.bf16.mxu0 %v8089_v37  ;;  %2091 = vmatprep.subr.bf16.mxu1 %v8091_v38 }
 0x3b4   :  { %2051 = vmatpush1.bf16.msra.mxu0 %v8095_v39  ;;  %2092 = vmatpush1.bf16.msra.mxu1 %v8097_v40 }
 0x3b5   :  { %2052 = vmatprep.subr.bf16.mxu0 %v8101_v41  ;;  %2093 = vmatprep.subr.bf16.mxu1 %v8103_v42 }
 0x3b8   :  { %2053 = vmatpush1.bf16.msra.mxu0 %v8107_v43  ;;  %2094 = vmatpush1.bf16.msra.mxu1 %v8109_v45 }
 0x3b9   :  { %2354 = vmatprep.subr.bf16.mxu0 %v8019_v44  ;;  %2395 = vmatprep.subr.bf16.mxu1 %v8021_v23 }
 0x45a   :  { %v1756_v46 = vpop.f32.mrf.mxu0  ;;  %v1797_v47 = vpop.f32.mrf.mxu1 }
 0x45b   :  { %v1804_v49 = vadd.f32 %v1756_v46, %v9036_v48  ;;  %v1806_v2 = vadd.f32 %v1797_v47, %v9039_v1 }
 0x45c   :  { %v1758_v50 = vpop.f32.mrf.mxu0  ;;  %v1799_v51 = vpop.f32.mrf.mxu1 }
 0x45d   :  { %v6236_v52 = vmul.f32 -1.442695, %v1804_v49  ;;  %v1805_v55 = vadd.f32 %v1758_v50, %v9037_v54  ;;  %v1807_v63 = vadd.f32 %v1799_v51, %v9038_v61  ;;  %v9040_v61 = vld [vmem:[#allocation36_spill] sm:$0xff] }
 0x45e   :  { %v1760_v56 = vpop.f32.mrf.mxu0  ;;  %v1801_v57 = vpop.f32.mrf.mxu1 }
 0x45f   :  { %7073 = vpow2.f32 %v6236_v52  ;;  %v6237_v58 = vmul.f32 -1.442695, %v1805_v55  ;;  %v6238_v3 = vmul.f32 -1.442695, %v1807_v63 }
 0x460   :  { %v1761_v59 = vpop.f32.mrf.mxu0  ;;  %v1802_v60 = vpop.f32.mrf.mxu1 }
 0x461   :  { %7075 = vpow2.f32 %v6237_v58 }
 0x462   :  { %7077 = vtanh.f32 %v1806_v2 }
 0x463   :  { %7079 = vpow2.f32 %v6238_v3 }
 0x46c   :  { %v7074_v4 = vpop.eup %7073 }
 0x46d   :  { %v1811_v35 = vadd.f32 1.0, %v7074_v4  ;;  %v9041_v4 = vld [vmem:[#allocation38_spill] sm:$0xff] }
 0x46e   :  { %v7076_v7 = vpop.eup %7075 }
 0x46f   :  { %7081 = vrcp.f32 %v1811_v35  ;;  %v1817_v8 = vadd.f32 1.0, %v7076_v7  ;;  %v7078_v46 = vpop.eup %7077 }
 0x470   :  { %v7080_v48 = vpop.eup %7079 }
 0x471   :  { %7083 = vrcp.f32 %v1817_v8  ;;  %v1824_v54 = vadd.f32 1.0, %v7080_v48 }
 0x473   :  { %7085 = vrcp.f32 %v1824_v54  ;;  %v9043_v54 = vld [vmem:[#allocation37_spill] sm:$0xff] }
 0x47c   :  { %v7082_v49 = vpop.eup %7081 }
 0x47d   :  { %v1828_v50 = vmul.f32 %v7082_v49, %v7078_v46 }
 0x47e   :  { %v7084_v52 = vpop.eup %7083 }
 0x47f   :  { %v1827_v55 = vmul.f32 %v7084_v52, %v8005_v5 }
 0x480   :  { %v7086_v56 = vpop.eup %7085 }
 0x481   :  { %v1829_v47 = vadd.f32 %v1828_v50, %v1827_v55  ;;  %v9042_v50 = vld [vmem:[#allocation39_spill] sm:$0xff] }
 0x483   :  { %7087 = vtanh.f32 %v1829_v47  ;;  %v8126_v51 = vsel %vm1832_vm3, %v1829_v47, %v8005_v5 }
 0x490   :  { %v7088_v57 = vpop.eup %7087 }
 0x491   :  { %v8128_v58 = vmul.f32 %v7088_v57, %v7086_v56 }
 0x493   :  { %v8134_v59 = vsel %vm1832_vm3, %v8128_v58, %v8013_v20 }
 0x494   :  { %v1845_v60 = vpack.c.bf16 %v8134_v59, %v8134_v59 }
 0x496   :  { %2071 = vmatmul.mubr.bf16.vlgmr.msra.gmra.mxu0 %v1845_v60  ;;  %2112 = vmatmul.mubr.bf16.vlgmr.msra.gmra.mxu1 %v1845_v60 }
 0x497   :  { %2355 = vmatpush1.bf16.msra.mxu0 %v8023_v19  ;;  %2396 = vmatpush1.bf16.msra.mxu1 %v8025_v33 }
 0x498   :  { %2356 = vmatprep.subr.bf16.mxu0 %v8031_v34  ;;  %2397 = vmatprep.subr.bf16.mxu1 %v8033_v21 }
 0x499   :  { %2386 = vmatprep.mubr.bf16.mxu0 %v9033_v62  ;;  %2427 = vmatprep.mubr.bf16.mxu1 %v9033_v62 }
 0x49b   :  { %2357 = vmatpush1.bf16.msra.mxu0 %v8035_v9  ;;  %2398 = vmatpush1.bf16.msra.mxu1 %v8037_v15 }
 0x49c   :  { %2358 = vmatprep.subr.bf16.mxu0 %v8043_v25  ;;  %2399 = vmatprep.subr.bf16.mxu1 %v8045_v16 }
 0x49f   :  { %2359 = vmatpush1.bf16.msra.mxu0 %v8047_v29  ;;  %2400 = vmatpush1.bf16.msra.mxu1 %v8049_v31 }
 0x4a0   :  { %2360 = vmatprep.subr.bf16.mxu0 %v8055_v32  ;;  %2401 = vmatprep.subr.bf16.mxu1 %v8057_v53 }
 0x4a3   :  { %2361 = vmatpush1.bf16.msra.mxu0 %v8059_v6  ;;  %2402 = vmatpush1.bf16.msra.mxu1 %v8061_v0 }
 0x4a4   :  { %2362 = vmatprep.subr.bf16.mxu0 %v8065_v24  ;;  %2403 = vmatprep.subr.bf16.mxu1 %v8073_v18 }
 0x4a7   :  { %2363 = vmatpush1.bf16.msra.mxu0 %v8069_v26  ;;  %2404 = vmatpush1.bf16.msra.mxu1 %v8071_v30 }
 0x4a8   :  { %2364 = vmatprep.subr.bf16.mxu0 %v8076_v22  ;;  %2405 = vmatprep.subr.bf16.mxu1 %v8078_v10 }
 0x4ab   :  { %2365 = vmatpush1.bf16.msra.mxu0 %v8083_v17  ;;  %2406 = vmatpush1.bf16.msra.mxu1 %v8085_v36 }
 0x4ac   :  { %2366 = vmatprep.subr.bf16.mxu0 %v8089_v37  ;;  %2407 = vmatprep.subr.bf16.mxu1 %v8091_v38 }
 0x4af   :  { %2367 = vmatpush1.bf16.msra.mxu0 %v8095_v39  ;;  %2408 = vmatpush1.bf16.msra.mxu1 %v8097_v40 }
 0x4b0   :  { %2368 = vmatprep.subr.bf16.mxu0 %v8101_v41  ;;  %2409 = vmatprep.subr.bf16.mxu1 %v8103_v42 }
 0x4b3   :  { %2369 = vmatpush1.bf16.msra.mxu0 %v8107_v43  ;;  %2410 = vmatpush1.bf16.msra.mxu1 %v8109_v45 }
 0x4b4   :  { %2670 = vmatprep.subr.bf16.mxu0 %v8019_v44  ;;  %2711 = vmatprep.subr.bf16.mxu1 %v8021_v23 }
 0x556   :  { %v2072_v5 = vpop.f32.mrf.mxu0  ;;  %v2113_v20 = vpop.f32.mrf.mxu1 }
 0x557   :  { %v2120_v63 = vadd.f32 %v2072_v5, %v9040_v61  ;;  %v2122_v55 = vadd.f32 %v2113_v20, %v9043_v54 }
 0x558   :  { %v2074_v1 = vpop.f32.mrf.mxu0  ;;  %v2115_v2 = vpop.f32.mrf.mxu1 }
 0x559   :  { %v6271_v3 = vmul.f32 -1.442695, %v2120_v63  ;;  %v2121_v35 = vadd.f32 %v2074_v1, %v9041_v4  ;;  %v2123_v52 = vadd.f32 %v2115_v2, %v9042_v50 }
 0x55a   :  { %v2076_v7 = vpop.f32.mrf.mxu0  ;;  %v2117_v8 = vpop.f32.mrf.mxu1 }
 0x55b   :  { %7089 = vpow2.f32 %v6271_v3  ;;  %v6272_v46 = vmul.f32 -1.442695, %v2121_v35  ;;  %v6273_v47 = vmul.f32 -1.442695, %v2123_v52  ;;  %v9044_v52 = vld [vmem:[#allocation40_spill] sm:$0xff] }
 0x55c   :  { %v2077_v48 = vpop.f32.mrf.mxu0  ;;  %v2118_v49 = vpop.f32.mrf.mxu1 }
 0x55d   :  { %7091 = vpow2.f32 %v6272_v46 }
 0x55e   :  { %7093 = vtanh.f32 %v2122_v55 }
 0x55f   :  { %7095 = vpow2.f32 %v6273_v47 }
 0x568   :  { %v7090_v56 = vpop.eup %7089 }
 0x569   :  { %v2127_v57 = vadd.f32 1.0, %v7090_v56 }
 0x56a   :  { %v7092_v60 = vpop.eup %7091 }
 0x56b   :  { %7097 = vrcp.f32 %v2127_v57  ;;  %v2133_v5 = vadd.f32 1.0, %v7092_v60  ;;  %v7094_v61 = vpop.eup %7093  ;;  %v9045_v57 = vld [vmem:[#allocation42_spill] sm:$0xff] }
 0x56c   :  { %v7096_v63 = vpop.eup %7095 }
 0x56d   :  { %7099 = vrcp.f32 %v2133_v5  ;;  %v2140_v35 = vadd.f32 1.0, %v7096_v63 }
 0x56f   :  { %7101 = vrcp.f32 %v2140_v35  ;;  %v9047_v35 = vld [vmem:[#allocation41_spill] sm:$0xff] }
 0x578   :  { %v7098_v1 = vpop.eup %7097 }
 0x579   :  { %v2144_v3 = vmul.f32 %v7098_v1, %v7094_v61 }
 0x57a   :  { %v7100_v4 = vpop.eup %7099 }
 0x57b   :  { %v2143_v7 = vmul.f32 %v7100_v4, %v8126_v51  ;;  %v9046_v4 = vld [vmem:[#allocation43_spill] sm:$0xff] }
 0x57c   :  { %v7102_v8 = vpop.eup %7101 }
 0x57d   :  { %v2145_v20 = vadd.f32 %v2144_v3, %v2143_v7 }
 0x57f   :  { %7103 = vtanh.f32 %v2145_v20  ;;  %v8181_v2 = vsel %vm2148_vm4, %v2145_v20, %v8126_v51 }
 0x58c   :  { %v7104_v46 = vpop.eup %7103 }
 0x58d   :  { %v8183_v48 = vmul.f32 %v7104_v46, %v7102_v8 }
 0x58f   :  { %v8189_v49 = vsel %vm2148_vm4, %v8183_v48, %v8134_v59 }
 0x590   :  { %v2161_v50 = vpack.c.bf16 %v8189_v49, %v8189_v49 }
 0x592   :  { %2387 = vmatmul.mubr.bf16.vlgmr.msra.gmra.mxu0 %v2161_v50  ;;  %2428 = vmatmul.mubr.bf16.vlgmr.msra.gmra.mxu1 %v2161_v50 }
 0x593   :  { %2671 = vmatpush1.bf16.msra.mxu0 %v8023_v19  ;;  %2712 = vmatpush1.bf16.msra.mxu1 %v8025_v33 }
 0x594   :  { %2672 = vmatprep.subr.bf16.mxu0 %v8031_v34  ;;  %2713 = vmatprep.subr.bf16.mxu1 %v8033_v21 }
 0x595   :  { %2702 = vmatprep.mubr.bf16.mxu0 %v9033_v62  ;;  %2743 = vmatprep.mubr.bf16.mxu1 %v9033_v62 }
 0x597   :  { %2673 = vmatpush1.bf16.msra.mxu0 %v8035_v9  ;;  %2714 = vmatpush1.bf16.msra.mxu1 %v8037_v15 }
 0x598   :  { %2674 = vmatprep.subr.bf16.mxu0 %v8043_v25  ;;  %2715 = vmatprep.subr.bf16.mxu1 %v8045_v16 }
 0x59b   :  { %2675 = vmatpush1.bf16.msra.mxu0 %v8047_v29  ;;  %2716 = vmatpush1.bf16.msra.mxu1 %v8049_v31 }
 0x59c   :  { %2676 = vmatprep.subr.bf16.mxu0 %v8055_v32  ;;  %2717 = vmatprep.subr.bf16.mxu1 %v8057_v53 }
 0x59f   :  { %2677 = vmatpush1.bf16.msra.mxu0 %v8059_v6  ;;  %2718 = vmatpush1.bf16.msra.mxu1 %v8061_v0 }
 0x5a0   :  { %2678 = vmatprep.subr.bf16.mxu0 %v8065_v24  ;;  %2719 = vmatprep.subr.bf16.mxu1 %v8073_v18 }
 0x5a3   :  { %2679 = vmatpush1.bf16.msra.mxu0 %v8069_v26  ;;  %2720 = vmatpush1.bf16.msra.mxu1 %v8071_v30 }
 0x5a4   :  { %2680 = vmatprep.subr.bf16.mxu0 %v8076_v22  ;;  %2721 = vmatprep.subr.bf16.mxu1 %v8078_v10 }
 0x5a7   :  { %2681 = vmatpush1.bf16.msra.mxu0 %v8083_v17  ;;  %2722 = vmatpush1.bf16.msra.mxu1 %v8085_v36 }
 0x5a8   :  { %2682 = vmatprep.subr.bf16.mxu0 %v8089_v37  ;;  %2723 = vmatprep.subr.bf16.mxu1 %v8091_v38 }
 0x5ab   :  { %2683 = vmatpush1.bf16.msra.mxu0 %v8095_v39  ;;  %2724 = vmatpush1.bf16.msra.mxu1 %v8097_v40 }
 0x5ac   :  { %2684 = vmatprep.subr.bf16.mxu0 %v8101_v41  ;;  %2725 = vmatprep.subr.bf16.mxu1 %v8103_v42 }
 0x5af   :  { %2685 = vmatpush1.bf16.msra.mxu0 %v8107_v43  ;;  %2726 = vmatpush1.bf16.msra.mxu1 %v8109_v45 }
 0x5b0   :  { %2986 = vmatprep.subr.bf16.mxu0 %v8019_v44  ;;  %3027 = vmatprep.subr.bf16.mxu1 %v8021_v23 }
 0x652   :  { %v2388_v51 = vpop.f32.mrf.mxu0  ;;  %v2429_v59 = vpop.f32.mrf.mxu1 }
 0x653   :  { %v2436_v54 = vadd.f32 %v2388_v51, %v9044_v52  ;;  %v2438_v23 = vadd.f32 %v2429_v59, %v9047_v35 }
 0x654   :  { %v2390_v55 = vpop.f32.mrf.mxu0  ;;  %v2431_v47 = vpop.f32.mrf.mxu1 }
 0x655   :  { %v6306_v56 = vmul.f32 -1.442695, %v2436_v54  ;;  %v2437_v60 = vadd.f32 %v2390_v55, %v9045_v57  ;;  %v2439_v44 = vadd.f32 %v2431_v47, %v9046_v4 }
 0x656   :  { %v2392_v5 = vpop.f32.mrf.mxu0  ;;  %v2433_v61 = vpop.f32.mrf.mxu1 }
 0x657   :  { %7105 = vpow2.f32 %v6306_v56  ;;  %v6307_v63 = vmul.f32 -1.442695, %v2437_v60  ;;  %v6308_v7 = vmul.f32 -1.442695, %v2439_v44 }
 0x658   :  { %v2393_v1 = vpop.f32.mrf.mxu0  ;;  %v2434_v3 = vpop.f32.mrf.mxu1 }
 0x659   :  { %7107 = vpow2.f32 %v6307_v63 }
 0x65a   :  { %7109 = vtanh.f32 %v2438_v23 }
 0x65b   :  { %7111 = vpow2.f32 %v6308_v7 }
 0x664   :  { %v7106_v20 = vpop.eup %7105 }
 0x665   :  { %v2443_v8 = vadd.f32 1.0, %v7106_v20  ;;  %v6881_v20 = vld [vmem:[#allocation15 + $0xe0] ss:$16 sps:$4 sm:$0xff]  }
 0x666   :  { %v7108_v46 = vpop.eup %7107 }
 0x667   :  { %7113 = vrcp.f32 %v2443_v8  ;;  %v2449_v50 = vadd.f32 1.0, %v7108_v46  ;;  %v7110_v51 = vpop.eup %7109  ;;  %v6884_v8 = vld [vmem:[#allocation15 + $0xe8] ss:$16 sps:$4 sm:$0xff]  }
 0x668   :  { %v7112_v52 = vpop.eup %7111 }
 0x669   :  { %7115 = vrcp.f32 %v2449_v50  ;;  %v2456_v57 = vadd.f32 1.0, %v7112_v52  ;;  %v6892_v52 = vld [vmem:[#allocation15 + $0xcc] ss:$16 sps:$4 sm:$0xff]  }
 0x66b   :  { %7117 = vrcp.f32 %v2456_v57  ;;  %v6898_v57 = vld [vmem:[#allocation15 + $0xac] ss:$16 sps:$4 sm:$0xff]  }
 0x674   :  { %v7114_v54 = vpop.eup %7113 }
 0x675   :  { %v2460_v55 = vmul.f32 %v7114_v54, %v7110_v51  ;;  %v6889_v51 = vld [vmem:[#allocation15 + $0xc4] ss:$16 sps:$4 sm:$0xff]   ;;  %v6887_v54 = vld [vmem:[#allocation15 + $0xc0] ss:$16 sps:$4 sm:$0xff]  }
 0x676   :  { %v7116_v56 = vpop.eup %7115 }
 0x677   :  { %v2459_v60 = vmul.f32 %v7116_v56, %v8181_v2  ;;  %v6895_v56 = vld [vmem:[#allocation15 + $0xa4] ss:$16 sps:$4 sm:$0xff]  }
 0x678   :  { %v7118_v5 = vpop.eup %7117 }
 0x679   :  { %v2461_v59 = vadd.f32 %v2460_v55, %v2459_v60  ;;  %v6890_v55 = vld [vmem:[#allocation15 + $0xc8] ss:$16 sps:$4 sm:$0xff]   ;;  %v6893_v60 = vld [vmem:[#allocation15 + $0xa0] ss:$16 sps:$4 sm:$0xff]  }
 0x67b   :  { %7119 = vtanh.f32 %v2461_v59  ;;  %v8236_v47 = vsel %vm2464_vm5, %v2461_v59, %v8181_v2  ;;  %v6896_v59 = vld [vmem:[#allocation15 + $0xa8] ss:$16 sps:$4 sm:$0xff]  }
 0x688   :  { %v7120_v61 = vpop.eup %7119 }
 0x689   :  { %v8238_v63 = vmul.f32 %v7120_v61, %v7118_v5  ;;  %v6904_v5 = vld [vmem:[#allocation15 + $0x8c] ss:$16 sps:$4 sm:$0xff]   ;;  %v6899_v61 = vld [vmem:[#allocation15 + $0x80] ss:$16 sps:$4 sm:$0xff]  }
 0x68b   :  { %v8244_v1 = vsel %vm2464_vm5, %v8238_v63, %v8189_v49 }
 0x68c   :  { %v2477_v3 = vpack.c.bf16 %v8244_v1, %v8244_v1 }
 0x68e   :  { %2703 = vmatmul.mubr.bf16.vlgmr.msra.gmra.mxu0 %v2477_v3  ;;  %2744 = vmatmul.mubr.bf16.vlgmr.msra.gmra.mxu1 %v2477_v3  ;;  %v6907_v3 = vld [vmem:[#allocation15 + $0x64] ss:$16 sps:$4 sm:$0xff]  }
 0x68f   :  { %2987 = vmatpush1.bf16.msra.mxu0 %v8023_v19  ;;  %3028 = vmatpush1.bf16.msra.mxu1 %v8025_v33  ;;  %v6883_v19 = vld [vmem:[#allocation15 + $0xe4] ss:$16 sps:$4 sm:$0xff]   ;;  %v6886_v33 = vld [vmem:[#allocation15 + $0xec] ss:$16 sps:$4 sm:$0xff]  }
 0x690   :  { %2988 = vmatprep.subr.bf16.mxu0 %v8031_v34  ;;  %3029 = vmatprep.subr.bf16.mxu1 %v8033_v21 }
 0x691   :  { %3018 = vmatprep.mubr.bf16.mxu0 %v9033_v62  ;;  %3059 = vmatprep.mubr.bf16.mxu1 %v9033_v62 }
 0x693   :  { %2989 = vmatpush1.bf16.msra.mxu0 %v8035_v9  ;;  %3030 = vmatpush1.bf16.msra.mxu1 %v8037_v15  ;;  %v9048_v9 = vld [vmem:[#allocation44_spill] sm:$0xff] }
 0x694   :  { %2990 = vmatprep.subr.bf16.mxu0 %v8043_v25  ;;  %3031 = vmatprep.subr.bf16.mxu1 %v8045_v16 }
 0x697   :  { %2991 = vmatpush1.bf16.msra.mxu0 %v8047_v29  ;;  %3032 = vmatpush1.bf16.msra.mxu1 %v8049_v31  ;;  %v9049_v31 = vld [vmem:[#allocation46_spill] sm:$0xff] }
 0x698   :  { %2992 = vmatprep.subr.bf16.mxu0 %v8055_v32  ;;  %3033 = vmatprep.subr.bf16.mxu1 %v8057_v53 }
 0x69b   :  { %2993 = vmatpush1.bf16.msra.mxu0 %v8059_v6  ;;  %3034 = vmatpush1.bf16.msra.mxu1 %v8061_v0 }
 0x69c   :  { %2994 = vmatprep.subr.bf16.mxu0 %v8065_v24  ;;  %3035 = vmatprep.subr.bf16.mxu1 %v8073_v18 }
 0x69f   :  { %2995 = vmatpush1.bf16.msra.mxu0 %v8069_v26  ;;  %3036 = vmatpush1.bf16.msra.mxu1 %v8071_v30  ;;  %v9050_v30 = vld [vmem:[#allocation47_spill] sm:$0xff] }
 0x6a0   :  { %2996 = vmatprep.subr.bf16.mxu0 %v8076_v22  ;;  %3037 = vmatprep.subr.bf16.mxu1 %v8078_v10  ;;  %v9051_v22 = vld [vmem:[#allocation45_spill] sm:$0xff] }
 0x6a3   :  { %2997 = vmatpush1.bf16.msra.mxu0 %v8083_v17  ;;  %3038 = vmatpush1.bf16.msra.mxu1 %v8085_v36 }
 0x6a4   :  { %2998 = vmatprep.subr.bf16.mxu0 %v8089_v37  ;;  %3039 = vmatprep.subr.bf16.mxu1 %v8091_v38 }
 0x6a7   :  { %2999 = vmatpush1.bf16.msra.mxu0 %v8095_v39  ;;  %3040 = vmatpush1.bf16.msra.mxu1 %v8097_v40 }
 0x6a8   :  { %3000 = vmatprep.subr.bf16.mxu0 %v8101_v41  ;;  %3041 = vmatprep.subr.bf16.mxu1 %v8103_v42 }
 0x6ab   :  { %3001 = vmatpush1.bf16.msra.mxu0 %v8107_v43  ;;  %3042 = vmatpush1.bf16.msra.mxu1 %v8109_v45 }
 0x6ac   :  { %3330 = vmatprep.subr.bf16.mxu0 %v6883_v19  ;;  %3403 = vmatprep.subr.bf16.mxu1 %v6886_v33  ;;  %v6910_v19 = vld [vmem:[#allocation15 + $0x6c] ss:$16 sps:$4 sm:$0xff]   ;;  %v6905_v33 = vld [vmem:[#allocation15 + $0x60] ss:$16 sps:$4 sm:$0xff]  }
 0x74e   :  { %v2704_v34 = vpop.f32.mrf.mxu0  ;;  %v2745_v21 = vpop.f32.mrf.mxu1 }
 0x74f   :  { %v2752_v15 = vadd.f32 %v2704_v34, %v9048_v9  ;;  %v2754_v10 = vadd.f32 %v2745_v21, %v9051_v22  ;;  %v6908_v34 = vld [vmem:[#allocation15 + $0x68] ss:$16 sps:$4 sm:$0xff]   ;;  %v6913_v21 = vld [vmem:[#allocation15 + $0x44] ss:$16 sps:$4 sm:$0xff]   ;;  %v6916_v9 = vld [vmem:[#allocation15 + $0x4c] ss:$16 sps:$4 sm:$0xff]  }
 0x750   :  { %v2706_v25 = vpop.f32.mrf.mxu0  ;;  %v2747_v16 = vpop.f32.mrf.mxu1  ;;  %v8343_v22 = vld [vmem:[#allocation16 + $0xc0] ss:$16 sps:$4 sm:$0xff]  }
 0x751   :  { %v6341_v29 = vmul.f32 -1.442695, %v2752_v15  ;;  %v2753_v32 = vadd.f32 %v2706_v25, %v9049_v31  ;;  %v2755_v18 = vadd.f32 %v2747_v16, %v9050_v30  ;;  %v6911_v15 = vld [vmem:[#allocation15 + $0x40] ss:$16 sps:$4 sm:$0xff]   ;;  %v6914_v25 = vld [vmem:[#allocation15 + $0x48] ss:$16 sps:$4 sm:$0xff]   ;;  %v6695_v30 = vpack.c.bf16 %v8128_v58, %v8007_v27 }
 0x752   :  { %v2708_v53 = vpop.f32.mrf.mxu0  ;;  %v2749_v6 = vpop.f32.mrf.mxu1  ;;  %v6919_v16 = vld [vmem:[#allocation15 + $0x24] ss:$16 sps:$4 sm:$0xff]   ;;  %v6917_v31 = vld [vmem:[#allocation15 + $0x20] ss:$16 sps:$4 sm:$0xff]   ;;  %v8329_v27 = vld [vmem:[#allocation16 + $0xec] ss:$16 sps:$4 sm:$0xff]  }
 0x753   :  { %7121 = vpow2.f32 %v6341_v29  ;;  %v6342_v0 = vmul.f32 -1.442695, %v2753_v32  ;;  %v6343_v17 = vmul.f32 -1.442695, %v2755_v18  ;;  %v6922_v29 = vld [vmem:[#allocation15 + $0x2c] ss:$16 sps:$4 sm:$0xff]  }
 0x754   :  { %v2709_v24 = vpop.f32.mrf.mxu0  ;;  %v2750_v26 = vpop.f32.mrf.mxu1  ;;  %v6920_v32 = vld [vmem:[#allocation15 + $0x28] ss:$16 sps:$4 sm:$0xff]   ;;  %v6925_v53 = vld [vmem:[#allocation15 + $0x4] ss:$16 sps:$4 sm:$0xff]   ;;  %v6928_v6 = vld [vmem:[#allocation15 + $0xc] ss:$16 sps:$4 sm:$0xff]  }
 0x755   :  { %7123 = vpow2.f32 %v6342_v0  ;;  %v6923_v0 = vld [vmem:[#allocation15] ss:$16 sps:$4 sm:$0xff]   ;;  %v6926_v24 = vld [vmem:[#allocation15 + $0x8] ss:$16 sps:$4 sm:$0xff]   ;;  %v6692_v26 = vpack.c.bf16 %v7954_v28, %v7899_v14  ;;  %v6698_v14 = vpack.c.bf16 %v8238_v63, %v8183_v48  ;;  %v8327_v28 = vld [vmem:[#allocation16 + $0xe4] ss:$16 sps:$4 sm:$0xff]  }
 0x756   :  { %7125 = vtanh.f32 %v2754_v10  ;;  %v8331_v58 = vld [vmem:[#allocation16 + $0xe0] ss:$16 sps:$4 sm:$0xff]   ;;  %v8333_v18 = vld [vmem:[#allocation16 + $0xe8] ss:$16 sps:$4 sm:$0xff]   ;;  %v8339_v48 = vld [vmem:[#allocation16 + $0xc4] ss:$16 sps:$4 sm:$0xff]  }
 0x757   :  { %7127 = vpow2.f32 %v6343_v17  ;;  %v8341_v63 = vld [vmem:[#allocation16 + $0xcc] ss:$16 sps:$4 sm:$0xff]   ;;  %v8345_v10 = vld [vmem:[#allocation16 + $0xc8] ss:$16 sps:$4 sm:$0xff]   ;;  %v8351_v17 = vld [vmem:[#allocation16 + $0xa4] ss:$16 sps:$4 sm:$0xff]  }
 0x760   :  { %v7122_v36 = vpop.eup %7121 }
 0x761   :  { %v2759_v37 = vadd.f32 1.0, %v7122_v36  ;;  %v8353_v36 = vld [vmem:[#allocation16 + $0xac] ss:$16 sps:$4 sm:$0xff]  }
 0x762   :  { %v7124_v38 = vpop.eup %7123 }
 0x763   :  { %7129 = vrcp.f32 %v2759_v37  ;;  %v2765_v39 = vadd.f32 1.0, %v7124_v38  ;;  %v7126_v40 = vpop.eup %7125  ;;  %v8355_v37 = vld [vmem:[#allocation16 + $0xa0] ss:$16 sps:$4 sm:$0xff]   ;;  %v8357_v38 = vld [vmem:[#allocation16 + $0xa8] ss:$16 sps:$4 sm:$0xff]  }
 0x764   :  { %v7128_v41 = vpop.eup %7127 }
 0x765   :  { %7131 = vrcp.f32 %v2765_v39  ;;  %v2772_v2 = vadd.f32 1.0, %v7128_v41  ;;  %v8363_v39 = vld [vmem:[#allocation16 + $0x84] ss:$16 sps:$4 sm:$0xff]   ;;  %v8367_v41 = vld [vmem:[#allocation16 + $0x80] ss:$16 sps:$4 sm:$0xff]  }
 0x767   :  { %7133 = vrcp.f32 %v2772_v2  ;;  %v8379_v2 = vld [vmem:[#allocation16 + $0x60] ss:$16 sps:$4 sm:$0xff]  }
 0x770   :  { %v7130_v42 = vpop.eup %7129 }
 0x771   :  { %v2776_v43 = vmul.f32 %v7130_v42, %v7126_v40  ;;  %v8365_v40 = vld [vmem:[#allocation16 + $0x8c] ss:$16 sps:$4 sm:$0xff]   ;;  %v8369_v42 = vld [vmem:[#allocation16 + $0x88] ss:$16 sps:$4 sm:$0xff]  }
 0x772   :  { %v7132_v45 = vpop.eup %7131 }
 0x773   :  { %v2775_v49 = vmul.f32 %v7132_v45, %v8236_v47  ;;  %v8377_v45 = vld [vmem:[#allocation16 + $0x6c] ss:$16 sps:$4 sm:$0xff]  }
 0x774   :  { %v7134_v35 = vpop.eup %7133 }
 0x775   :  { %v2777_v4 = vadd.f32 %v2776_v43, %v2775_v49  ;;  %v8375_v43 = vld [vmem:[#allocation16 + $0x64] ss:$16 sps:$4 sm:$0xff]   ;;  %v8381_v49 = vld [vmem:[#allocation16 + $0x68] ss:$16 sps:$4 sm:$0xff]  }
 0x777   :  { %7135 = vtanh.f32 %v2777_v4  ;;  %v8289_v44 = vsel %vm2780_vm6, %v2777_v4, %v8236_v47  ;;  %v6901_v47 = vld [vmem:[#allocation15 + $0x84] ss:$16 sps:$4 sm:$0xff]  }
 0x778   :  { %v8387_v4 = vld [vmem:[#allocation16 + $0x44] ss:$16 sps:$4 sm:$0xff]  }
 0x784   :  { %v7136_v23 = vpop.eup %7135 }
 0x785   :  { %v8291_v7 = vmul.f32 %v7136_v23, %v7134_v35  ;;  %v8389_v35 = vld [vmem:[#allocation16 + $0x4c] ss:$16 sps:$4 sm:$0xff]   ;;  %v8391_v23 = vld [vmem:[#allocation16 + $0x40] ss:$16 sps:$4 sm:$0xff]  }
 0x787   :  { %v8297_v46 = vsel %vm2780_vm6, %v8291_v7, %v8244_v1  ;;  %v6902_v1 = vld [vmem:[#allocation15 + $0x88] ss:$16 sps:$4 sm:$0xff]  }
 0x788   :  { %v2793_v50 = vpack.c.bf16 %v8297_v46, %v8297_v46 }
 0x78a   :  { %3019 = vmatmul.mubr.bf16.vlgmr.msra.gmra.mxu0 %v2793_v50  ;;  %3060 = vmatmul.mubr.bf16.vlgmr.msra.gmra.mxu1 %v2793_v50  ;;  %v8401_v50 = vld [vmem:[#allocation16 + $0x2c] ss:$16 sps:$4 sm:$0xff]  }
 0x78b   :  { %3331 = vmatpush1.bf16.msra.mxu0 %v6881_v20  ;;  %3404 = vmatpush1.bf16.msra.mxu1 %v6884_v8  ;;  %v8393_v20 = vld [vmem:[#allocation16 + $0x48] ss:$16 sps:$4 sm:$0xff]   ;;  %v8399_v8 = vld [vmem:[#allocation16 + $0x24] ss:$16 sps:$4 sm:$0xff]  }
 0x78c   :  { %3332 = vmatprep.subr.bf16.mxu0 %v6889_v51  ;;  %3405 = vmatprep.subr.bf16.mxu1 %v6892_v52  ;;  %v8403_v51 = vld [vmem:[#allocation16 + $0x20] ss:$16 sps:$4 sm:$0xff]   ;;  %v8405_v52 = vld [vmem:[#allocation16 + $0x28] ss:$16 sps:$4 sm:$0xff]  }
 0x78d   :  { %3362 = vmatprep.mubr.bf16.mxu0 %v9033_v62  ;;  %3435 = vmatprep.mubr.bf16.mxu1 %v9033_v62 }
 0x78f   :  { %3333 = vmatpush1.bf16.msra.mxu0 %v6887_v54  ;;  %3406 = vmatpush1.bf16.msra.mxu1 %v6890_v55  ;;  %v8409_v54 = vld [vmem:[#allocation16 + $0x4] ss:$16 sps:$4 sm:$0xff]   ;;  %v8411_v55 = vld [vmem:[#allocation16 + $0xc] ss:$16 sps:$4 sm:$0xff]  }
 0x790   :  { %3334 = vmatprep.subr.bf16.mxu0 %v6895_v56  ;;  %3407 = vmatprep.subr.bf16.mxu1 %v6898_v57  ;;  %v8415_v56 = vld [vmem:[#allocation16] ss:$16 sps:$4 sm:$0xff]   ;;  %v8417_v57 = vld [vmem:[#allocation16 + $0x8] ss:$16 sps:$4 sm:$0xff]  }
 0x793   :  { %3335 = vmatpush1.bf16.msra.mxu0 %v6893_v60  ;;  %3408 = vmatpush1.bf16.msra.mxu1 %v6896_v59 }
 0x794   :  { %3336 = vmatprep.subr.bf16.mxu0 %v6901_v47  ;;  %3409 = vmatprep.subr.bf16.mxu1 %v6904_v5  ;;  %v9052_v47 = vld [vmem:[#allocation48_spill] sm:$0xff] }
 0x797   :  { %3337 = vmatpush1.bf16.msra.mxu0 %v6899_v61  ;;  %3410 = vmatpush1.bf16.msra.mxu1 %v6902_v1 }
 0x798   :  { %3338 = vmatprep.subr.bf16.mxu0 %v6907_v3  ;;  %3411 = vmatprep.subr.bf16.mxu1 %v6910_v19 }
 0x79b   :  { %3339 = vmatpush1.bf16.msra.mxu0 %v6905_v33  ;;  %3412 = vmatpush1.bf16.msra.mxu1 %v6908_v34 }
 0x79c   :  { %3340 = vmatprep.subr.bf16.mxu0 %v6913_v21  ;;  %3413 = vmatprep.subr.bf16.mxu1 %v6916_v9 }
 0x79f   :  { %3341 = vmatpush1.bf16.msra.mxu0 %v6911_v15  ;;  %3414 = vmatpush1.bf16.msra.mxu1 %v6914_v25 }
 0x7a0   :  { %3342 = vmatprep.subr.bf16.mxu0 %v6919_v16  ;;  %3415 = vmatprep.subr.bf16.mxu1 %v6922_v29  ;;  %v9053_v16 = vld [vmem:[#allocation49_spill] sm:$0xff] }
 0x7a3   :  { %3343 = vmatpush1.bf16.msra.mxu0 %v6917_v31  ;;  %3416 = vmatpush1.bf16.msra.mxu1 %v6920_v32 }
 0x7a4   :  { %3344 = vmatprep.subr.bf16.mxu0 %v6925_v53  ;;  %3417 = vmatprep.subr.bf16.mxu1 %v6928_v6 }
 0x7a7   :  { %3345 = vmatpush1.bf16.msra.mxu0 %v6923_v0  ;;  %3418 = vmatpush1.bf16.msra.mxu1 %v6926_v24 }
 0x7a8   :  { %3709 = vmatprep.subr.bf16.mxu0 %v8327_v28  ;;  %3750 = vmatprep.subr.bf16.mxu1 %v8329_v27 }
 0x7aa   :  { %6693 = vmatmul.mubr.msk.bf16.vlgmr.msra.gmra.mxu0 %vm6691_vm7, %v6692_v26  ;;  %6705 = vmatmul.mubr.msk.bf16.vlgmr.msra.gmra.mxu1 %vm6691_vm7, %v6692_v26 }
 0x7ab   :  { %3372 = vmatprep.mubr.bf16.mxu0 %v9033_v62  ;;  %3445 = vmatprep.mubr.bf16.mxu1 %v9033_v62 }
 0x7ac   :  { %3710 = vmatpush1.bf16.msra.mxu0 %v8331_v58  ;;  %3751 = vmatpush1.bf16.msra.mxu1 %v8333_v18 }
 0x7ad   :  { %3711 = vmatprep.subr.bf16.mxu0 %v8339_v48  ;;  %3752 = vmatprep.subr.bf16.mxu1 %v8341_v63 }
 0x7b0   :  { %3712 = vmatpush1.bf16.msra.mxu0 %v8343_v22  ;;  %3753 = vmatpush1.bf16.msra.mxu1 %v8345_v10 }
 0x7b1   :  { %3713 = vmatprep.subr.bf16.mxu0 %v8351_v17  ;;  %3754 = vmatprep.subr.bf16.mxu1 %v8353_v36 }
 0x7b2   :  { %6696 = vmatmul.mubr.msk.bf16.gmra.mxu0 %vm6694_vm8, %v6695_v30  ;;  %6708 = vmatmul.mubr.msk.bf16.gmra.mxu1 %vm6694_vm8, %v6695_v30 }
 0x7b3   :  { %3382 = vmatprep.mubr.bf16.mxu0 %v9033_v62  ;;  %3455 = vmatprep.mubr.bf16.mxu1 %v9033_v62 }
 0x7b4   :  { %3714 = vmatpush1.bf16.msra.mxu0 %v8355_v37  ;;  %3755 = vmatpush1.bf16.msra.mxu1 %v8357_v38 }
 0x7b5   :  { %3715 = vmatprep.subr.bf16.mxu0 %v8363_v39  ;;  %3756 = vmatprep.subr.bf16.mxu1 %v8365_v40 }
 0x7b8   :  { %3716 = vmatpush1.bf16.msra.mxu0 %v8367_v41  ;;  %3757 = vmatpush1.bf16.msra.mxu1 %v8369_v42 }
 0x7b9   :  { %3717 = vmatprep.subr.bf16.mxu0 %v8375_v43  ;;  %3758 = vmatprep.subr.bf16.mxu1 %v8377_v45 }
 0x7ba   :  { %6699 = vmatmul.mubr.msk.bf16.gmra.mxu0 %vm6697_vm9, %v6698_v14  ;;  %6711 = vmatmul.mubr.msk.bf16.gmra.mxu1 %vm6697_vm9, %v6698_v14 }
 0x7bb   :  { %3392 = vmatprep.mubr.bf16.mxu0 %v9033_v62  ;;  %3465 = vmatprep.mubr.bf16.mxu1 %v9033_v62 }
 0x7bc   :  { %3718 = vmatpush1.bf16.msra.mxu0 %v8379_v2  ;;  %3759 = vmatpush1.bf16.msra.mxu1 %v8381_v49 }
 0x7bd   :  { %3719 = vmatprep.subr.bf16.mxu0 %v8387_v4  ;;  %3760 = vmatprep.subr.bf16.mxu1 %v8389_v35 }
 0x7c0   :  { %3720 = vmatpush1.bf16.msra.mxu0 %v8391_v23  ;;  %3761 = vmatpush1.bf16.msra.mxu1 %v8393_v20 }
 0x7c1   :  { %3721 = vmatprep.subr.bf16.mxu0 %v8399_v8  ;;  %3762 = vmatprep.subr.bf16.mxu1 %v8401_v50 }
 0x7c4   :  { %3722 = vmatpush1.bf16.msra.mxu0 %v8403_v51  ;;  %3763 = vmatpush1.bf16.msra.mxu1 %v8405_v52 }
 0x7c5   :  { %3723 = vmatprep.subr.bf16.mxu0 %v8409_v54  ;;  %3764 = vmatprep.subr.bf16.mxu1 %v8411_v55 }
 0x7c8   :  { %3724 = vmatpush1.bf16.msra.mxu0 %v8415_v56  ;;  %3765 = vmatpush1.bf16.msra.mxu1 %v8417_v57 }
 0x7c9   :  { %4020 = vmatprep.subr.bf16.mxu0 %v8327_v28  ;;  %4061 = vmatprep.subr.bf16.mxu1 %v8329_v27 }
 0x84a   :  { %v3020_v60 = vpop.f32.mrf.mxu0  ;;  %v3061_v59 = vpop.f32.mrf.mxu1 }
 0x84b   :  { %v3068_v5 = vadd.f32 %v3020_v60, %v9052_v47  ;;  %v3070_v29 = vadd.f32 %v3061_v59, %v9053_v16 }
 0x84c   :  { %v3022_v61 = vpop.f32.mrf.mxu0  ;;  %v3063_v1 = vpop.f32.mrf.mxu1 }
 0x84d   :  { %v6376_v3 = vmul.f32 -1.442695, %v3068_v5  ;;  %v3069_v19 = vadd.f32 %v3022_v61, %v7882_v11  ;;  %v3071_v25 = vadd.f32 %v3063_v1, %v7885_v13  ;;  %v8430_v13 = vld [vmem:[#allocation7] sm:$0xff] }
 0x84e   :  { %v3024_v33 = vpop.f32.mrf.mxu0  ;;  %v3065_v34 = vpop.f32.mrf.mxu1  ;;  %9054 = vst [vmem:[#allocation31_spill] sm:$0xff] %v8430_v13  ;;  %vm3096_vm10 = vcmp.gt.s32.totalorder %v8430_v13, 7 }
 0x84f   :  { %7137 = vpow2.f32 %v6376_v3  ;;  %v6377_v21 = vmul.f32 -1.442695, %v3069_v19  ;;  %v6378_v31 = vmul.f32 -1.442695, %v3071_v25  ;;  %vm6700_vm11 = vmpackc.low %vm3096_vm10, %vm2780_vm6 }
 0x850   :  { %v3025_v9 = vpop.f32.mrf.mxu0  ;;  %v3066_v15 = vpop.f32.mrf.mxu1 }
 0x851   :  { %7139 = vpow2.f32 %v6377_v21 }
 0x852   :  { %7141 = vtanh.f32 %v3070_v29 }
 0x853   :  { %7143 = vpow2.f32 %v6378_v31 }
 0x85c   :  { %v7138_v32 = vpop.eup %7137 }
 0x85d   :  { %v3075_v53 = vadd.f32 1.0, %v7138_v32 }
 0x85e   :  { %v7140_v6 = vpop.eup %7139 }
 0x85f   :  { %7145 = vrcp.f32 %v3075_v53  ;;  %v3081_v0 = vadd.f32 1.0, %v7140_v6  ;;  %v7142_v11 = vpop.eup %7141 }
 0x860   :  { %v7144_v24 = vpop.eup %7143 }
 0x861   :  { %7147 = vrcp.f32 %v3081_v0  ;;  %v3088_v60 = vadd.f32 1.0, %v7144_v24 }
 0x863   :  { %7149 = vrcp.f32 %v3088_v60 }
 0x86c   :  { %v7146_v26 = vpop.eup %7145 }
 0x86d   :  { %v3092_v30 = vmul.f32 %v7146_v26, %v7142_v11 }
 0x86e   :  { %v7148_v14 = vpop.eup %7147 }
 0x86f   :  { %v3091_v47 = vmul.f32 %v7148_v14, %v8289_v44 }
 0x870   :  { %v7150_v61 = vpop.eup %7149 }
 0x871   :  { %v3093_v59 = vadd.f32 %v3092_v30, %v3091_v47 }
 0x873   :  { %7151 = vtanh.f32 %v3093_v59  ;;  %v3098_v5 = vsel %vm3096_vm10, %v3093_v59, %v8289_v44  ;;  %v8446_v44 = vld [vmem:[#allocation9 + $0x8] sm:$0xff] }
 0x874   :  { %3103 = vst [vmem:[#allocation21] sm:$0xff] %v3098_v5  ;;  %v3516_v34 = vpack.c.bf16 %v8446_v44, %v8446_v44 }
 0x880   :  { %v7152_v1 = vpop.eup %7151 }
 0x881   :  { %v3095_v3 = vmul.f32 %v7152_v1, %v7150_v61 }
 0x883   :  { %v6701_v19 = vpack.c.bf16 %v3095_v3, %v8291_v7  ;;  %v3097_v33 = vsel %vm3096_vm10, %v3095_v3, %v8297_v46  ;;  %v3364_v7 = vpop.f32.mrf.mxu0  ;;  %v3437_v46 = vpop.f32.mrf.mxu1  ;;  %v3148_v3 = vld [vmem:[%s8998_s9] sm:$0xf]  ;;  %s7531_s9 = smov [#allocation19]  }
 0x884   :  { %3102 = vst [vmem:[#allocation19] sm:$0xff] %v3097_v33  ;;  %s6021_s20 = sshll.u32 %s7531_s9, 4  ;;  %s6022_s20 = int_to_ptr.vmem [resolvable:$true] %s6021_s20 }
 0x885   :  { %6702 = vmatmul.mubr.msk.bf16.gmra.mxu0 %vm6700_vm11, %v6701_v19  ;;  %6714 = vmatmul.mubr.msk.bf16.gmra.mxu1 %vm6700_vm11, %v6701_v19  ;;  %v3366_v21 = vpop.f32.mrf.mxu0  ;;  %v3439_v9 = vpop.f32.mrf.mxu1  ;;  %s7442_s5 = scalar_lea.vmem %s6022_s20, 256  ;;  %p7447_p13 = scmp.lt.s32.totalorder %s6022_s20, %s6022_s20 }
 0x886   :  { %3741 = vmatprep.mubr.bf16.mxu0 %v9033_v62  ;;  %3782 = vmatprep.mubr.bf16.mxu1 %v9033_v62  ;;  %p7443_p12 = scmp.ne.s32.totalorder %s6022_s20, %s7442_s5  ;;  %p7448_p0 = scmp.lt.s32.totalorder %s7442_s5, %s7442_s5 }
 0x887   :  { %v8484_v15 = vpop.f32.mrf.mxu0  ;;  %v8486_v25 = vpop.f32.mrf.mxu1 }
 0x888   :  { %p7449_p1 = por %p7448_p0, %p7447_p13 }
 0x889   :  { %v8488_v16 = vpop.f32.mrf.mxu0  ;;  %v8490_v29 = vpop.f32.mrf.mxu1 }
 0x88a   :  { %p7450_p2 = pnand %p7449_p1, %p7443_p12 }
 0x88b   :  { %v8492_v31 = vpop.f32.mrf.mxu0  ;;  %v8494_v32 = vpop.f32.mrf.mxu1 }
 0x88c   :  { %9055 = vst [vmem:[#allocation30_spill] sm:$0xff] %v8494_v32 }
 0x88d   :  { %3742 = vmatmul.mubr.bf16.vlgmr.msra.gmra.mxu0 %v3516_v34  ;;  %3783 = vmatmul.mubr.bf16.vlgmr.msra.gmra.mxu1 %v3516_v34  ;;  %v8496_v53 = vpop.f32.mrf.mxu0  ;;  %v8498_v6 = vpop.f32.mrf.mxu1 }
 0x88e   :  { %4021 = vmatpush1.bf16.msra.mxu0 %v8331_v58  ;;  %4062 = vmatpush1.bf16.msra.mxu1 %v8333_v18  ;;  %9056 = vst [vmem:[#allocation32_spill] sm:$0xff] %v8496_v53  ;;  %9057 = vst [vmem:[#allocation34_spill] sm:$0xff] %v8498_v6 }
 0x88f   :  { %4022 = vmatprep.subr.bf16.mxu0 %v8339_v48  ;;  %4063 = vmatprep.subr.bf16.mxu1 %v8341_v63  ;;  %v8500_v0 = vpop.f32.mrf.mxu0  ;;  %v8502_v11 = vpop.f32.mrf.mxu1 }
 0x890   :  { %4052 = vmatprep.mubr.bf16.mxu0 %v9033_v62  ;;  %4093 = vmatprep.mubr.bf16.mxu1 %v9033_v62  ;;  %9058 = vst [vmem:[#allocation35_spill] sm:$0xff] %v8500_v0  ;;  %9059 = vst [vmem:[#allocation33_spill] sm:$0xff] %v8502_v11 }
 0x891   :  { %v8504_v24 = vpop.f32.mrf.mxu0  ;;  %v8506_v26 = vpop.f32.mrf.mxu1 }
 0x892   :  { %4023 = vmatpush1.bf16.msra.mxu0 %v8343_v22  ;;  %4064 = vmatpush1.bf16.msra.mxu1 %v8345_v10  ;;  %9060 = vst [vmem:[#allocation36_spill] sm:$0xff] %v8504_v24  ;;  %9061 = vst [vmem:[#allocation38_spill] sm:$0xff] %v8506_v26 }
 0x893   :  { %4024 = vmatprep.subr.bf16.mxu0 %v8351_v17  ;;  %4065 = vmatprep.subr.bf16.mxu1 %v8353_v36  ;;  %v8508_v30 = vpop.f32.mrf.mxu0  ;;  %v8510_v14 = vpop.f32.mrf.mxu1 }
 0x894   :  { %9062 = vst [vmem:[#allocation39_spill] sm:$0xff] %v8508_v30  ;;  %9063 = vst [vmem:[#allocation37_spill] sm:$0xff] %v8510_v14  ;;  %v9074_v14 = vld [vmem:[#allocation29_spill] sm:$0xff] }
 0x895   :  { %v8512_v60 = vpop.f32.mrf.mxu0  ;;  %v8514_v47 = vpop.f32.mrf.mxu1  ;;  %v9081_v6 = vsub.s32 3, %v9074_v14 }
 0x896   :  { %4025 = vmatpush1.bf16.msra.mxu0 %v8355_v37  ;;  %4066 = vmatpush1.bf16.msra.mxu1 %v8357_v38  ;;  %9064 = vst [vmem:[#allocation40_spill] sm:$0xff] %v8512_v60  ;;  %9065 = vst [vmem:[#allocation42_spill] sm:$0xff] %v8514_v47 }
 0x897   :  { %4026 = vmatprep.subr.bf16.mxu0 %v8363_v39  ;;  %4067 = vmatprep.subr.bf16.mxu1 %v8365_v40  ;;  %v8516_v59 = vpop.f32.mrf.mxu0  ;;  %v8518_v5 = vpop.f32.mrf.mxu1 }
 0x898   :  { %9066 = vst [vmem:[#allocation43_spill] sm:$0xff] %v8516_v59  ;;  %9067 = vst [vmem:[#allocation41_spill] sm:$0xff] %v8518_v5  ;;  %v9075_v59 = vsub.s32 0, %v9074_v14 }
 0x899   :  { %v8520_v61 = vpop.f32.mrf.mxu0  ;;  %v8522_v1 = vpop.f32.mrf.mxu1 }
 0x89a   :  { %4027 = vmatpush1.bf16.msra.mxu0 %v8367_v41  ;;  %4068 = vmatpush1.bf16.msra.mxu1 %v8369_v42  ;;  %9068 = vst [vmem:[#allocation44_spill] sm:$0xff] %v8520_v61  ;;  %9069 = vst [vmem:[#allocation46_spill] sm:$0xff] %v8522_v1  ;;  %v8537_v47 = vrot.slane %v3148_v3, %v9075_v59  ;;  %v9078_v1 = vsub.s32 1, %v9074_v14 }
 0x89b   :  { %4028 = vmatprep.subr.bf16.mxu0 %v8375_v43  ;;  %4069 = vmatprep.subr.bf16.mxu1 %v8377_v45 }
 0x89c   :  { %v8545_v60 = vrot.slane %v3148_v3, %v9078_v1 }
 0x89e   :  { %4029 = vmatpush1.bf16.msra.mxu0 %v8379_v2  ;;  %4070 = vmatpush1.bf16.msra.mxu1 %v8381_v49  ;;  %v3367_v11 = vadd.f32 %v3366_v21, %v8545_v60  ;;  %v9082_v21 = vsub.s32 2, %v9074_v14 }
 0x89f   :  { %4030 = vmatprep.subr.bf16.mxu0 %v8387_v4  ;;  %4071 = vmatprep.subr.bf16.mxu1 %v8389_v35 }
 0x8a2   :  { %4031 = vmatpush1.bf16.msra.mxu0 %v8391_v23  ;;  %4072 = vmatpush1.bf16.msra.mxu1 %v8393_v20 }
 0x8a3   :  { %4032 = vmatprep.subr.bf16.mxu0 %v8399_v8  ;;  %4073 = vmatprep.subr.bf16.mxu1 %v8401_v50 }
 0x8a6   :  { %4033 = vmatpush1.bf16.msra.mxu0 %v8403_v51  ;;  %4074 = vmatpush1.bf16.msra.mxu1 %v8405_v52 }
 0x8a7   :  { %4034 = vmatprep.subr.bf16.mxu0 %v8409_v54  ;;  %4075 = vmatprep.subr.bf16.mxu1 %v8411_v55 }
 0x8aa   :  { %4035 = vmatpush1.bf16.msra.mxu0 %v8415_v56  ;;  %4076 = vmatpush1.bf16.msra.mxu1 %v8417_v57 }
 0x8ab   :  { %4331 = vmatprep.subr.bf16.mxu0 %v8327_v28  ;;  %4372 = vmatprep.subr.bf16.mxu1 %v8329_v27 }
 0x945   :  { %v8527_v19 = vpop.f32.mrf.mxu0  ;;  %v8529_v33 = vpop.f32.mrf.mxu1 }
 0x946   :  { %9070 = vst [vmem:[#allocation47_spill] sm:$0xff] %v8527_v19  ;;  %9071 = vst [vmem:[#allocation45_spill] sm:$0xff] %v8529_v33  ;;  %v3365_v33 = vadd.f32 %v3364_v7, %v8537_v47 }
 0x947   :  { %v8531_v34 = vpop.f32.mrf.mxu0  ;;  %v8533_v13 = vpop.f32.mrf.mxu1 }
 0x948   :  { %9072 = vst [vmem:[#allocation48_spill] sm:$0xff] %v8531_v34  ;;  %9073 = vst [vmem:[#allocation49_spill] sm:$0xff] %v8533_v13 }
 0x949   :  { %v8539_v5 = vpop.f32.mrf.mxu0  ;;  %v8541_v61 = vpop.f32.mrf.mxu1 }
 0x94a   :  { %9076 = vst [vmem:[#allocation29_spill] sm:$0xff] %v8539_v5  ;;  %9077 = vst [vmem:[#allocation50_spill] sm:$0xff] %v8541_v61 }
 0x94b   :  { %v8547_v30 = vpop.f32.mrf.mxu0  ;;  %v8549_v19 = vpop.f32.mrf.mxu1 }
 0x94c   :  { %9079 = vst [vmem:[#allocation51_spill] sm:$0xff] %v8547_v30  ;;  %9080 = vst [vmem:[#allocation52_spill] sm:$0xff] %v8549_v19  ;;  %v8555_v30 = vrot.slane %v3148_v3, %v9081_v6 }
 0x94d   :  { %v3743_v34 = vpop.f32.mrf.mxu0  ;;  %v3784_v13 = vpop.f32.mrf.mxu1 }
 0x94e   :  { %v3791_v59 = vadd.f32 %v3743_v34, %v3365_v33  ;;  %v3440_v7 = vadd.f32 %v3439_v9, %v8555_v30  ;;  %v8560_v33 = vrot.slane %v3148_v3, %v9082_v21  ;;  %v3511_v9 = vld [vmem:[#allocation10 + $0x8] sm:$0xff] }
 0x94f   :  { %v3745_v26 = vpop.f32.mrf.mxu0  ;;  %v3786_v24 = vpop.f32.mrf.mxu1 }
 0x950   :  { %v6443_v5 = vmul.f32 -1.442695, %v3791_v59  ;;  %v3792_v0 = vadd.f32 %v3745_v26, %v3367_v11  ;;  %v3794_v34 = vadd.f32 %v3786_v24, %v3440_v7  ;;  %v3438_v11 = vadd.f32 %v3437_v46, %v8560_v33 }
 0x951   :  { %v3747_v61 = vpop.f32.mrf.mxu0  ;;  %v3788_v32 = vpop.f32.mrf.mxu1 }
 0x952   :  { %7153 = vpow2.f32 %v6443_v5  ;;  %v6444_v1 = vmul.f32 -1.442695, %v3792_v0  ;;  %v6445_v26 = vmul.f32 -1.442695, %v3794_v34  ;;  %v3793_v5 = vadd.f32 %v3784_v13, %v3438_v11 }
 0x953   :  { %v3748_v19 = vpop.f32.mrf.mxu0  ;;  %v3789_v53 = vpop.f32.mrf.mxu1 }
 0x954   :  { %7155 = vpow2.f32 %v6444_v1 }
 0x955   :  { %7157 = vpow2.f32 %v6445_v26 }
 0x95f   :  { %v7154_v32 = vpop.eup %7153 }
 0x960   :  { %v3798_v0 = vadd.f32 1.0, %v7154_v32 }
 0x961   :  { %v7156_v61 = vpop.eup %7155 }
 0x962   :  { %7159 = vrcp.f32 %v3798_v0  ;;  %v3804_v6 = vadd.f32 1.0, %v7156_v61  ;;  %v7158_v53 = vpop.eup %7157  ;;  %v3371_v0 = vadd.f32 %v8488_v16, %v8545_v60 }
 0x963   :  { %7161 = vtanh.f32 %v3793_v5  ;;  %v3811_v3 = vadd.f32 1.0, %v7158_v53 }
 0x964   :  { %7163 = vrcp.f32 %v3804_v6 }
 0x965   :  { %7165 = vrcp.f32 %v3811_v3 }
 0x96f   :  { %v7160_v19 = vpop.eup %7159 }
 0x970   :  { %v7162_v59 = vpop.eup %7161 }
 0x971   :  { %v7164_v14 = vpop.eup %7163  ;;  %v3815_v1 = vmul.f32 %v7162_v59, %v7160_v19 }
 0x972   :  { %v3814_v24 = vmul.f32 %v7164_v14, %v3511_v9  ;;  %v7166_v46 = vpop.eup %7165 }
 0x974   :  { %v3816_v7 = vadd.f32 %v3815_v1, %v3814_v24  ;;  %v3442_v24 = vadd.f32 %v8486_v25, %v8560_v33 }
 0x976   :  { %7167 = vtanh.f32 %v3816_v7  ;;  %v8565_v13 = vsel %vm885_vm0, %v3816_v7, %v3511_v9 }
 0x983   :  { %v7168_v21 = vpop.eup %7167 }
 0x984   :  { %v3818_v34 = vmul.f32 %v7168_v21, %v7166_v46 }
 0x986   :  { %v8570_v11 = vsel %vm885_vm0, %v3818_v34, %v8446_v44  ;;  %v3369_v44 = vadd.f32 %v8484_v15, %v8537_v47 }
 0x987   :  { %v3827_v26 = vpack.c.bf16 %v8570_v11, %v8570_v11 }
 0x989   :  { %4053 = vmatmul.mubr.bf16.vlgmr.msra.gmra.mxu0 %v3827_v26  ;;  %4094 = vmatmul.mubr.bf16.vlgmr.msra.gmra.mxu1 %v3827_v26 }
 0x98a   :  { %4332 = vmatpush1.bf16.msra.mxu0 %v8331_v58  ;;  %4373 = vmatpush1.bf16.msra.mxu1 %v8333_v18 }
 0x98b   :  { %4333 = vmatprep.subr.bf16.mxu0 %v8339_v48  ;;  %4374 = vmatprep.subr.bf16.mxu1 %v8341_v63 }
 0x98c   :  { %4363 = vmatprep.mubr.bf16.mxu0 %v9033_v62  ;;  %4404 = vmatprep.mubr.bf16.mxu1 %v9033_v62 }
 0x98e   :  { %4334 = vmatpush1.bf16.msra.mxu0 %v8343_v22  ;;  %4375 = vmatpush1.bf16.msra.mxu1 %v8345_v10 }
 0x98f   :  { %4335 = vmatprep.subr.bf16.mxu0 %v8351_v17  ;;  %4376 = vmatprep.subr.bf16.mxu1 %v8353_v36 }
 0x992   :  { %4336 = vmatpush1.bf16.msra.mxu0 %v8355_v37  ;;  %4377 = vmatpush1.bf16.msra.mxu1 %v8357_v38 }
 0x993   :  { %4337 = vmatprep.subr.bf16.mxu0 %v8363_v39  ;;  %4378 = vmatprep.subr.bf16.mxu1 %v8365_v40 }
 0x996   :  { %4338 = vmatpush1.bf16.msra.mxu0 %v8367_v41  ;;  %4379 = vmatpush1.bf16.msra.mxu1 %v8369_v42 }
 0x997   :  { %4339 = vmatprep.subr.bf16.mxu0 %v8375_v43  ;;  %4380 = vmatprep.subr.bf16.mxu1 %v8377_v45 }
 0x99a   :  { %4340 = vmatpush1.bf16.msra.mxu0 %v8379_v2  ;;  %4381 = vmatpush1.bf16.msra.mxu1 %v8381_v49 }
 0x99b   :  { %4341 = vmatprep.subr.bf16.mxu0 %v8387_v4  ;;  %4382 = vmatprep.subr.bf16.mxu1 %v8389_v35 }
 0x99e   :  { %4342 = vmatpush1.bf16.msra.mxu0 %v8391_v23  ;;  %4383 = vmatpush1.bf16.msra.mxu1 %v8393_v20 }
 0x99f   :  { %4343 = vmatprep.subr.bf16.mxu0 %v8399_v8  ;;  %4384 = vmatprep.subr.bf16.mxu1 %v8401_v50 }
 0x9a2   :  { %4344 = vmatpush1.bf16.msra.mxu0 %v8403_v51  ;;  %4385 = vmatpush1.bf16.msra.mxu1 %v8405_v52 }
 0x9a3   :  { %4345 = vmatprep.subr.bf16.mxu0 %v8409_v54  ;;  %4386 = vmatprep.subr.bf16.mxu1 %v8411_v55 }
 0x9a6   :  { %4346 = vmatpush1.bf16.msra.mxu0 %v8415_v56  ;;  %4387 = vmatpush1.bf16.msra.mxu1 %v8417_v57 }
 0x9a7   :  { %4642 = vmatprep.subr.bf16.mxu0 %v8327_v28  ;;  %4683 = vmatprep.subr.bf16.mxu1 %v8329_v27  ;;  %v3444_v27 = vadd.f32 %v8490_v29, %v8555_v30 }
 0xa49   :  { %v4054_v32 = vpop.f32.mrf.mxu0  ;;  %v4095_v5 = vpop.f32.mrf.mxu1 }
 0xa4a   :  { %v4102_v61 = vadd.f32 %v4054_v32, %v3369_v44  ;;  %v4104_v16 = vadd.f32 %v4095_v5, %v3442_v24 }
 0xa4b   :  { %v4056_v6 = vpop.f32.mrf.mxu0  ;;  %v4097_v53 = vpop.f32.mrf.mxu1 }
 0xa4c   :  { %v6478_v19 = vmul.f32 -1.442695, %v4102_v61  ;;  %v4103_v9 = vadd.f32 %v4056_v6, %v3371_v0  ;;  %v4105_v15 = vadd.f32 %v4097_v53, %v3444_v27 }
 0xa4d   :  { %v4058_v59 = vpop.f32.mrf.mxu0  ;;  %v4099_v14 = vpop.f32.mrf.mxu1 }
 0xa4e   :  { %7169 = vpow2.f32 %v6478_v19  ;;  %v6479_v3 = vmul.f32 -1.442695, %v4103_v9  ;;  %v6480_v7 = vmul.f32 -1.442695, %v4105_v15 }
 0xa4f   :  { %v4059_v28 = vpop.f32.mrf.mxu0  ;;  %v4100_v1 = vpop.f32.mrf.mxu1 }
 0xa50   :  { %7171 = vpow2.f32 %v6479_v3 }
 0xa51   :  { %7173 = vtanh.f32 %v4104_v16 }
 0xa52   :  { %7175 = vpow2.f32 %v6480_v7 }
 0xa5b   :  { %v7170_v46 = vpop.eup %7169 }
 0xa5c   :  { %v4109_v21 = vadd.f32 1.0, %v7170_v46  ;;  %v8684_v46 = vld [vmem:[#allocation16 + $0xe4] ss:$16 sps:$4 sm:$0xff]  }
 0xa5d   :  { %v7172_v34 = vpop.eup %7171 }
 0xa5e   :  { %7177 = vrcp.f32 %v4109_v21  ;;  %v4115_v26 = vadd.f32 1.0, %v7172_v34  ;;  %v7174_v44 = vpop.eup %7173  ;;  %v8686_v21 = vld [vmem:[#allocation16 + $0xec] ss:$16 sps:$4 sm:$0xff]   ;;  %v8688_v34 = vld [vmem:[#allocation16 + $0xe0] ss:$16 sps:$4 sm:$0xff]  }
 0xa5f   :  { %v7176_v32 = vpop.eup %7175 }
 0xa60   :  { %7179 = vrcp.f32 %v4115_v26  ;;  %v4122_v29 = vadd.f32 1.0, %v7176_v32  ;;  %v8690_v26 = vld [vmem:[#allocation16 + $0xe8] ss:$16 sps:$4 sm:$0xff]   ;;  %v8698_v32 = vld [vmem:[#allocation16 + $0xcc] ss:$16 sps:$4 sm:$0xff]  }
 0xa62   :  { %7181 = vrcp.f32 %v4122_v29  ;;  %v8710_v29 = vld [vmem:[#allocation16 + $0xac] ss:$16 sps:$4 sm:$0xff]  }
 0xa6b   :  { %v7178_v0 = vpop.eup %7177 }
 0xa6c   :  { %v4126_v61 = vmul.f32 %v7178_v0, %v7174_v44  ;;  %v8696_v44 = vld [vmem:[#allocation16 + $0xc4] ss:$16 sps:$4 sm:$0xff]   ;;  %v8700_v0 = vld [vmem:[#allocation16 + $0xc0] ss:$16 sps:$4 sm:$0xff]  }
 0xa6d   :  { %v7180_v6 = vpop.eup %7179 }
 0xa6e   :  { %v4125_v53 = vmul.f32 %v7180_v6, %v8565_v13  ;;  %v8708_v6 = vld [vmem:[#allocation16 + $0xa4] ss:$16 sps:$4 sm:$0xff]  }
 0xa6f   :  { %v7182_v5 = vpop.eup %7181 }
 0xa70   :  { %v4127_v19 = vadd.f32 %v4126_v61, %v4125_v53  ;;  %v8702_v61 = vld [vmem:[#allocation16 + $0xc8] ss:$16 sps:$4 sm:$0xff]   ;;  %v8712_v53 = vld [vmem:[#allocation16 + $0xa0] ss:$16 sps:$4 sm:$0xff]  }
 0xa72   :  { %7183 = vtanh.f32 %v4127_v19  ;;  %v8620_v25 = vsel %vm1200_vm1, %v4127_v19, %v8565_v13  ;;  %v8714_v19 = vld [vmem:[#allocation16 + $0xa8] ss:$16 sps:$4 sm:$0xff]  }
 0xa7f   :  { %v7184_v9 = vpop.eup %7183 }
 0xa80   :  { %v4129_v59 = vmul.f32 %v7184_v9, %v7182_v5  ;;  %v8722_v5 = vld [vmem:[#allocation16 + $0x8c] ss:$16 sps:$4 sm:$0xff]   ;;  %v8724_v9 = vld [vmem:[#allocation16 + $0x80] ss:$16 sps:$4 sm:$0xff]  }
 0xa82   :  { %v8625_v14 = vsel %vm1200_vm1, %v4129_v59, %v8570_v11  ;;  %v8726_v59 = vld [vmem:[#allocation16 + $0x88] ss:$16 sps:$4 sm:$0xff]  }
 0xa83   :  { %v4138_v3 = vpack.c.bf16 %v8625_v14, %v8625_v14 }
 0xa85   :  { %4364 = vmatmul.mubr.bf16.vlgmr.msra.gmra.mxu0 %v4138_v3  ;;  %4405 = vmatmul.mubr.bf16.vlgmr.msra.gmra.mxu1 %v4138_v3  ;;  %v8734_v3 = vld [vmem:[#allocation16 + $0x60] ss:$16 sps:$4 sm:$0xff]  }
 0xa86   :  { %4643 = vmatpush1.bf16.msra.mxu0 %v8331_v58  ;;  %4684 = vmatpush1.bf16.msra.mxu1 %v8333_v18  ;;  %v3375_v58 = vadd.f32 %v8492_v31, %v8537_v47 }
 0xa87   :  { %4644 = vmatprep.subr.bf16.mxu0 %v8339_v48  ;;  %4685 = vmatprep.subr.bf16.mxu1 %v8341_v63  ;;  %v9083_v63 = vld [vmem:[#allocation32_spill] sm:$0xff] }
 0xa88   :  { %4674 = vmatprep.mubr.bf16.mxu0 %v9033_v62  ;;  %4715 = vmatprep.mubr.bf16.mxu1 %v9033_v62 }
 0xa8a   :  { %4645 = vmatpush1.bf16.msra.mxu0 %v8343_v22  ;;  %4686 = vmatpush1.bf16.msra.mxu1 %v8345_v10  ;;  %v3377_v22 = vadd.f32 %v9083_v63, %v8545_v60  ;;  %v8743_v63 = vld [vmem:[#allocation16 + $0x4c] ss:$16 sps:$4 sm:$0xff]  }
 0xa8b   :  { %4646 = vmatprep.subr.bf16.mxu0 %v8351_v17  ;;  %4687 = vmatprep.subr.bf16.mxu1 %v8353_v36 }
 0xa8e   :  { %4647 = vmatpush1.bf16.msra.mxu0 %v8355_v37  ;;  %4688 = vmatpush1.bf16.msra.mxu1 %v8357_v38 }
 0xa8f   :  { %4648 = vmatprep.subr.bf16.mxu0 %v8363_v39  ;;  %4689 = vmatprep.subr.bf16.mxu1 %v8365_v40 }
 0xa92   :  { %4649 = vmatpush1.bf16.msra.mxu0 %v8367_v41  ;;  %4690 = vmatpush1.bf16.msra.mxu1 %v8369_v42 }
 0xa93   :  { %4650 = vmatprep.subr.bf16.mxu0 %v8375_v43  ;;  %4691 = vmatprep.subr.bf16.mxu1 %v8377_v45  ;;  %v9084_v45 = vld [vmem:[#allocation34_spill] sm:$0xff] }
 0xa96   :  { %4651 = vmatpush1.bf16.msra.mxu0 %v8379_v2  ;;  %4692 = vmatpush1.bf16.msra.mxu1 %v8381_v49  ;;  %v3450_v2 = vadd.f32 %v9084_v45, %v8555_v30 }
 0xa97   :  { %4652 = vmatprep.subr.bf16.mxu0 %v8387_v4  ;;  %4693 = vmatprep.subr.bf16.mxu1 %v8389_v35  ;;  %v9085_v4 = vld [vmem:[#allocation30_spill] sm:$0xff] }
 0xa98   :  { %v3448_v35 = vadd.f32 %v9085_v4, %v8560_v33  ;;  %v9087_v4 = vld [vmem:[#allocation36_spill] sm:$0xff] }
 0xa9a   :  { %4653 = vmatpush1.bf16.msra.mxu0 %v8391_v23  ;;  %4694 = vmatpush1.bf16.msra.mxu1 %v8393_v20 }
 0xa9b   :  { %4654 = vmatprep.subr.bf16.mxu0 %v8399_v8  ;;  %4695 = vmatprep.subr.bf16.mxu1 %v8401_v50 }
 0xa9e   :  { %4655 = vmatpush1.bf16.msra.mxu0 %v8403_v51  ;;  %4696 = vmatpush1.bf16.msra.mxu1 %v8405_v52 }
 0xa9f   :  { %4656 = vmatprep.subr.bf16.mxu0 %v8409_v54  ;;  %4697 = vmatprep.subr.bf16.mxu1 %v8411_v55 }
 0xaa2   :  { %4657 = vmatpush1.bf16.msra.mxu0 %v8415_v56  ;;  %4698 = vmatpush1.bf16.msra.mxu1 %v8417_v57 }
 0xaa3   :  { %4953 = vmatprep.subr.bf16.mxu0 %v8684_v46  ;;  %4994 = vmatprep.subr.bf16.mxu1 %v8686_v21 }
 0xb45   :  { %v4365_v18 = vpop.f32.mrf.mxu0  ;;  %v4406_v48 = vpop.f32.mrf.mxu1 }
 0xb46   :  { %v4413_v10 = vadd.f32 %v4365_v18, %v3375_v58  ;;  %v4415_v23 = vadd.f32 %v4406_v48, %v3448_v35  ;;  %v8736_v58 = vld [vmem:[#allocation16 + $0x68] ss:$16 sps:$4 sm:$0xff]   ;;  %v8738_v18 = vld [vmem:[#allocation16 + $0x6c] ss:$16 sps:$4 sm:$0xff]   ;;  %v8741_v48 = vld [vmem:[#allocation16 + $0x44] ss:$16 sps:$4 sm:$0xff]   ;;  %v3381_v35 = vadd.f32 %v9087_v4, %v8545_v60 }
 0xb47   :  { %v4367_v17 = vpop.f32.mrf.mxu0  ;;  %v4408_v36 = vpop.f32.mrf.mxu1 }
 0xb48   :  { %v6513_v37 = vmul.f32 -1.442695, %v4413_v10  ;;  %v4414_v38 = vadd.f32 %v4367_v17, %v3377_v22  ;;  %v4416_v49 = vadd.f32 %v4408_v36, %v3450_v2  ;;  %v8748_v22 = vld [vmem:[#allocation16 + $0x40] ss:$16 sps:$4 sm:$0xff]   ;;  %v8750_v10 = vld [vmem:[#allocation16 + $0x48] ss:$16 sps:$4 sm:$0xff]  }
 0xb49   :  { %v4369_v39 = vpop.f32.mrf.mxu0  ;;  %v4410_v40 = vpop.f32.mrf.mxu1  ;;  %v8754_v17 = vld [vmem:[#allocation16 + $0x24] ss:$16 sps:$4 sm:$0xff]   ;;  %v8756_v36 = vld [vmem:[#allocation16 + $0x2c] ss:$16 sps:$4 sm:$0xff]  }
 0xb4a   :  { %7185 = vpow2.f32 %v6513_v37  ;;  %v6514_v41 = vmul.f32 -1.442695, %v4414_v38  ;;  %v6515_v20 = vmul.f32 -1.442695, %v4416_v49  ;;  %v8760_v37 = vld [vmem:[#allocation16 + $0x20] ss:$16 sps:$4 sm:$0xff]  }
 0xb4b   :  { %v4370_v42 = vpop.f32.mrf.mxu0  ;;  %v4411_v43 = vpop.f32.mrf.mxu1  ;;  %v8762_v38 = vld [vmem:[#allocation16 + $0x28] ss:$16 sps:$4 sm:$0xff]   ;;  %v8766_v39 = vld [vmem:[#allocation16 + $0x4] ss:$16 sps:$4 sm:$0xff]   ;;  %v8768_v40 = vld [vmem:[#allocation16 + $0xc] ss:$16 sps:$4 sm:$0xff]  }
 0xb4c   :  { %7187 = vpow2.f32 %v6514_v41  ;;  %v8772_v41 = vld [vmem:[#allocation16] ss:$16 sps:$4 sm:$0xff]   ;;  %v8774_v42 = vld [vmem:[#allocation16 + $0x8] ss:$16 sps:$4 sm:$0xff]  }
 0xb4d   :  { %7189 = vtanh.f32 %v4415_v23  ;;  %v9086_v43 = vld [vmem:[#allocation35_spill] sm:$0xff] }
 0xb4e   :  { %7191 = vpow2.f32 %v6515_v20  ;;  %v3379_v45 = vadd.f32 %v9086_v43, %v8537_v47 }
 0xb57   :  { %v7186_v8 = vpop.eup %7185 }
 0xb58   :  { %v4420_v50 = vadd.f32 1.0, %v7186_v8 }
 0xb59   :  { %v7188_v51 = vpop.eup %7187 }
 0xb5a   :  { %7193 = vrcp.f32 %v4420_v50  ;;  %v4426_v52 = vadd.f32 1.0, %v7188_v51  ;;  %v7190_v54 = vpop.eup %7189 }
 0xb5b   :  { %v7192_v55 = vpop.eup %7191 }
 0xb5c   :  { %7195 = vrcp.f32 %v4426_v52  ;;  %v4433_v13 = vadd.f32 1.0, %v7192_v55 }
 0xb5e   :  { %7197 = vrcp.f32 %v4433_v13 }
 0xb67   :  { %v7194_v56 = vpop.eup %7193 }
 0xb68   :  { %v4437_v57 = vmul.f32 %v7194_v56, %v7190_v54 }
 0xb69   :  { %v7196_v31 = vpop.eup %7195 }
 0xb6a   :  { %v4436_v11 = vmul.f32 %v7196_v31, %v8620_v25  ;;  %v9088_v31 = vld [vmem:[#allocation38_spill] sm:$0xff] }
 0xb6b   :  { %v7198_v27 = vpop.eup %7197  ;;  %v3454_v13 = vadd.f32 %v9088_v31, %v8555_v30 }
 0xb6c   :  { %v4438_v28 = vadd.f32 %v4437_v57, %v4436_v11 }
 0xb6e   :  { %7199 = vtanh.f32 %v4438_v28  ;;  %v8673_v1 = vsel %vm1516_vm2, %v4438_v28, %v8620_v25  ;;  %v8720_v25 = vld [vmem:[#allocation16 + $0x84] ss:$16 sps:$4 sm:$0xff]   ;;  %v9089_v28 = vld [vmem:[#allocation33_spill] sm:$0xff] }
 0xb7b   :  { %v7200_v15 = vpop.eup %7199 }
 0xb7c   :  { %v4440_v24 = vmul.f32 %v7200_v15, %v7198_v27  ;;  %v3452_v27 = vadd.f32 %v9089_v28, %v8560_v33  ;;  %v9091_v28 = vld [vmem:[#allocation40_spill] sm:$0xff] }
 0xb7e   :  { %v8678_v16 = vsel %vm1516_vm2, %v4440_v24, %v8625_v14  ;;  %v8730_v14 = vld [vmem:[#allocation16 + $0x64] ss:$16 sps:$4 sm:$0xff]  }
 0xb7f   :  { %v4449_v7 = vpack.c.bf16 %v8678_v16, %v8678_v16 }
 0xb81   :  { %4675 = vmatmul.mubr.bf16.vlgmr.msra.gmra.mxu0 %v4449_v7  ;;  %4716 = vmatmul.mubr.bf16.vlgmr.msra.gmra.mxu1 %v4449_v7 }
 0xb82   :  { %4985 = vmatprep.mubr.bf16.mxu0 %v9033_v62  ;;  %5026 = vmatprep.mubr.bf16.mxu1 %v9033_v62 }
 0xb83   :  { %4954 = vmatpush1.bf16.msra.mxu0 %v8688_v34  ;;  %4995 = vmatpush1.bf16.msra.mxu1 %v8690_v26 }
 0xb84   :  { %4955 = vmatprep.subr.bf16.mxu0 %v8696_v44  ;;  %4996 = vmatprep.subr.bf16.mxu1 %v8698_v32 }
 0xb87   :  { %4956 = vmatpush1.bf16.msra.mxu0 %v8700_v0  ;;  %4997 = vmatpush1.bf16.msra.mxu1 %v8702_v61 }
 0xb88   :  { %4957 = vmatprep.subr.bf16.mxu0 %v8708_v6  ;;  %4998 = vmatprep.subr.bf16.mxu1 %v8710_v29 }
 0xb8b   :  { %4958 = vmatpush1.bf16.msra.mxu0 %v8712_v53  ;;  %4999 = vmatpush1.bf16.msra.mxu1 %v8714_v19 }
 0xb8c   :  { %4959 = vmatprep.subr.bf16.mxu0 %v8720_v25  ;;  %5000 = vmatprep.subr.bf16.mxu1 %v8722_v5 }
 0xb8f   :  { %4960 = vmatpush1.bf16.msra.mxu0 %v8724_v9  ;;  %5001 = vmatpush1.bf16.msra.mxu1 %v8726_v59 }
 0xb90   :  { %4961 = vmatprep.subr.bf16.mxu0 %v8730_v14  ;;  %5002 = vmatprep.subr.bf16.mxu1 %v8738_v18 }
 0xb93   :  { %4962 = vmatpush1.bf16.msra.mxu0 %v8734_v3  ;;  %5003 = vmatpush1.bf16.msra.mxu1 %v8736_v58 }
 0xb94   :  { %4963 = vmatprep.subr.bf16.mxu0 %v8741_v48  ;;  %5004 = vmatprep.subr.bf16.mxu1 %v8743_v63 }
 0xb97   :  { %4964 = vmatpush1.bf16.msra.mxu0 %v8748_v22  ;;  %5005 = vmatpush1.bf16.msra.mxu1 %v8750_v10 }
 0xb98   :  { %4965 = vmatprep.subr.bf16.mxu0 %v8754_v17  ;;  %5006 = vmatprep.subr.bf16.mxu1 %v8756_v36 }
 0xb9b   :  { %4966 = vmatpush1.bf16.msra.mxu0 %v8760_v37  ;;  %5007 = vmatpush1.bf16.msra.mxu1 %v8762_v38 }
 0xb9c   :  { %4967 = vmatprep.subr.bf16.mxu0 %v8766_v39  ;;  %5008 = vmatprep.subr.bf16.mxu1 %v8768_v40 }
 0xb9f   :  { %4968 = vmatpush1.bf16.msra.mxu0 %v8772_v41  ;;  %5009 = vmatpush1.bf16.msra.mxu1 %v8774_v42 }
 0xba0   :  { %5264 = vmatprep.subr.bf16.mxu0 %v8684_v46  ;;  %5305 = vmatprep.subr.bf16.mxu1 %v8686_v21 }
 0xc41   :  { %v4676_v2 = vpop.f32.mrf.mxu0  ;;  %v4717_v49 = vpop.f32.mrf.mxu1 }
 0xc42   :  { %v4724_v23 = vadd.f32 %v4676_v2, %v3379_v45  ;;  %v4726_v15 = vadd.f32 %v4717_v49, %v3452_v27  ;;  %v3387_v27 = vadd.f32 %v9091_v28, %v8545_v60 }
 0xc43   :  { %v4678_v20 = vpop.f32.mrf.mxu0  ;;  %v4719_v8 = vpop.f32.mrf.mxu1 }
 0xc44   :  { %v6548_v50 = vmul.f32 -1.442695, %v4724_v23  ;;  %v4725_v51 = vadd.f32 %v4678_v20, %v3381_v35  ;;  %v4727_v11 = vadd.f32 %v4719_v8, %v3454_v13 }
 0xc45   :  { %v4680_v52 = vpop.f32.mrf.mxu0  ;;  %v4721_v54 = vpop.f32.mrf.mxu1 }
 0xc46   :  { %7201 = vpow2.f32 %v6548_v50  ;;  %v6549_v55 = vmul.f32 -1.442695, %v4725_v51  ;;  %v6550_v24 = vmul.f32 -1.442695, %v4727_v11 }
 0xc47   :  { %v4681_v56 = vpop.f32.mrf.mxu0  ;;  %v4722_v57 = vpop.f32.mrf.mxu1 }
 0xc48   :  { %7203 = vpow2.f32 %v6549_v55 }
 0xc49   :  { %7205 = vtanh.f32 %v4726_v15 }
 0xc4a   :  { %7207 = vpow2.f32 %v6550_v24 }
 0xc53   :  { %v7202_v7 = vpop.eup %7201 }
 0xc54   :  { %v4731_v43 = vadd.f32 1.0, %v7202_v7 }
 0xc55   :  { %v7204_v45 = vpop.eup %7203 }
 0xc56   :  { %7209 = vrcp.f32 %v4731_v43  ;;  %v4737_v2 = vadd.f32 1.0, %v7204_v45  ;;  %v7206_v4 = vpop.eup %7205 }
 0xc57   :  { %v7208_v35 = vpop.eup %7207 }
 0xc58   :  { %7211 = vrcp.f32 %v4737_v2  ;;  %v4744_v51 = vadd.f32 1.0, %v7208_v35 }
 0xc5a   :  { %7213 = vrcp.f32 %v4744_v51 }
 0xc63   :  { %v7210_v23 = vpop.eup %7209 }
 0xc64   :  { %v4748_v20 = vmul.f32 %v7210_v23, %v7206_v4 }
 0xc65   :  { %v7212_v50 = vpop.eup %7211 }
 0xc66   :  { %v4747_v8 = vmul.f32 %v7212_v50, %v8673_v1  ;;  %v9092_v50 = vld [vmem:[#allocation42_spill] sm:$0xff] }
 0xc67   :  { %v7214_v54 = vpop.eup %7213  ;;  %v3460_v51 = vadd.f32 %v9092_v50, %v8555_v30 }
 0xc68   :  { %v4749_v52 = vadd.f32 %v4748_v20, %v4747_v8 }
 0xc6a   :  { %7215 = vtanh.f32 %v4749_v52  ;;  %v8794_v49 = vsel %vm1832_vm3, %v4749_v52, %v8673_v1  ;;  %v9090_v1 = vld [vmem:[#allocation39_spill] sm:$0xff]  ;;  %v9093_v52 = vld [vmem:[#allocation37_spill] sm:$0xff] }
 0xc77   :  { %v7216_v55 = vpop.eup %7215 }
 0xc78   :  { %v4751_v56 = vmul.f32 %v7216_v55, %v7214_v54  ;;  %v3458_v54 = vadd.f32 %v9093_v52, %v8560_v33  ;;  %v9095_v52 = vld [vmem:[#allocation44_spill] sm:$0xff] }
 0xc7a   :  { %v8799_v57 = vsel %vm1832_vm3, %v4751_v56, %v8678_v16  ;;  %v3385_v16 = vadd.f32 %v9090_v1, %v8537_v47 }
 0xc7b   :  { %v4760_v31 = vpack.c.bf16 %v8799_v57, %v8799_v57 }
 0xc7d   :  { %4986 = vmatmul.mubr.bf16.vlgmr.msra.gmra.mxu0 %v4760_v31  ;;  %5027 = vmatmul.mubr.bf16.vlgmr.msra.gmra.mxu1 %v4760_v31 }
 0xc7e   :  { %5265 = vmatpush1.bf16.msra.mxu0 %v8688_v34  ;;  %5306 = vmatpush1.bf16.msra.mxu1 %v8690_v26 }
 0xc7f   :  { %5266 = vmatprep.subr.bf16.mxu0 %v8696_v44  ;;  %5307 = vmatprep.subr.bf16.mxu1 %v8698_v32 }
 0xc80   :  { %5296 = vmatprep.mubr.bf16.mxu0 %v9033_v62  ;;  %5337 = vmatprep.mubr.bf16.mxu1 %v9033_v62 }
 0xc82   :  { %5267 = vmatpush1.bf16.msra.mxu0 %v8700_v0  ;;  %5308 = vmatpush1.bf16.msra.mxu1 %v8702_v61 }
 0xc83   :  { %5268 = vmatprep.subr.bf16.mxu0 %v8708_v6  ;;  %5309 = vmatprep.subr.bf16.mxu1 %v8710_v29 }
 0xc86   :  { %5269 = vmatpush1.bf16.msra.mxu0 %v8712_v53  ;;  %5310 = vmatpush1.bf16.msra.mxu1 %v8714_v19 }
 0xc87   :  { %5270 = vmatprep.subr.bf16.mxu0 %v8720_v25  ;;  %5311 = vmatprep.subr.bf16.mxu1 %v8722_v5 }
 0xc8a   :  { %5271 = vmatpush1.bf16.msra.mxu0 %v8724_v9  ;;  %5312 = vmatpush1.bf16.msra.mxu1 %v8726_v59 }
 0xc8b   :  { %5272 = vmatprep.subr.bf16.mxu0 %v8730_v14  ;;  %5313 = vmatprep.subr.bf16.mxu1 %v8738_v18 }
 0xc8e   :  { %5273 = vmatpush1.bf16.msra.mxu0 %v8734_v3  ;;  %5314 = vmatpush1.bf16.msra.mxu1 %v8736_v58 }
 0xc8f   :  { %5274 = vmatprep.subr.bf16.mxu0 %v8741_v48  ;;  %5315 = vmatprep.subr.bf16.mxu1 %v8743_v63 }
 0xc92   :  { %5275 = vmatpush1.bf16.msra.mxu0 %v8748_v22  ;;  %5316 = vmatpush1.bf16.msra.mxu1 %v8750_v10 }
 0xc93   :  { %5276 = vmatprep.subr.bf16.mxu0 %v8754_v17  ;;  %5317 = vmatprep.subr.bf16.mxu1 %v8756_v36 }
 0xc96   :  { %5277 = vmatpush1.bf16.msra.mxu0 %v8760_v37  ;;  %5318 = vmatpush1.bf16.msra.mxu1 %v8762_v38 }
 0xc97   :  { %5278 = vmatprep.subr.bf16.mxu0 %v8766_v39  ;;  %5319 = vmatprep.subr.bf16.mxu1 %v8768_v40 }
 0xc9a   :  { %5279 = vmatpush1.bf16.msra.mxu0 %v8772_v41  ;;  %5320 = vmatpush1.bf16.msra.mxu1 %v8774_v42 }
 0xc9b   :  { %5575 = vmatprep.subr.bf16.mxu0 %v8684_v46  ;;  %5616 = vmatprep.subr.bf16.mxu1 %v8686_v21 }
 0xd3d   :  { %v4987_v13 = vpop.f32.mrf.mxu0  ;;  %v5028_v11 = vpop.f32.mrf.mxu1 }
 0xd3e   :  { %v5035_v15 = vadd.f32 %v4987_v13, %v3385_v16  ;;  %v5037_v55 = vadd.f32 %v5028_v11, %v3458_v54  ;;  %v3391_v54 = vadd.f32 %v9095_v52, %v8545_v60 }
 0xd3f   :  { %v4989_v24 = vpop.f32.mrf.mxu0  ;;  %v5030_v7 = vpop.f32.mrf.mxu1 }
 0xd40   :  { %v6583_v43 = vmul.f32 -1.442695, %v5035_v15  ;;  %v5036_v45 = vadd.f32 %v4989_v24, %v3387_v27  ;;  %v5038_v8 = vadd.f32 %v5030_v7, %v3460_v51 }
 0xd41   :  { %v4991_v2 = vpop.f32.mrf.mxu0  ;;  %v5032_v4 = vpop.f32.mrf.mxu1 }
 0xd42   :  { %7217 = vpow2.f32 %v6583_v43  ;;  %v6584_v35 = vmul.f32 -1.442695, %v5036_v45  ;;  %v6585_v56 = vmul.f32 -1.442695, %v5038_v8 }
 0xd43   :  { %v4992_v23 = vpop.f32.mrf.mxu0  ;;  %v5033_v20 = vpop.f32.mrf.mxu1 }
 0xd44   :  { %7219 = vpow2.f32 %v6584_v35 }
 0xd45   :  { %7221 = vtanh.f32 %v5037_v55 }
 0xd46   :  { %7223 = vpow2.f32 %v6585_v56 }
 0xd4f   :  { %v7218_v31 = vpop.eup %7217 }
 0xd50   :  { %v5042_v1 = vadd.f32 1.0, %v7218_v31 }
 0xd51   :  { %v7220_v16 = vpop.eup %7219 }
 0xd52   :  { %7225 = vrcp.f32 %v5042_v1  ;;  %v5048_v13 = vadd.f32 1.0, %v7220_v16  ;;  %v7222_v28 = vpop.eup %7221 }
 0xd53   :  { %v7224_v27 = vpop.eup %7223 }
 0xd54   :  { %7227 = vrcp.f32 %v5048_v13  ;;  %v5055_v45 = vadd.f32 1.0, %v7224_v27 }
 0xd56   :  { %7229 = vrcp.f32 %v5055_v45  ;;  %v9097_v45 = vld [vmem:[#allocation41_spill] sm:$0xff] }
 0xd5f   :  { %v7226_v15 = vpop.eup %7225 }
 0xd60   :  { %v5059_v24 = vmul.f32 %v7226_v15, %v7222_v28 }
 0xd61   :  { %v7228_v43 = vpop.eup %7227 }
 0xd62   :  { %v5058_v7 = vmul.f32 %v7228_v43, %v8794_v49 }
 0xd63   :  { %v7230_v4 = vpop.eup %7229 }
 0xd64   :  { %v5060_v2 = vadd.f32 %v5059_v24, %v5058_v7  ;;  %v3462_v7 = vadd.f32 %v9097_v45, %v8560_v33 }
 0xd66   :  { %7231 = vtanh.f32 %v5060_v2  ;;  %v8849_v11 = vsel %vm2148_vm4, %v5060_v2, %v8794_v49  ;;  %v9094_v49 = vld [vmem:[#allocation43_spill] sm:$0xff] }
 0xd73   :  { %v7232_v35 = vpop.eup %7231 }
 0xd74   :  { %v5062_v23 = vmul.f32 %v7232_v35, %v7230_v4 }
 0xd76   :  { %v8854_v20 = vsel %vm2148_vm4, %v5062_v23, %v8799_v57  ;;  %v3389_v57 = vadd.f32 %v9094_v49, %v8537_v47 }
 0xd77   :  { %v5071_v50 = vpack.c.bf16 %v8854_v20, %v8854_v20 }
 0xd79   :  { %5297 = vmatmul.mubr.bf16.vlgmr.msra.gmra.mxu0 %v5071_v50  ;;  %5338 = vmatmul.mubr.bf16.vlgmr.msra.gmra.mxu1 %v5071_v50 }
 0xd7a   :  { %5576 = vmatpush1.bf16.msra.mxu0 %v8688_v34  ;;  %5617 = vmatpush1.bf16.msra.mxu1 %v8690_v26 }
 0xd7b   :  { %5577 = vmatprep.subr.bf16.mxu0 %v8696_v44  ;;  %5618 = vmatprep.subr.bf16.mxu1 %v8698_v32 }
 0xd7c   :  { %5607 = vmatprep.mubr.bf16.mxu0 %v9033_v62  ;;  %5648 = vmatprep.mubr.bf16.mxu1 %v9033_v62 }
 0xd7e   :  { %5578 = vmatpush1.bf16.msra.mxu0 %v8700_v0  ;;  %5619 = vmatpush1.bf16.msra.mxu1 %v8702_v61 }
 0xd7f   :  { %5579 = vmatprep.subr.bf16.mxu0 %v8708_v6  ;;  %5620 = vmatprep.subr.bf16.mxu1 %v8710_v29 }
 0xd82   :  { %5580 = vmatpush1.bf16.msra.mxu0 %v8712_v53  ;;  %5621 = vmatpush1.bf16.msra.mxu1 %v8714_v19 }
 0xd83   :  { %5581 = vmatprep.subr.bf16.mxu0 %v8720_v25  ;;  %5622 = vmatprep.subr.bf16.mxu1 %v8722_v5 }
 0xd86   :  { %5582 = vmatpush1.bf16.msra.mxu0 %v8724_v9  ;;  %5623 = vmatpush1.bf16.msra.mxu1 %v8726_v59 }
 0xd87   :  { %5583 = vmatprep.subr.bf16.mxu0 %v8730_v14  ;;  %5624 = vmatprep.subr.bf16.mxu1 %v8738_v18 }
 0xd8a   :  { %5584 = vmatpush1.bf16.msra.mxu0 %v8734_v3  ;;  %5625 = vmatpush1.bf16.msra.mxu1 %v8736_v58 }
 0xd8b   :  { %5585 = vmatprep.subr.bf16.mxu0 %v8741_v48  ;;  %5626 = vmatprep.subr.bf16.mxu1 %v8743_v63 }
 0xd8e   :  { %5586 = vmatpush1.bf16.msra.mxu0 %v8748_v22  ;;  %5627 = vmatpush1.bf16.msra.mxu1 %v8750_v10 }
 0xd8f   :  { %5587 = vmatprep.subr.bf16.mxu0 %v8754_v17  ;;  %5628 = vmatprep.subr.bf16.mxu1 %v8756_v36 }
 0xd92   :  { %5588 = vmatpush1.bf16.msra.mxu0 %v8760_v37  ;;  %5629 = vmatpush1.bf16.msra.mxu1 %v8762_v38 }
 0xd93   :  { %5589 = vmatprep.subr.bf16.mxu0 %v8766_v39  ;;  %5630 = vmatprep.subr.bf16.mxu1 %v8768_v40 }
 0xd96   :  { %5590 = vmatpush1.bf16.msra.mxu0 %v8772_v41  ;;  %5631 = vmatpush1.bf16.msra.mxu1 %v8774_v42 }
 0xd97   :  { %5886 = vmatprep.subr.bf16.mxu0 %v8684_v46  ;;  %5927 = vmatprep.subr.bf16.mxu1 %v8686_v21  ;;  %v9096_v21 = vld [vmem:[#allocation46_spill] sm:$0xff] }
 0xd98   :  { %v3464_v24 = vadd.f32 %v9096_v21, %v8555_v30 }
 0xe39   :  { %v5298_v51 = vpop.f32.mrf.mxu0  ;;  %v5339_v8 = vpop.f32.mrf.mxu1 }
 0xe3a   :  { %v5346_v55 = vadd.f32 %v5298_v51, %v3389_v57  ;;  %v5348_v2 = vadd.f32 %v5339_v8, %v3462_v7 }
 0xe3b   :  { %v5300_v56 = vpop.f32.mrf.mxu0  ;;  %v5341_v31 = vpop.f32.mrf.mxu1 }
 0xe3c   :  { %v6618_v1 = vmul.f32 -1.442695, %v5346_v55  ;;  %v5347_v16 = vadd.f32 %v5300_v56, %v3391_v54  ;;  %v5349_v43 = vadd.f32 %v5341_v31, %v3464_v24 }
 0xe3d   :  { %v5302_v13 = vpop.f32.mrf.mxu0  ;;  %v5343_v28 = vpop.f32.mrf.mxu1 }
 0xe3e   :  { %7233 = vpow2.f32 %v6618_v1  ;;  %v6619_v27 = vmul.f32 -1.442695, %v5347_v16  ;;  %v6620_v4 = vmul.f32 -1.442695, %v5349_v43 }
 0xe3f   :  { %v5303_v46 = vpop.f32.mrf.mxu0  ;;  %v5344_v15 = vpop.f32.mrf.mxu1 }
 0xe40   :  { %7235 = vpow2.f32 %v6619_v27 }
 0xe41   :  { %7237 = vtanh.f32 %v5348_v2 }
 0xe42   :  { %7239 = vpow2.f32 %v6620_v4 }
 0xe4b   :  { %v7234_v35 = vpop.eup %7233 }
 0xe4c   :  { %v5353_v23 = vadd.f32 1.0, %v7234_v35  ;;  %v9102_v35 = vld [vmem:[#allocation29_spill] sm:$0xff] }
 0xe4d   :  { %v7236_v50 = vpop.eup %7235 }
 0xe4e   :  { %7241 = vrcp.f32 %v5353_v23  ;;  %v5359_v49 = vadd.f32 1.0, %v7236_v50  ;;  %v7238_v57 = vpop.eup %7237  ;;  %v3399_v23 = vadd.f32 %v9102_v35, %v8537_v47 }
 0xe4f   :  { %v7240_v51 = vpop.eup %7239 }
 0xe50   :  { %7243 = vrcp.f32 %v5359_v49  ;;  %v5366_v56 = vadd.f32 1.0, %v7240_v51 }
 0xe52   :  { %7245 = vrcp.f32 %v5366_v56 }
 0xe5b   :  { %v7242_v52 = vpop.eup %7241 }
 0xe5c   :  { %v5370_v54 = vmul.f32 %v7242_v52, %v7238_v57  ;;  %v9103_v57 = vld [vmem:[#allocation51_spill] sm:$0xff] }
 0xe5d   :  { %v7244_v55 = vpop.eup %7243  ;;  %v3401_v51 = vadd.f32 %v9103_v57, %v8545_v60 }
 0xe5e   :  { %v5369_v31 = vmul.f32 %v7244_v55, %v8849_v11 }
 0xe5f   :  { %v7246_v16 = vpop.eup %7245 }
 0xe60   :  { %v5371_v1 = vadd.f32 %v5370_v54, %v5369_v31 }
 0xe62   :  { %7247 = vtanh.f32 %v5371_v1  ;;  %v8904_v8 = vsel %vm2464_vm5, %v5371_v1, %v8849_v11 }
 0xe6f   :  { %v7248_v13 = vpop.eup %7247 }
 0xe70   :  { %v5373_v28 = vmul.f32 %v7248_v13, %v7246_v16 }
 0xe72   :  { %v8909_v27 = vsel %vm2464_vm5, %v5373_v28, %v8854_v20  ;;  %v9104_v28 = vld [vmem:[#allocation52_spill] sm:$0xff] }
 0xe73   :  { %v5382_v46 = vpack.c.bf16 %v8909_v27, %v8909_v27 }
 0xe75   :  { %5608 = vmatmul.mubr.bf16.vlgmr.msra.gmra.mxu0 %v5382_v46  ;;  %5649 = vmatmul.mubr.bf16.vlgmr.msra.gmra.mxu1 %v5382_v46  ;;  %v9105_v46 = vld [vmem:[#allocation50_spill] sm:$0xff] }
 0xe76   :  { %5887 = vmatpush1.bf16.msra.mxu0 %v8688_v34  ;;  %5928 = vmatpush1.bf16.msra.mxu1 %v8690_v26 }
 0xe77   :  { %5888 = vmatprep.subr.bf16.mxu0 %v8696_v44  ;;  %5929 = vmatprep.subr.bf16.mxu1 %v8698_v32  ;;  %v9099_v32 = vld [vmem:[#allocation48_spill] sm:$0xff] }
 0xe78   :  { %5918 = vmatprep.mubr.bf16.mxu0 %v9033_v62  ;;  %5959 = vmatprep.mubr.bf16.mxu1 %v9033_v62  ;;  %v9098_v62 = vld [vmem:[#allocation47_spill] sm:$0xff] }
 0xe79   :  { %v3395_v34 = vadd.f32 %v9098_v62, %v8537_v47  ;;  %v3474_v47 = vadd.f32 %v9104_v28, %v8555_v30  ;;  %v3472_v62 = vadd.f32 %v9105_v46, %v8560_v33 }
 0xe7a   :  { %5889 = vmatpush1.bf16.msra.mxu0 %v8700_v0  ;;  %5930 = vmatpush1.bf16.msra.mxu1 %v8702_v61  ;;  %v3397_v0 = vadd.f32 %v9099_v32, %v8545_v60 }
 0xe7b   :  { %5890 = vmatprep.subr.bf16.mxu0 %v8708_v6  ;;  %5931 = vmatprep.subr.bf16.mxu1 %v8710_v29 }
 0xe7e   :  { %5891 = vmatpush1.bf16.msra.mxu0 %v8712_v53  ;;  %5932 = vmatpush1.bf16.msra.mxu1 %v8714_v19 }
 0xe7f   :  { %5892 = vmatprep.subr.bf16.mxu0 %v8720_v25  ;;  %5933 = vmatprep.subr.bf16.mxu1 %v8722_v5 }
 0xe82   :  { %5893 = vmatpush1.bf16.msra.mxu0 %v8724_v9  ;;  %5934 = vmatpush1.bf16.msra.mxu1 %v8726_v59 }
 0xe83   :  { %5894 = vmatprep.subr.bf16.mxu0 %v8730_v14  ;;  %5935 = vmatprep.subr.bf16.mxu1 %v8738_v18 }
 0xe86   :  { %5895 = vmatpush1.bf16.msra.mxu0 %v8734_v3  ;;  %5936 = vmatpush1.bf16.msra.mxu1 %v8736_v58  ;;  %v9100_v3 = vld [vmem:[#allocation49_spill] sm:$0xff] }
 0xe87   :  { %5896 = vmatprep.subr.bf16.mxu0 %v8741_v48  ;;  %5937 = vmatprep.subr.bf16.mxu1 %v8743_v63  ;;  %v3470_v58 = vadd.f32 %v9100_v3, %v8555_v30  ;;  %v9101_v48 = vld [vmem:[#allocation45_spill] sm:$0xff] }
 0xe88   :  { %v3468_v63 = vadd.f32 %v9101_v48, %v8560_v33 }
 0xe8a   :  { %5897 = vmatpush1.bf16.msra.mxu0 %v8748_v22  ;;  %5938 = vmatpush1.bf16.msra.mxu1 %v8750_v10 }
 0xe8b   :  { %5898 = vmatprep.subr.bf16.mxu0 %v8754_v17  ;;  %5939 = vmatprep.subr.bf16.mxu1 %v8756_v36 }
 0xe8e   :  { %5899 = vmatpush1.bf16.msra.mxu0 %v8760_v37  ;;  %5940 = vmatpush1.bf16.msra.mxu1 %v8762_v38 }
 0xe8f   :  { %5900 = vmatprep.subr.bf16.mxu0 %v8766_v39  ;;  %5941 = vmatprep.subr.bf16.mxu1 %v8768_v40 }
 0xe92   :  { %5901 = vmatpush1.bf16.msra.mxu0 %v8772_v41  ;;  %5942 = vmatpush1.bf16.msra.mxu1 %v8774_v42 }
 0xf35   :  { %v5609_v26 = vpop.f32.mrf.mxu0  ;;  %v5650_v44 = vpop.f32.mrf.mxu1 }
 0xf36   :  { %v5657_v61 = vadd.f32 %v5609_v26, %v3395_v34  ;;  %v5659_v22 = vadd.f32 %v5650_v44, %v3468_v63 }
 0xf37   :  { %v5611_v6 = vpop.f32.mrf.mxu0  ;;  %v5652_v29 = vpop.f32.mrf.mxu1 }
 0xf38   :  { %v6653_v53 = vmul.f32 -1.442695, %v5657_v61  ;;  %v5658_v19 = vadd.f32 %v5611_v6, %v3397_v0  ;;  %v5660_v18 = vadd.f32 %v5652_v29, %v3470_v58 }
 0xf39   :  { %v5613_v25 = vpop.f32.mrf.mxu0  ;;  %v5654_v5 = vpop.f32.mrf.mxu1 }
 0xf3a   :  { %7249 = vpow2.f32 %v6653_v53  ;;  %v6654_v9 = vmul.f32 -1.442695, %v5658_v19  ;;  %v6655_v10 = vmul.f32 -1.442695, %v5660_v18 }
 0xf3b   :  { %v5614_v59 = vpop.f32.mrf.mxu0  ;;  %v5655_v14 = vpop.f32.mrf.mxu1 }
 0xf3c   :  { %7251 = vpow2.f32 %v6654_v9 }
 0xf3d   :  { %7253 = vtanh.f32 %v5659_v22 }
 0xf3e   :  { %7255 = vpow2.f32 %v6655_v10 }
 0xf47   :  { %v7250_v17 = vpop.eup %7249 }
 0xf48   :  { %v5664_v36 = vadd.f32 1.0, %v7250_v17 }
 0xf49   :  { %v7252_v37 = vpop.eup %7251 }
 0xf4a   :  { %7257 = vrcp.f32 %v5664_v36  ;;  %v5670_v38 = vadd.f32 1.0, %v7252_v37  ;;  %v7254_v39 = vpop.eup %7253 }
 0xf4b   :  { %v7256_v40 = vpop.eup %7255 }
 0xf4c   :  { %7259 = vrcp.f32 %v5670_v38  ;;  %v5677_v20 = vadd.f32 1.0, %v7256_v40 }
 0xf4e   :  { %7261 = vrcp.f32 %v5677_v20 }
 0xf57   :  { %v7258_v41 = vpop.eup %7257 }
 0xf58   :  { %v5681_v42 = vmul.f32 %v7258_v41, %v7254_v39 }
 0xf59   :  { %v7260_v11 = vpop.eup %7259 }
 0xf5a   :  { %v5680_v15 = vmul.f32 %v7260_v11, %v8904_v8 }
 0xf5b   :  { %v7262_v43 = vpop.eup %7261 }
 0xf5c   :  { %v5682_v21 = vadd.f32 %v5681_v42, %v5680_v15 }
 0xf5e   :  { %7263 = vtanh.f32 %v5682_v21  ;;  %v5686_v24 = vsel %vm2780_vm6, %v5682_v21, %v8904_v8 }
 0xf6b   :  { %v7264_v45 = vpop.eup %7263 }
 0xf6c   :  { %v5684_v7 = vmul.f32 %v7264_v45, %v7262_v43 }
 0xf6e   :  { %v5685_v2 = vsel %vm2780_vm6, %v5684_v7, %v8909_v27 }
 0xf6f   :  { %v5693_v4 = vpack.c.bf16 %v5685_v2, %v5685_v2 }
 0xf71   :  { %5919 = vmatmul.mubr.bf16.vlgmr.msra.gmra.mxu0 %v5693_v4  ;;  %5960 = vmatmul.mubr.bf16.vlgmr.msra.gmra.mxu1 %v5693_v4 }
0x1031   :  { %v5920_v50 = vpop.f32.mrf.mxu0  ;;  %v5961_v49 = vpop.f32.mrf.mxu1 }
0x1032   :  { %v5968_v52 = vadd.f32 %v5920_v50, %v3399_v23  ;;  %v5970_v60 = vadd.f32 %v5961_v49, %v3472_v62 }
0x1033   :  { %v5922_v54 = vpop.f32.mrf.mxu0  ;;  %v5963_v55 = vpop.f32.mrf.mxu1 }
0x1034   :  { %v6688_v56 = vmul.f32 -1.442695, %v5968_v52  ;;  %v5969_v31 = vadd.f32 %v5922_v54, %v3401_v51  ;;  %v5971_v27 = vadd.f32 %v5963_v55, %v3474_v47 }
0x1035   :  { %v5924_v1 = vpop.f32.mrf.mxu0  ;;  %v5965_v8 = vpop.f32.mrf.mxu1 }
0x1036   :  { %7265 = vpow2.f32 %v6688_v56  ;;  %v6689_v12 = vmul.f32 -1.442695, %v5969_v31  ;;  %v6690_v34 = vmul.f32 -1.442695, %v5971_v27 }
0x1037   :  { %v5925_v16 = vpop.f32.mrf.mxu0  ;;  %v5966_v13 = vpop.f32.mrf.mxu1 }
0x1038   :  { %7267 = vpow2.f32 %v6689_v12 }
0x1039   :  { %7269 = vtanh.f32 %v5970_v60 }
0x103a   :  { %7271 = vpow2.f32 %v6690_v34 }
0x1043   :  { %v7266_v26 = vpop.eup %7265 }
0x1044   :  { %v5975_v44 = vadd.f32 1.0, %v7266_v26 }
0x1045   :  { %v7268_v32 = vpop.eup %7267 }
0x1046   :  { %7273 = vrcp.f32 %v5975_v44  ;;  %v5981_v0 = vadd.f32 1.0, %v7268_v32  ;;  %v7270_v61 = vpop.eup %7269 }
0x1047   :  { %v7272_v6 = vpop.eup %7271 }
0x1048   :  { %7275 = vrcp.f32 %v5981_v0  ;;  %v5988_v30 = vadd.f32 1.0, %v7272_v6 }
0x104a   :  { %7277 = vrcp.f32 %v5988_v30 }
0x1053   :  { %v7274_v29 = vpop.eup %7273 }
0x1054   :  { %v5992_v53 = vmul.f32 %v7274_v29, %v7270_v61 }
0x1055   :  { %v7276_v19 = vpop.eup %7275 }
0x1056   :  { %v5991_v25 = vmul.f32 %v7276_v19, %v5686_v24 }
0x1057   :  { %v7278_v59 = vpop.eup %7277 }
0x1058   :  { %v5993_v5 = vadd.f32 %v5992_v53, %v5991_v25 }
0x105a   :  { %7279 = vtanh.f32 %v5993_v5  ;;  %v5997_v9 = vsel %vm3096_vm10, %v5993_v5, %v5686_v24 }
0x105b   :  { %6003 = vst [vmem:[#allocation21 + $0x8] sm:$0xff] %v5997_v9 }
0x1067   :  { %v7280_v14 = vpop.eup %7279 }
0x1068   :  { %v5995_v3 = vmul.f32 %v7280_v14, %v7278_v59 }
0x106a   :  { %v5996_v58 = vsel %vm3096_vm10, %v5995_v3, %v5685_v2  ;;  %v5998_v18 = vsel %vm3096_vm10, %v5995_v3, 0.0 }
0x106b   :  { %6001 = vst [vmem:[#allocation19 + $0x8] sm:$0xff] %v5996_v58  ;;  %6005 = vst [vmem:[#allocation18] sm:$0xff] %v5998_v18 }
0x106c   :  { %7453 = shalt.err (!%p7450_p2)
}
0x106d   :  { %6027 = dma.vmem_to_hbm [thread:$0]  %s6022_s20, 256, %s9000_s11, [#allocation20], %s7518_s29, %s7518_s29, %s7519_s30  }
0x106e   :  { %s7462_s0 = scalar_lea.vmem %s6013_s28, 128  ;;  %p7467_p4 = scmp.lt.s32.totalorder %s6013_s28, %s6013_s28 }
0x106f   :  { %p7463_p3 = scmp.ne.s32.totalorder %s6013_s28, %s7462_s0  ;;  %p7468_p5 = scmp.lt.s32.totalorder %s7462_s0, %s7462_s0 }
0x1071   :  { %p7469_p6 = por %p7468_p5, %p7467_p4 }
0x1073   :  { %p7470_p7 = pnand %p7469_p6, %p7463_p3 }
0x1075   :  { %7473 = shalt.err (!%p7470_p7)
}
0x1076   :  { %6015 = dma.vmem_to_hbm [thread:$0]  %s6013_s28, 128, %s8999_s10, [#allocation6]  }
0x1077   :  { %s7482_s18 = scalar_lea.vmem %s6034_s14, 256  ;;  %p7487_p9 = scmp.lt.s32.totalorder %s6034_s14, %s6034_s14 }
0x1078   :  { %p7483_p8 = scmp.ne.s32.totalorder %s6034_s14, %s7482_s18  ;;  %p7488_p10 = scmp.lt.s32.totalorder %s7482_s18, %s7482_s18 }
0x107a   :  { %p7489_p11 = por %p7488_p10, %p7487_p9 }
0x107c   :  { %p7490_p12 = pnand %p7489_p11, %p7483_p8 }
0x107e   :  { %7493 = shalt.err (!%p7490_p12)
}
0x107f   :  { %6039 = dma.vmem_to_hbm [thread:$0]  %s6034_s14, 256, %s9001_s12, [#allocation20], %s7518_s29, %s7518_s29, %s7519_s30  }
0x1080   :  { %7512 = dma.done.wait [#allocation6], 128  }
0x1081   :  { %7513 = vsyncadd [#allocation6], 4294967168 }
0x1082   :  { %7514 = dma.done.wait [#allocation20], 512  }
0x1083   :  { %7515 = vsyncadd [#allocation20], 4294966784 }
0x1084   :  { %6049 = vsyncpa [#allocation5], 1 }
0x1085   :  { %6050 = vsyncpa [#allocation8], 1 }
0x1086   :  { %6051 = vsyncpa [#allocation11], 1 }
0x1087   :  { %6052 = vsyncpa [#allocation14], 1 }
0x1088   :  { %6053 = vsyncpa [#allocation17], 1 }
0x1089   :  { %6054 = vsyncpa [#allocation6], 1 }
0x108a   :  { %6055 = vsyncpa [#allocation20], 1 }

</bundles_post_ra>
